<compile_context>
chip_gen: v7x
topology: tpu7x:2x2x1
jax: 0.10.0
libtpu: 0.0.40
codegen_flags: <defaults>
</compile_context>

<pallas_src>
import functools

import jax
import jax.numpy as jnp
from jax import lax
from jax.experimental import pallas as pl
from jax.experimental.pallas import tpu as pltpu


# ----------------------------- helpers --------------------------------------

def _round_up(x, m):
    return (x + m - 1) // m * m


def _bf16(x):
    return x.astype(jnp.bfloat16)


def _erf(x):
    # Abramowitz & Stegun 7.1.26, |err| < 1.5e-7 -> matches nn.GELU() (erf).
    p = 0.3275911
    a1, a2, a3, a4, a5 = (0.254829592, -0.284496736, 1.421413741,
                          -1.453152027, 1.061405429)
    ax = jnp.abs(x)
    t = pl.reciprocal(1.0 + p * ax, approx=True)         # EUP, frees VALU slots
    poly = ((((a5 * t + a4) * t + a3) * t + a2) * t + a1) * t
    y = 1.0 - poly * jnp.exp(-ax * ax)
    return jnp.where(x >= 0, y, -y)


def _gelu_exact(x):
    return 0.5 * x * (1.0 + _erf(x * 0.7071067811865476))


def _layernorm(x, g, b, eps=1e-5):
    mu = jnp.mean(x, axis=-1, keepdims=True)
    var = jnp.mean(jnp.square(x - mu), axis=-1, keepdims=True)
    return (x - mu) * lax.rsqrt(var + eps) * g + b


def _layernorm_padded(x, g, b, n_real, eps=1e-5):
    # Last dim of x is zero-padded beyond n_real; g/b are zero in the padding
    # so padded lanes come out exactly zero.  Sum-based moments divide by the
    # real feature count so the padding does not bias mean/var.
    inv_n = 1.0 / float(n_real)
    s1 = jnp.sum(x, axis=-1, keepdims=True)
    s2 = jnp.sum(x * x, axis=-1, keepdims=True)
    mu = s1 * inv_n
    var = s2 * inv_n - mu * mu
    return (x - mu) * lax.rsqrt(var + eps) * g + b


# -------------------------------- kernel ------------------------------------

def mae_cls_kernel(patches_ref, pos_ref,
                   pe_ln1_g, pe_ln1_b, pe_w, pe_b, pe_ln2_g, pe_ln2_b,
                   ln1_g, ln1_b, qkv_w, out_w,
                   ln2_g, ln2_b, fc1_w, fc1_b, fc2_w, fc2_b,
                   enc_ln_g, enc_ln_b, cls_w, cls_b,
                   out_ref, x_scr,
                   *, depth, n_heads, bt, seq, p_real):
    d = pl.program_id(1)
    D = x_scr.shape[-1]
    hd = D // n_heads
    N = bt * seq

    # ---- d == 0: PatchEmbedding (LN -> Linear -> LN) + sin/cos pos embed ----
    @pl.when(d == 0)
    def _():
        p = patches_ref[...].reshape(N, -1)                       # (N, Ppad) f32
        p = _layernorm_padded(p, pe_ln1_g[...], pe_ln1_b[...], p_real)
        h = jnp.dot(_bf16(p), pe_w[...],
                    preferred_element_type=jnp.float32) + pe_b[...]
        h = _layernorm(h, pe_ln2_g[...], pe_ln2_b[...])
        h = (h.reshape(bt, seq, D) + pos_ref[...]).reshape(N, D)
        x_scr[...] = h

    # ---- one TransformerBlock per grid step along the (inner) depth axis ----
    x = x_scr[...]                                                # (N, D) f32

    # MSA sublayer (pre-LN residual).  width**-0.5 is baked into the Q columns
    # of qkv_w by the wrapper, so no score scaling is needed here.
    h = _layernorm(x, ln1_g[0], ln1_b[0])
    qkv = jnp.dot(_bf16(h), qkv_w[0],
                  preferred_element_type=jnp.float32)             # (N, 3D)

    outs = []
    for i in range(bt):            # attention stays block-diagonal per example
        base = i * seq
        q = qkv[base:base + seq, 0 * D:1 * D]
        k = qkv[base:base + seq, 1 * D:2 * D]
        v = qkv[base:base + seq, 2 * D:3 * D]
        # heads batched into single 3-D dot_generals (no per-head matmul loop)
        qh = jnp.stack([q[:, n * hd:(n + 1) * hd] for n in range(n_heads)], 0)
        kh = jnp.stack([k[:, n * hd:(n + 1) * hd] for n in range(n_heads)], 0)
        vh = jnp.stack([v[:, n * hd:(n + 1) * hd] for n in range(n_heads)], 0)
        s = jnp.einsum('hqd,hkd->hqk', _bf16(qh), _bf16(kh),
                       preferred_element_type=jnp.float32)        # (H, L, L)
        s = s - jnp.max(s, axis=-1, keepdims=True)
        pw = jnp.exp(s)
        pw = pw * pl.reciprocal(jnp.sum(pw, axis=-1, keepdims=True), approx=True)
        o = jnp.einsum('hqk,hkd->hqd', _bf16(pw), _bf16(vh),
                       preferred_element_type=jnp.float32)        # (H, L, hd)
        outs.append(jnp.concatenate([o[n] for n in range(n_heads)], axis=-1))
    attn = outs[0] if bt == 1 else jnp.concatenate(outs, axis=0)  # (N, D)
    x = x + jnp.dot(_bf16(attn), out_w[0],
                    preferred_element_type=jnp.float32)

    # MLP sublayer (pre-LN residual, GELU after BOTH linears, dropout = id).
    h = _layernorm(x, ln2_g[0], ln2_b[0])
    h = _gelu_exact(jnp.dot(_bf16(h), fc1_w[0],
                            preferred_element_type=jnp.float32) + fc1_b[0])
    h = _gelu_exact(jnp.dot(_bf16(h), fc2_w[0],
                            preferred_element_type=jnp.float32) + fc2_b[0])
    x = x + h
    x_scr[...] = x

    # ---- last layer: final LN -> mean over tokens -> classifier linear ----
    @pl.when(d == depth - 1)
    def _():
        y = _layernorm(x, enc_ln_g[...], enc_ln_b[...])           # (N, D)
        pooled = jnp.mean(y.reshape(bt, seq, D), axis=1)          # (Bt, D)
        logits = jnp.dot(_bf16(pooled), cls_w[...],
                         preferred_element_type=jnp.float32) + cls_b[...]
        out_ref[0] = logits                                       # (Bt, Cpad)


# ------------------------------- wrapper -------------------------------------

def mae_for_cls_forward(image, params, pos, *, patch_size, enc_depth,
                        enc_n_heads, n_classes, batch_tile=None):
    B, C, H, W = image.shape
    ps = patch_size
    gh, gw = H // ps, W // ps
    L = gh * gw
    P = ps * ps * C
    D = params['pe_w'].shape[1]

    bt = batch_tile or B
    assert B % bt == 0, "batch_tile must divide the batch"
    nbt = B // bt

    Pp = _round_up(P, 128)            # lane-dense patch features
    Cp = _round_up(n_classes, 128)    # lane-dense logits
    f32, bf16 = jnp.float32, jnp.bfloat16

    # glue: einops 'b c (h p1) (w p2) -> b (h w) (p1 p2 c)', zero-pad P -> Pp
    patches = (image.reshape(B, C, gh, ps, gw, ps)
                    .transpose(0, 2, 4, 3, 5, 1)
                    .reshape(B, L, P))
    patches = jnp.pad(patches, ((0, 0), (0, 0), (0, Pp - P)))

    def pad_last(a, to):
        return jnp.pad(a, [(0, 0)] * (a.ndim - 1) + [(0, to - a.shape[-1])])

    # bake the width**-0.5 attention scale into the Q columns of the QKV weight
    scale = float(D) ** -0.5
    qkv_w_scaled = params['blk_qkv_w'].at[:, :, :D].multiply(scale)

    weights = dict(
        pe_ln1_g=pad_last(params['pe_ln1_g'], Pp).astype(f32),
        pe_ln1_b=pad_last(params['pe_ln1_b'], Pp).astype(f32),
        pe_w=jnp.pad(params['pe_w'], ((0, Pp - P), (0, 0))).astype(bf16),
        pe_b=params['pe_b'].astype(f32),
        pe_ln2_g=params['pe_ln2_g'].astype(f32),
        pe_ln2_b=params['pe_ln2_b'].astype(f32),
        ln1_g=params['blk_ln1_g'][:, None, :].astype(f32),
        ln1_b=params['blk_ln1_b'][:, None, :].astype(f32),
        qkv_w=qkv_w_scaled.astype(bf16),
        out_w=params['blk_out_w'].astype(bf16),
        ln2_g=params['blk_ln2_g'][:, None, :].astype(f32),
        ln2_b=params['blk_ln2_b'][:, None, :].astype(f32),
        fc1_w=params['blk_fc1_w'].astype(bf16),
        fc1_b=params['blk_fc1_b'][:, None, :].astype(f32),
        fc2_w=params['blk_fc2_w'].astype(bf16),
        fc2_b=params['blk_fc2_b'][:, None, :].astype(f32),
        enc_ln_g=params['enc_ln_g'].astype(f32),
        enc_ln_b=params['enc_ln_b'].astype(f32),
        cls_w=pad_last(params['cls_w'], Cp).astype(bf16),
        cls_b=pad_last(params['cls_b'], Cp).astype(f32),
    )

    per_layer = {'ln1_g', 'ln1_b', 'qkv_w', 'out_w', 'ln2_g', 'ln2_b',
                 'fc1_w', 'fc1_b', 'fc2_w', 'fc2_b'}
    order = ['pe_ln1_g', 'pe_ln1_b', 'pe_w', 'pe_b', 'pe_ln2_g', 'pe_ln2_b',
             'ln1_g', 'ln1_b', 'qkv_w', 'out_w', 'ln2_g', 'ln2_b',
             'fc1_w', 'fc1_b', 'fc2_w', 'fc2_b',
             'enc_ln_g', 'enc_ln_b', 'cls_w', 'cls_b']

    def const_spec(a):
        nd = a.ndim
        return pl.BlockSpec(a.shape, lambda b, d, _nd=nd: (0,) * _nd)

    def layer_spec(a):
        nd = a.ndim
        blk = (1,) + a.shape[1:]
        return pl.BlockSpec(blk, lambda b, d, _nd=nd: (d,) + (0,) * (_nd - 1))

    in_specs = [pl.BlockSpec((bt, L, Pp), lambda b, d: (b, 0, 0)),
                const_spec(pos)]
    for name in order:
        a = weights[name]
        in_specs.append(layer_spec(a) if name in per_layer else const_spec(a))

    # VMEM budget hint sized from the actual (double-buffered) blocks.
    block_bytes = 2 * bt * L * Pp * 4 + 2 * L * D * 4
    for name in order:
        a = weights[name]
        blk_elems = a.size // (a.shape[0] if name in per_layer else 1)
        block_bytes += 2 * blk_elems * a.dtype.itemsize
    block_bytes += 2 * bt * Cp * 4 + bt * L * D * 4
    vmem_limit = int(min(max(2 * block_bytes, 8 * 1024 * 1024),
                         48 * 1024 * 1024))

    kernel = functools.partial(mae_cls_kernel, depth=enc_depth,
                               n_heads=enc_n_heads, bt=bt, seq=L, p_real=P)

    out = pl.pallas_call(
        kernel,
        out_shape=jax.ShapeDtypeStruct((nbt, bt, Cp), jnp.float32),
        grid=(nbt, enc_depth),
        in_specs=in_specs,
        out_specs=pl.BlockSpec((1, bt, Cp), lambda b, d: (b, 0, 0)),
        scratch_shapes=[pltpu.VMEM((bt * L, D), jnp.float32)],
        compiler_params=pltpu.CompilerParams(
            dimension_semantics=("parallel", "arbitrary"),
            vmem_limit_bytes=vmem_limit),
    )(patches, pos, *[weights[n] for n in order])

    return out.reshape(B, Cp)[:, :n_classes]


# ------------------------ deterministic parameters ---------------------------

def sincos_pos_embed(n_tokens, dim):
    pos = jnp.arange(n_tokens, dtype=jnp.float32)[:, None]
    i = jnp.arange(dim // 2, dtype=jnp.float32)[None, :]
    angle = pos / jnp.power(10000.0, 2.0 * i / dim)
    pe = jnp.zeros((n_tokens, dim), jnp.float32)
    pe = pe.at[:, 0::2].set(jnp.sin(angle))
    pe = pe.at[:, 1::2].set(jnp.cos(angle))
    return pe


def build_params(key, *, patch_size, enc_depth, enc_width, n_classes):
    P = patch_size * patch_size * 3
    D = enc_width
    ks = jax.random.split(key, 8)

    def dense(k, shape):
        return jax.random.normal(k, shape, jnp.float32) * 0.02

    return dict(
        pe_ln1_g=jnp.ones((1, P), jnp.float32),
        pe_ln1_b=jnp.zeros((1, P), jnp.float32),
        pe_w=dense(ks[0], (P, D)),
        pe_b=jnp.zeros((1, D), jnp.float32),
        pe_ln2_g=jnp.ones((1, D), jnp.float32),
        pe_ln2_b=jnp.zeros((1, D), jnp.float32),
        blk_ln1_g=jnp.ones((enc_depth, D), jnp.float32),
        blk_ln1_b=jnp.zeros((enc_depth, D), jnp.float32),
        blk_qkv_w=dense(ks[1], (enc_depth, D, 3 * D)),
        blk_out_w=dense(ks[2], (enc_depth, D, D)),
        blk_ln2_g=jnp.ones((enc_depth, D), jnp.float32),
        blk_ln2_b=jnp.zeros((enc_depth, D), jnp.float32),
        blk_fc1_w=dense(ks[3], (enc_depth, D, 4 * D)),
        blk_fc1_b=jnp.zeros((enc_depth, 4 * D), jnp.float32),
        blk_fc2_w=dense(ks[4], (enc_depth, 4 * D, D)),
        blk_fc2_b=jnp.zeros((enc_depth, D), jnp.float32),
        enc_ln_g=jnp.ones((1, D), jnp.float32),
        enc_ln_b=jnp.zeros((1, D), jnp.float32),
        cls_w=dense(ks[5], (D, n_classes)),
        cls_b=jnp.zeros((1, n_classes), jnp.float32),
        # mask_token exists in the reference module but is unused under the
        # intended "no masking" (mask_ratio=0) path implemented here.
        mask_token=dense(ks[6], (D,)),
    )


# --------------------- pure-JAX reference (correctness) ----------------------
# Matmul operands are cast to bf16 (f32 accumulation) to mirror the kernel's
# MXU precision; everything else is f32, matching the original module math.

def reference_forward(patches, pos, p, *, depth, n_heads):
    f32, bf16 = jnp.float32, jnp.bfloat16

    def ln(x, g, b, eps=1e-5):
        mu = jnp.mean(x, axis=-1, keepdims=True)
        var = jnp.mean(jnp.square(x - mu), axis=-1, keepdims=True)
        return (x - mu) * lax.rsqrt(var + eps) * g + b

    def mm(a, w):
        return jnp.einsum('...d,de->...e', a.astype(bf16), w.astype(bf16),
                          preferred_element_type=f32)

    x = ln(patches, p['pe_ln1_g'], p['pe_ln1_b'])
    x = mm(x, p['pe_w']) + p['pe_b']
    x = ln(x, p['pe_ln2_g'], p['pe_ln2_b'])
    x = x + pos[None]
    B, L, D = x.shape
    hd = D // n_heads
    scale = float(D) ** -0.5
    for d in range(depth):
        skip = x
        h = ln(x, p['blk_ln1_g'][d], p['blk_ln1_b'][d])
        qkv = mm(h, p['blk_qkv_w'][d])
        q, k, v = jnp.split(qkv, 3, axis=-1)
        qh = q.reshape(B, L, n_heads, hd)
        kh = k.reshape(B, L, n_heads, hd)
        vh = v.reshape(B, L, n_heads, hd)
        s = jnp.einsum('binh,bjnh->bijn', qh.astype(bf16), kh.astype(bf16),
                       preferred_element_type=f32) * scale
        w = jax.nn.softmax(s, axis=2)
        o = jnp.einsum('bijn,bjnh->binh', w.astype(bf16), vh.astype(bf16),
                       preferred_element_type=f32).reshape(B, L, D)
        x = mm(o, p['blk_out_w'][d]) + skip
        skip = x
        h = ln(x, p['blk_ln2_g'][d], p['blk_ln2_b'][d])
        h = jax.nn.gelu(mm(h, p['blk_fc1_w'][d]) + p['blk_fc1_b'][d],
                        approximate=False)
        h = jax.nn.gelu(mm(h, p['blk_fc2_w'][d]) + p['blk_fc2_b'][d],
                        approximate=False)
        x = h + skip
    x = ln(x, p['enc_ln_g'], p['enc_ln_b'])
    pooled = jnp.mean(x, axis=1)
    return mm(pooled, p['cls_w']) + p['cls_b']


# ---------------------------------- main --------------------------------------

if __name__ == "__main__":
    # small but shape-consistent config
    B, IMG, PS = 4, 32, 8            # 4x4 patch grid -> L = 16 tokens, P = 192
    DEPTH, WIDTH, HEADS, NCLS = 2, 128, 4, 10
    BATCH_TILE = 2                   # 2 examples per grid step -> 32-row matmuls

    key = jax.random.PRNGKey(0)
    k_img, k_par = jax.random.split(key)
    image = jax.random.normal(k_img, (B, 3, IMG, IMG), jnp.float32)

    L = (IMG // PS) ** 2
    params = build_params(k_par, patch_size=PS, enc_depth=DEPTH,
                          enc_width=WIDTH, n_classes=NCLS)
    pos = sincos_pos_embed(L, WIDTH)

    logits = mae_for_cls_forward(image, params, pos, patch_size=PS,
                                 enc_depth=DEPTH, enc_n_heads=HEADS,
                                 n_classes=NCLS, batch_tile=BATCH_TILE)
    logits = jax.block_until_ready(logits)

    # correctness check against a pure-JAX reference with matched MXU precision
    patches = (image.reshape(B, 3, IMG // PS, PS, IMG // PS, PS)
                    .transpose(0, 2, 4, 3, 5, 1)
                    .reshape(B, L, -1))
    ref = reference_forward(patches, pos, params, depth=DEPTH, n_heads=HEADS)
    assert logits.shape == (B, NCLS)
    assert jnp.allclose(logits, ref, atol=1e-2, rtol=1e-2), (logits, ref)

    print("KERNEL_OK")
</pallas_src>

<mosaic_0001>
module attributes {stable_mosaic.version = 11 : i64} {
  func.func @mae_cls_kernel(%arg0: i32, %arg1: i32, %arg2: memref<2x16x256xf32, #tpu.memory_space<vmem>>, %arg3: memref<16x128xf32, #tpu.memory_space<vmem>>, %arg4: memref<1x256xf32, #tpu.memory_space<vmem>>, %arg5: memref<1x256xf32, #tpu.memory_space<vmem>>, %arg6: memref<256x128xbf16, #tpu.memory_space<vmem>>, %arg7: memref<1x128xf32, #tpu.memory_space<vmem>>, %arg8: memref<1x128xf32, #tpu.memory_space<vmem>>, %arg9: memref<1x128xf32, #tpu.memory_space<vmem>>, %arg10: memref<1x1x128xf32, #tpu.memory_space<vmem>>, %arg11: memref<1x1x128xf32, #tpu.memory_space<vmem>>, %arg12: memref<1x128x384xbf16, #tpu.memory_space<vmem>>, %arg13: memref<1x128x128xbf16, #tpu.memory_space<vmem>>, %arg14: memref<1x1x128xf32, #tpu.memory_space<vmem>>, %arg15: memref<1x1x128xf32, #tpu.memory_space<vmem>>, %arg16: memref<1x128x512xbf16, #tpu.memory_space<vmem>>, %arg17: memref<1x1x512xf32, #tpu.memory_space<vmem>>, %arg18: memref<1x512x128xbf16, #tpu.memory_space<vmem>>, %arg19: memref<1x1x128xf32, #tpu.memory_space<vmem>>, %arg20: memref<1x128xf32, #tpu.memory_space<vmem>>, %arg21: memref<1x128xf32, #tpu.memory_space<vmem>>, %arg22: memref<128x128xbf16, #tpu.memory_space<vmem>>, %arg23: memref<1x128xf32, #tpu.memory_space<vmem>>, %arg24: memref<1x2x128xf32, #tpu.memory_space<vmem>>, %arg25: memref<32x128xf32, #tpu.memory_space<vmem>>) attributes {dimension_semantics = [#tpu.dimension_semantics<parallel>, #tpu.dimension_semantics<arbitrary>], iteration_bounds = array<i64: 2, 2>, scalar_prefetch = 0 : i64, scratch_operands = 1 : i64, tpu.core_type = #tpu.core_type<tc>, window_params = [{transform_indices = @transform_0, window_bounds = array<i64: 2, 16, 256>}, {pipeline_mode = #tpu.pipeline_mode<synchronous>, transform_indices = @transform_1, window_bounds = array<i64: 16, 128>}, {pipeline_mode = #tpu.pipeline_mode<synchronous>, transform_indices = @transform_2, window_bounds = array<i64: 1, 256>}, {pipeline_mode = #tpu.pipeline_mode<synchronous>, transform_indices = @transform_3, window_bounds = array<i64: 1, 256>}, {pipeline_mode = #tpu.pipeline_mode<synchronous>, transform_indices = @transform_4, window_bounds = array<i64: 256, 128>}, {pipeline_mode = #tpu.pipeline_mode<synchronous>, transform_indices = @transform_5, window_bounds = array<i64: 1, 128>}, {pipeline_mode = #tpu.pipeline_mode<synchronous>, transform_indices = @transform_6, window_bounds = array<i64: 1, 128>}, {pipeline_mode = #tpu.pipeline_mode<synchronous>, transform_indices = @transform_7, window_bounds = array<i64: 1, 128>}, {transform_indices = @transform_8, window_bounds = array<i64: 1, 1, 128>}, {transform_indices = @transform_9, window_bounds = array<i64: 1, 1, 128>}, {transform_indices = @transform_10, window_bounds = array<i64: 1, 128, 384>}, {transform_indices = @transform_11, window_bounds = array<i64: 1, 128, 128>}, {transform_indices = @transform_12, window_bounds = array<i64: 1, 1, 128>}, {transform_indices = @transform_13, window_bounds = array<i64: 1, 1, 128>}, {transform_indices = @transform_14, window_bounds = array<i64: 1, 128, 512>}, {transform_indices = @transform_15, window_bounds = array<i64: 1, 1, 512>}, {transform_indices = @transform_16, window_bounds = array<i64: 1, 512, 128>}, {transform_indices = @transform_17, window_bounds = array<i64: 1, 1, 128>}, {pipeline_mode = #tpu.pipeline_mode<synchronous>, transform_indices = @transform_18, window_bounds = array<i64: 1, 128>}, {pipeline_mode = #tpu.pipeline_mode<synchronous>, transform_indices = @transform_19, window_bounds = array<i64: 1, 128>}, {pipeline_mode = #tpu.pipeline_mode<synchronous>, transform_indices = @transform_20, window_bounds = array<i64: 128, 128>}, {pipeline_mode = #tpu.pipeline_mode<synchronous>, transform_indices = @transform_21, window_bounds = array<i64: 1, 128>}, {transform_indices = @transform_22, window_bounds = array<i64: 1, 2, 128>}]} {
    %c0_i32 = arith.constant 0 : i32
    %0 = arith.cmpi eq, %arg1, %c0_i32 : i32
    %1 = arith.extui %0 : i1 to i32
    %c0_i32_0 = arith.constant 0 : i32
    %2 = arith.cmpi ne, %1, %c0_i32_0 : i32
    scf.if %2 {
      %c0_84 = arith.constant 0 : index
      %c0_85 = arith.constant 0 : index
      %c0_86 = arith.constant 0 : index
      %275 = vector.load %arg2[%c0_84, %c0_85, %c0_86] : memref<2x16x256xf32, #tpu.memory_space<vmem>>, vector<2x16x256xf32>
      %276 = vector.shape_cast %275 : vector<2x16x256xf32> to vector<32x256xf32>
      %c0_87 = arith.constant 0 : index
      %c0_88 = arith.constant 0 : index
      %277 = vector.load %arg4[%c0_87, %c0_88] : memref<1x256xf32, #tpu.memory_space<vmem>>, vector<1x256xf32>
      %c0_89 = arith.constant 0 : index
      %c0_90 = arith.constant 0 : index
      %278 = vector.load %arg5[%c0_89, %c0_90] : memref<1x256xf32, #tpu.memory_space<vmem>>, vector<1x256xf32>
      %cst_91 = arith.constant dense<0.000000e+00> : vector<32xf32>
      %279 = vector.multi_reduction <add>, %276, %cst_91 [1] : vector<32x256xf32> to vector<32xf32>
      %280 = vector.shape_cast %279 : vector<32xf32> to vector<32x1xf32>
      %281 = arith.mulf %276, %276 : vector<32x256xf32>
      %cst_92 = arith.constant dense<0.000000e+00> : vector<32xf32>
      %282 = vector.multi_reduction <add>, %281, %cst_92 [1] : vector<32x256xf32> to vector<32xf32>
      %283 = vector.shape_cast %282 : vector<32xf32> to vector<32x1xf32>
      %cst_93 = arith.constant 0.00520833349 : f32
      %284 = vector.broadcast %cst_93 : f32 to vector<32x1xf32>
      %285 = arith.mulf %280, %284 : vector<32x1xf32>
      %cst_94 = arith.constant 0.00520833349 : f32
      %286 = vector.broadcast %cst_94 : f32 to vector<32x1xf32>
      %287 = arith.mulf %283, %286 : vector<32x1xf32>
      %288 = arith.mulf %285, %285 : vector<32x1xf32>
      %289 = arith.subf %287, %288 : vector<32x1xf32>
      %290 = vector.broadcast %285 : vector<32x1xf32> to vector<32x256xf32>
      %291 = arith.subf %276, %290 : vector<32x256xf32>
      %cst_95 = arith.constant 9.99999974E-6 : f32
      %292 = vector.broadcast %cst_95 : f32 to vector<32x1xf32>
      %293 = arith.addf %289, %292 : vector<32x1xf32>
      %294 = math.rsqrt %293 : vector<32x1xf32>
      %295 = vector.broadcast %294 : vector<32x1xf32> to vector<32x256xf32>
      %296 = arith.mulf %291, %295 : vector<32x256xf32>
      %297 = vector.broadcast %277 : vector<1x256xf32> to vector<32x256xf32>
      %298 = arith.mulf %296, %297 : vector<32x256xf32>
      %299 = vector.broadcast %278 : vector<1x256xf32> to vector<32x256xf32>
      %300 = arith.addf %298, %299 : vector<32x256xf32>
      %301 = arith.truncf %300 : vector<32x256xf32> to vector<32x256xbf16>
      %c0_96 = arith.constant 0 : index
      %c0_97 = arith.constant 0 : index
      %302 = vector.load %arg6[%c0_96, %c0_97] : memref<256x128xbf16, #tpu.memory_space<vmem>>, vector<256x128xbf16>
      %cst_98 = arith.constant dense<0.000000e+00> : vector<32x128xf32>
      %303 = tpu.matmul %301, %302, %cst_98 {dimension_numbers = #tpu.dot_dimension_numbers<[1], [0], [0], [1], [0, 0, 1, 1], [], []>} : vector<32x256xbf16>, vector<256x128xbf16>, vector<32x128xf32> -> vector<32x128xf32>
      %c0_99 = arith.constant 0 : index
      %c0_100 = arith.constant 0 : index
      %304 = vector.load %arg7[%c0_99, %c0_100] : memref<1x128xf32, #tpu.memory_space<vmem>>, vector<1x128xf32>
      %305 = vector.broadcast %304 : vector<1x128xf32> to vector<32x128xf32>
      %306 = arith.addf %303, %305 : vector<32x128xf32>
      %c0_101 = arith.constant 0 : index
      %c0_102 = arith.constant 0 : index
      %307 = vector.load %arg8[%c0_101, %c0_102] : memref<1x128xf32, #tpu.memory_space<vmem>>, vector<1x128xf32>
      %c0_103 = arith.constant 0 : index
      %c0_104 = arith.constant 0 : index
      %308 = vector.load %arg9[%c0_103, %c0_104] : memref<1x128xf32, #tpu.memory_space<vmem>>, vector<1x128xf32>
      %cst_105 = arith.constant dense<0.000000e+00> : vector<32xf32>
      %309 = vector.multi_reduction <add>, %306, %cst_105 [1] : vector<32x128xf32> to vector<32xf32>
      %310 = vector.shape_cast %309 : vector<32xf32> to vector<32x1xf32>
      %cst_106 = arith.constant 1.280000e+02 : f32
      %311 = vector.broadcast %cst_106 : f32 to vector<32x1xf32>
      %312 = arith.divf %310, %311 : vector<32x1xf32>
      %313 = vector.broadcast %312 : vector<32x1xf32> to vector<32x128xf32>
      %314 = arith.subf %306, %313 : vector<32x128xf32>
      %315 = arith.mulf %314, %314 : vector<32x128xf32>
      %cst_107 = arith.constant dense<0.000000e+00> : vector<32xf32>
      %316 = vector.multi_reduction <add>, %315, %cst_107 [1] : vector<32x128xf32> to vector<32xf32>
      %317 = vector.shape_cast %316 : vector<32xf32> to vector<32x1xf32>
      %cst_108 = arith.constant 1.280000e+02 : f32
      %318 = vector.broadcast %cst_108 : f32 to vector<32x1xf32>
      %319 = arith.divf %317, %318 : vector<32x1xf32>
      %320 = vector.broadcast %312 : vector<32x1xf32> to vector<32x128xf32>
      %321 = arith.subf %306, %320 : vector<32x128xf32>
      %cst_109 = arith.constant 9.99999974E-6 : f32
      %322 = vector.broadcast %cst_109 : f32 to vector<32x1xf32>
      %323 = arith.addf %319, %322 : vector<32x1xf32>
      %324 = math.rsqrt %323 : vector<32x1xf32>
      %325 = vector.broadcast %324 : vector<32x1xf32> to vector<32x128xf32>
      %326 = arith.mulf %321, %325 : vector<32x128xf32>
      %327 = vector.broadcast %307 : vector<1x128xf32> to vector<32x128xf32>
      %328 = arith.mulf %326, %327 : vector<32x128xf32>
      %329 = vector.broadcast %308 : vector<1x128xf32> to vector<32x128xf32>
      %330 = arith.addf %328, %329 : vector<32x128xf32>
      %331 = vector.shape_cast %330 : vector<32x128xf32> to vector<2x16x128xf32>
      %c0_110 = arith.constant 0 : index
      %c0_111 = arith.constant 0 : index
      %332 = vector.load %arg3[%c0_110, %c0_111] : memref<16x128xf32, #tpu.memory_space<vmem>>, vector<16x128xf32>
      %333 = vector.shape_cast %332 : vector<16x128xf32> to vector<1x16x128xf32>
      %334 = vector.broadcast %333 : vector<1x16x128xf32> to vector<2x16x128xf32>
      %335 = arith.addf %331, %334 : vector<2x16x128xf32>
      %336 = vector.shape_cast %335 : vector<2x16x128xf32> to vector<32x128xf32>
      %c0_112 = arith.constant 0 : index
      %c0_113 = arith.constant 0 : index
      %337 = vector.load %arg25[%c0_112, %c0_113] : memref<32x128xf32, #tpu.memory_space<vmem>>, vector<32x128xf32>
      tpu.vector_store %arg25[%c0_112, %c0_113], %336 {strides = array<i32>} : memref<32x128xf32, #tpu.memory_space<vmem>>, vector<32x128xf32>,
    } else {
    }
    %c0 = arith.constant 0 : index
    %c0_1 = arith.constant 0 : index
    %3 = vector.load %arg25[%c0, %c0_1] : memref<32x128xf32, #tpu.memory_space<vmem>>, vector<32x128xf32>
    %c0_2 = arith.constant 0 : index
    %c0_3 = arith.constant 0 : index
    %c0_4 = arith.constant 0 : index
    %4 = vector.load %arg10[%c0_2, %c0_3, %c0_4] : memref<1x1x128xf32, #tpu.memory_space<vmem>>, vector<1x1x128xf32>
    %5 = vector.shape_cast %4 : vector<1x1x128xf32> to vector<1x128xf32>
    %c0_5 = arith.constant 0 : index
    %c0_6 = arith.constant 0 : index
    %c0_7 = arith.constant 0 : index
    %6 = vector.load %arg11[%c0_5, %c0_6, %c0_7] : memref<1x1x128xf32, #tpu.memory_space<vmem>>, vector<1x1x128xf32>
    %7 = vector.shape_cast %6 : vector<1x1x128xf32> to vector<1x128xf32>
    %cst = arith.constant dense<0.000000e+00> : vector<32xf32>
    %8 = vector.multi_reduction <add>, %3, %cst [1] : vector<32x128xf32> to vector<32xf32>
    %9 = vector.shape_cast %8 : vector<32xf32> to vector<32x1xf32>
    %cst_8 = arith.constant 1.280000e+02 : f32
    %10 = vector.broadcast %cst_8 : f32 to vector<32x1xf32>
    %11 = arith.divf %9, %10 : vector<32x1xf32>
    %12 = vector.broadcast %11 : vector<32x1xf32> to vector<32x128xf32>
    %13 = arith.subf %3, %12 : vector<32x128xf32>
    %14 = arith.mulf %13, %13 : vector<32x128xf32>
    %cst_9 = arith.constant dense<0.000000e+00> : vector<32xf32>
    %15 = vector.multi_reduction <add>, %14, %cst_9 [1] : vector<32x128xf32> to vector<32xf32>
    %16 = vector.shape_cast %15 : vector<32xf32> to vector<32x1xf32>
    %cst_10 = arith.constant 1.280000e+02 : f32
    %17 = vector.broadcast %cst_10 : f32 to vector<32x1xf32>
    %18 = arith.divf %16, %17 : vector<32x1xf32>
    %19 = vector.broadcast %11 : vector<32x1xf32> to vector<32x128xf32>
    %20 = arith.subf %3, %19 : vector<32x128xf32>
    %cst_11 = arith.constant 9.99999974E-6 : f32
    %21 = vector.broadcast %cst_11 : f32 to vector<32x1xf32>
    %22 = arith.addf %18, %21 : vector<32x1xf32>
    %23 = math.rsqrt %22 : vector<32x1xf32>
    %24 = vector.broadcast %23 : vector<32x1xf32> to vector<32x128xf32>
    %25 = arith.mulf %20, %24 : vector<32x128xf32>
    %26 = vector.broadcast %5 : vector<1x128xf32> to vector<32x128xf32>
    %27 = arith.mulf %25, %26 : vector<32x128xf32>
    %28 = vector.broadcast %7 : vector<1x128xf32> to vector<32x128xf32>
    %29 = arith.addf %27, %28 : vector<32x128xf32>
    %30 = arith.truncf %29 : vector<32x128xf32> to vector<32x128xbf16>
    %c0_12 = arith.constant 0 : index
    %c0_13 = arith.constant 0 : index
    %c0_14 = arith.constant 0 : index
    %31 = vector.load %arg12[%c0_12, %c0_13, %c0_14] : memref<1x128x384xbf16, #tpu.memory_space<vmem>>, vector<1x128x384xbf16>
    %32 = vector.shape_cast %31 : vector<1x128x384xbf16> to vector<128x384xbf16>
    %cst_15 = arith.constant dense<0.000000e+00> : vector<32x384xf32>
    %33 = tpu.matmul %30, %32, %cst_15 {dimension_numbers = #tpu.dot_dimension_numbers<[1], [0], [0], [1], [0, 0, 1, 1], [], []>} : vector<32x128xbf16>, vector<128x384xbf16>, vector<32x384xf32> -> vector<32x384xf32>
    %34 = vector.extract_strided_slice %33 {offsets = [0, 0], sizes = [16, 128], strides = [1, 1]} : vector<32x384xf32> to vector<16x128xf32>
    %35 = vector.extract_strided_slice %33 {offsets = [0, 128], sizes = [16, 128], strides = [1, 1]} : vector<32x384xf32> to vector<16x128xf32>
    %36 = vector.extract_strided_slice %33 {offsets = [0, 256], sizes = [16, 128], strides = [1, 1]} : vector<32x384xf32> to vector<16x128xf32>
    %37 = vector.extract_strided_slice %34 {offsets = [0, 0], sizes = [16, 32], strides = [1, 1]} : vector<16x128xf32> to vector<16x32xf32>
    %38 = vector.extract_strided_slice %34 {offsets = [0, 32], sizes = [16, 32], strides = [1, 1]} : vector<16x128xf32> to vector<16x32xf32>
    %39 = vector.extract_strided_slice %34 {offsets = [0, 64], sizes = [16, 32], strides = [1, 1]} : vector<16x128xf32> to vector<16x32xf32>
    %40 = vector.extract_strided_slice %34 {offsets = [0, 96], sizes = [16, 32], strides = [1, 1]} : vector<16x128xf32> to vector<16x32xf32>
    %41 = vector.shape_cast %37 : vector<16x32xf32> to vector<1x16x32xf32>
    %42 = vector.shape_cast %38 : vector<16x32xf32> to vector<1x16x32xf32>
    %43 = vector.shape_cast %39 : vector<16x32xf32> to vector<1x16x32xf32>
    %44 = vector.shape_cast %40 : vector<16x32xf32> to vector<1x16x32xf32>
    %45 = tpu.concatenate %41, %42, %43, %44 in 0 : vector<1x16x32xf32>, vector<1x16x32xf32>, vector<1x16x32xf32>, vector<1x16x32xf32> -> vector<4x16x32xf32>
    %46 = vector.extract_strided_slice %35 {offsets = [0, 0], sizes = [16, 32], strides = [1, 1]} : vector<16x128xf32> to vector<16x32xf32>
    %47 = vector.extract_strided_slice %35 {offsets = [0, 32], sizes = [16, 32], strides = [1, 1]} : vector<16x128xf32> to vector<16x32xf32>
    %48 = vector.extract_strided_slice %35 {offsets = [0, 64], sizes = [16, 32], strides = [1, 1]} : vector<16x128xf32> to vector<16x32xf32>
    %49 = vector.extract_strided_slice %35 {offsets = [0, 96], sizes = [16, 32], strides = [1, 1]} : vector<16x128xf32> to vector<16x32xf32>
    %50 = vector.shape_cast %46 : vector<16x32xf32> to vector<1x16x32xf32>
    %51 = vector.shape_cast %47 : vector<16x32xf32> to vector<1x16x32xf32>
    %52 = vector.shape_cast %48 : vector<16x32xf32> to vector<1x16x32xf32>
    %53 = vector.shape_cast %49 : vector<16x32xf32> to vector<1x16x32xf32>
    %54 = tpu.concatenate %50, %51, %52, %53 in 0 : vector<1x16x32xf32>, vector<1x16x32xf32>, vector<1x16x32xf32>, vector<1x16x32xf32> -> vector<4x16x32xf32>
    %55 = vector.extract_strided_slice %36 {offsets = [0, 0], sizes = [16, 32], strides = [1, 1]} : vector<16x128xf32> to vector<16x32xf32>
    %56 = vector.extract_strided_slice %36 {offsets = [0, 32], sizes = [16, 32], strides = [1, 1]} : vector<16x128xf32> to vector<16x32xf32>
    %57 = vector.extract_strided_slice %36 {offsets = [0, 64], sizes = [16, 32], strides = [1, 1]} : vector<16x128xf32> to vector<16x32xf32>
    %58 = vector.extract_strided_slice %36 {offsets = [0, 96], sizes = [16, 32], strides = [1, 1]} : vector<16x128xf32> to vector<16x32xf32>
    %59 = vector.shape_cast %55 : vector<16x32xf32> to vector<1x16x32xf32>
    %60 = vector.shape_cast %56 : vector<16x32xf32> to vector<1x16x32xf32>
    %61 = vector.shape_cast %57 : vector<16x32xf32> to vector<1x16x32xf32>
    %62 = vector.shape_cast %58 : vector<16x32xf32> to vector<1x16x32xf32>
    %63 = tpu.concatenate %59, %60, %61, %62 in 0 : vector<1x16x32xf32>, vector<1x16x32xf32>, vector<1x16x32xf32>, vector<1x16x32xf32> -> vector<4x16x32xf32>
    %64 = arith.truncf %45 : vector<4x16x32xf32> to vector<4x16x32xbf16>
    %65 = arith.truncf %54 : vector<4x16x32xf32> to vector<4x16x32xbf16>
    "tpu.trace_start"() <{level = 10 : i32, message = "hqd,hkd->hqk"}> : () -> ()
    %cst_16 = arith.constant dense<0.000000e+00> : vector<4x16x16xf32>
    %66 = tpu.matmul %64, %65, %cst_16 {dimension_numbers = #tpu.dot_dimension_numbers<[2], [2], [1], [1], [0, 0, 0, 1, 1, 1], [0], [0]>} : vector<4x16x32xbf16>, vector<4x16x32xbf16>, vector<4x16x16xf32> -> vector<4x16x16xf32>
    "tpu.trace_stop"() : () -> ()
    %cst_17 = arith.constant dense<0xFF800000> : vector<4x16xf32>
    %67 = vector.multi_reduction <maximumf>, %66, %cst_17 [2] : vector<4x16x16xf32> to vector<4x16xf32>
    %68 = vector.shape_cast %67 : vector<4x16xf32> to vector<4x16x1xf32>
    %69 = vector.broadcast %68 : vector<4x16x1xf32> to vector<4x16x16xf32>
    %70 = arith.subf %66, %69 : vector<4x16x16xf32>
    %71 = math.exp %70 : vector<4x16x16xf32>
    %cst_18 = arith.constant dense<0.000000e+00> : vector<4x16xf32>
    %72 = vector.multi_reduction <add>, %71, %cst_18 [2] : vector<4x16x16xf32> to vector<4x16xf32>
    %73 = vector.shape_cast %72 : vector<4x16xf32> to vector<4x16x1xf32>
    %74 = tpu.reciprocal %73 {approx = true} : vector<4x16x1xf32> -> vector<4x16x1xf32>
    %75 = vector.broadcast %74 : vector<4x16x1xf32> to vector<4x16x16xf32>
    %76 = arith.mulf %71, %75 : vector<4x16x16xf32>
    %77 = arith.truncf %76 : vector<4x16x16xf32> to vector<4x16x16xbf16>
    %78 = arith.truncf %63 : vector<4x16x32xf32> to vector<4x16x32xbf16>
    "tpu.trace_start"() <{level = 10 : i32, message = "hqk,hkd->hqd"}> : () -> ()
    %cst_19 = arith.constant dense<0.000000e+00> : vector<4x16x32xf32>
    %79 = tpu.matmul %77, %78, %cst_19 {dimension_numbers = #tpu.dot_dimension_numbers<[2], [1], [1], [2], [0, 0, 0, 1, 1, 2], [0], [0]>} : vector<4x16x16xbf16>, vector<4x16x32xbf16>, vector<4x16x32xf32> -> vector<4x16x32xf32>
    "tpu.trace_stop"() : () -> ()
    %80 = vector.extract_strided_slice %79 {offsets = [0, 0, 0], sizes = [1, 16, 32], strides = [1, 1, 1]} : vector<4x16x32xf32> to vector<1x16x32xf32>
    %81 = vector.shape_cast %80 : vector<1x16x32xf32> to vector<16x32xf32>
    %82 = vector.extract_strided_slice %79 {offsets = [1, 0, 0], sizes = [1, 16, 32], strides = [1, 1, 1]} : vector<4x16x32xf32> to vector<1x16x32xf32>
    %83 = vector.shape_cast %82 : vector<1x16x32xf32> to vector<16x32xf32>
    %84 = vector.extract_strided_slice %79 {offsets = [2, 0, 0], sizes = [1, 16, 32], strides = [1, 1, 1]} : vector<4x16x32xf32> to vector<1x16x32xf32>
    %85 = vector.shape_cast %84 : vector<1x16x32xf32> to vector<16x32xf32>
    %86 = vector.extract_strided_slice %79 {offsets = [3, 0, 0], sizes = [1, 16, 32], strides = [1, 1, 1]} : vector<4x16x32xf32> to vector<1x16x32xf32>
    %87 = vector.shape_cast %86 : vector<1x16x32xf32> to vector<16x32xf32>
    %88 = tpu.concatenate %81, %83, %85, %87 in 1 : vector<16x32xf32>, vector<16x32xf32>, vector<16x32xf32>, vector<16x32xf32> -> vector<16x128xf32>
    %89 = vector.extract_strided_slice %33 {offsets = [16, 0], sizes = [16, 128], strides = [1, 1]} : vector<32x384xf32> to vector<16x128xf32>
    %90 = vector.extract_strided_slice %33 {offsets = [16, 128], sizes = [16, 128], strides = [1, 1]} : vector<32x384xf32> to vector<16x128xf32>
    %91 = vector.extract_strided_slice %33 {offsets = [16, 256], sizes = [16, 128], strides = [1, 1]} : vector<32x384xf32> to vector<16x128xf32>
    %92 = vector.extract_strided_slice %89 {offsets = [0, 0], sizes = [16, 32], strides = [1, 1]} : vector<16x128xf32> to vector<16x32xf32>
    %93 = vector.extract_strided_slice %89 {offsets = [0, 32], sizes = [16, 32], strides = [1, 1]} : vector<16x128xf32> to vector<16x32xf32>
    %94 = vector.extract_strided_slice %89 {offsets = [0, 64], sizes = [16, 32], strides = [1, 1]} : vector<16x128xf32> to vector<16x32xf32>
    %95 = vector.extract_strided_slice %89 {offsets = [0, 96], sizes = [16, 32], strides = [1, 1]} : vector<16x128xf32> to vector<16x32xf32>
    %96 = vector.shape_cast %92 : vector<16x32xf32> to vector<1x16x32xf32>
    %97 = vector.shape_cast %93 : vector<16x32xf32> to vector<1x16x32xf32>
    %98 = vector.shape_cast %94 : vector<16x32xf32> to vector<1x16x32xf32>
    %99 = vector.shape_cast %95 : vector<16x32xf32> to vector<1x16x32xf32>
    %100 = tpu.concatenate %96, %97, %98, %99 in 0 : vector<1x16x32xf32>, vector<1x16x32xf32>, vector<1x16x32xf32>, vector<1x16x32xf32> -> vector<4x16x32xf32>
    %101 = vector.extract_strided_slice %90 {offsets = [0, 0], sizes = [16, 32], strides = [1, 1]} : vector<16x128xf32> to vector<16x32xf32>
    %102 = vector.extract_strided_slice %90 {offsets = [0, 32], sizes = [16, 32], strides = [1, 1]} : vector<16x128xf32> to vector<16x32xf32>
    %103 = vector.extract_strided_slice %90 {offsets = [0, 64], sizes = [16, 32], strides = [1, 1]} : vector<16x128xf32> to vector<16x32xf32>
    %104 = vector.extract_strided_slice %90 {offsets = [0, 96], sizes = [16, 32], strides = [1, 1]} : vector<16x128xf32> to vector<16x32xf32>
    %105 = vector.shape_cast %101 : vector<16x32xf32> to vector<1x16x32xf32>
    %106 = vector.shape_cast %102 : vector<16x32xf32> to vector<1x16x32xf32>
    %107 = vector.shape_cast %103 : vector<16x32xf32> to vector<1x16x32xf32>
    %108 = vector.shape_cast %104 : vector<16x32xf32> to vector<1x16x32xf32>
    %109 = tpu.concatenate %105, %106, %107, %108 in 0 : vector<1x16x32xf32>, vector<1x16x32xf32>, vector<1x16x32xf32>, vector<1x16x32xf32> -> vector<4x16x32xf32>
    %110 = vector.extract_strided_slice %91 {offsets = [0, 0], sizes = [16, 32], strides = [1, 1]} : vector<16x128xf32> to vector<16x32xf32>
    %111 = vector.extract_strided_slice %91 {offsets = [0, 32], sizes = [16, 32], strides = [1, 1]} : vector<16x128xf32> to vector<16x32xf32>
    %112 = vector.extract_strided_slice %91 {offsets = [0, 64], sizes = [16, 32], strides = [1, 1]} : vector<16x128xf32> to vector<16x32xf32>
    %113 = vector.extract_strided_slice %91 {offsets = [0, 96], sizes = [16, 32], strides = [1, 1]} : vector<16x128xf32> to vector<16x32xf32>
    %114 = vector.shape_cast %110 : vector<16x32xf32> to vector<1x16x32xf32>
    %115 = vector.shape_cast %111 : vector<16x32xf32> to vector<1x16x32xf32>
    %116 = vector.shape_cast %112 : vector<16x32xf32> to vector<1x16x32xf32>
    %117 = vector.shape_cast %113 : vector<16x32xf32> to vector<1x16x32xf32>
    %118 = tpu.concatenate %114, %115, %116, %117 in 0 : vector<1x16x32xf32>, vector<1x16x32xf32>, vector<1x16x32xf32>, vector<1x16x32xf32> -> vector<4x16x32xf32>
    %119 = arith.truncf %100 : vector<4x16x32xf32> to vector<4x16x32xbf16>
    %120 = arith.truncf %109 : vector<4x16x32xf32> to vector<4x16x32xbf16>
    "tpu.trace_start"() <{level = 10 : i32, message = "hqd,hkd->hqk"}> : () -> ()
    %cst_20 = arith.constant dense<0.000000e+00> : vector<4x16x16xf32>
    %121 = tpu.matmul %119, %120, %cst_20 {dimension_numbers = #tpu.dot_dimension_numbers<[2], [2], [1], [1], [0, 0, 0, 1, 1, 1], [0], [0]>} : vector<4x16x32xbf16>, vector<4x16x32xbf16>, vector<4x16x16xf32> -> vector<4x16x16xf32>
    "tpu.trace_stop"() : () -> ()
    %cst_21 = arith.constant dense<0xFF800000> : vector<4x16xf32>
    %122 = vector.multi_reduction <maximumf>, %121, %cst_21 [2] : vector<4x16x16xf32> to vector<4x16xf32>
    %123 = vector.shape_cast %122 : vector<4x16xf32> to vector<4x16x1xf32>
    %124 = vector.broadcast %123 : vector<4x16x1xf32> to vector<4x16x16xf32>
    %125 = arith.subf %121, %124 : vector<4x16x16xf32>
    %126 = math.exp %125 : vector<4x16x16xf32>
    %cst_22 = arith.constant dense<0.000000e+00> : vector<4x16xf32>
    %127 = vector.multi_reduction <add>, %126, %cst_22 [2] : vector<4x16x16xf32> to vector<4x16xf32>
    %128 = vector.shape_cast %127 : vector<4x16xf32> to vector<4x16x1xf32>
    %129 = tpu.reciprocal %128 {approx = true} : vector<4x16x1xf32> -> vector<4x16x1xf32>
    %130 = vector.broadcast %129 : vector<4x16x1xf32> to vector<4x16x16xf32>
    %131 = arith.mulf %126, %130 : vector<4x16x16xf32>
    %132 = arith.truncf %131 : vector<4x16x16xf32> to vector<4x16x16xbf16>
    %133 = arith.truncf %118 : vector<4x16x32xf32> to vector<4x16x32xbf16>
    "tpu.trace_start"() <{level = 10 : i32, message = "hqk,hkd->hqd"}> : () -> ()
    %cst_23 = arith.constant dense<0.000000e+00> : vector<4x16x32xf32>
    %134 = tpu.matmul %132, %133, %cst_23 {dimension_numbers = #tpu.dot_dimension_numbers<[2], [1], [1], [2], [0, 0, 0, 1, 1, 2], [0], [0]>} : vector<4x16x16xbf16>, vector<4x16x32xbf16>, vector<4x16x32xf32> -> vector<4x16x32xf32>
    "tpu.trace_stop"() : () -> ()
    %135 = vector.extract_strided_slice %134 {offsets = [0, 0, 0], sizes = [1, 16, 32], strides = [1, 1, 1]} : vector<4x16x32xf32> to vector<1x16x32xf32>
    %136 = vector.shape_cast %135 : vector<1x16x32xf32> to vector<16x32xf32>
    %137 = vector.extract_strided_slice %134 {offsets = [1, 0, 0], sizes = [1, 16, 32], strides = [1, 1, 1]} : vector<4x16x32xf32> to vector<1x16x32xf32>
    %138 = vector.shape_cast %137 : vector<1x16x32xf32> to vector<16x32xf32>
    %139 = vector.extract_strided_slice %134 {offsets = [2, 0, 0], sizes = [1, 16, 32], strides = [1, 1, 1]} : vector<4x16x32xf32> to vector<1x16x32xf32>
    %140 = vector.shape_cast %139 : vector<1x16x32xf32> to vector<16x32xf32>
    %141 = vector.extract_strided_slice %134 {offsets = [3, 0, 0], sizes = [1, 16, 32], strides = [1, 1, 1]} : vector<4x16x32xf32> to vector<1x16x32xf32>
    %142 = vector.shape_cast %141 : vector<1x16x32xf32> to vector<16x32xf32>
    %143 = tpu.concatenate %136, %138, %140, %142 in 1 : vector<16x32xf32>, vector<16x32xf32>, vector<16x32xf32>, vector<16x32xf32> -> vector<16x128xf32>
    %144 = tpu.concatenate %88, %143 in 0 : vector<16x128xf32>, vector<16x128xf32> -> vector<32x128xf32>
    %145 = arith.truncf %144 : vector<32x128xf32> to vector<32x128xbf16>
    %c0_24 = arith.constant 0 : index
    %c0_25 = arith.constant 0 : index
    %c0_26 = arith.constant 0 : index
    %146 = vector.load %arg13[%c0_24, %c0_25, %c0_26] : memref<1x128x128xbf16, #tpu.memory_space<vmem>>, vector<1x128x128xbf16>
    %147 = vector.shape_cast %146 : vector<1x128x128xbf16> to vector<128x128xbf16>
    %cst_27 = arith.constant dense<0.000000e+00> : vector<32x128xf32>
    %148 = tpu.matmul %145, %147, %cst_27 {dimension_numbers = #tpu.dot_dimension_numbers<[1], [0], [0], [1], [0, 0, 1, 1], [], []>} : vector<32x128xbf16>, vector<128x128xbf16>, vector<32x128xf32> -> vector<32x128xf32>
    %149 = arith.addf %3, %148 : vector<32x128xf32>
    %c0_28 = arith.constant 0 : index
    %c0_29 = arith.constant 0 : index
    %c0_30 = arith.constant 0 : index
    %150 = vector.load %arg14[%c0_28, %c0_29, %c0_30] : memref<1x1x128xf32, #tpu.memory_space<vmem>>, vector<1x1x128xf32>
    %151 = vector.shape_cast %150 : vector<1x1x128xf32> to vector<1x128xf32>
    %c0_31 = arith.constant 0 : index
    %c0_32 = arith.constant 0 : index
    %c0_33 = arith.constant 0 : index
    %152 = vector.load %arg15[%c0_31, %c0_32, %c0_33] : memref<1x1x128xf32, #tpu.memory_space<vmem>>, vector<1x1x128xf32>
    %153 = vector.shape_cast %152 : vector<1x1x128xf32> to vector<1x128xf32>
    %cst_34 = arith.constant dense<0.000000e+00> : vector<32xf32>
    %154 = vector.multi_reduction <add>, %149, %cst_34 [1] : vector<32x128xf32> to vector<32xf32>
    %155 = vector.shape_cast %154 : vector<32xf32> to vector<32x1xf32>
    %cst_35 = arith.constant 1.280000e+02 : f32
    %156 = vector.broadcast %cst_35 : f32 to vector<32x1xf32>
    %157 = arith.divf %155, %156 : vector<32x1xf32>
    %158 = vector.broadcast %157 : vector<32x1xf32> to vector<32x128xf32>
    %159 = arith.subf %149, %158 : vector<32x128xf32>
    %160 = arith.mulf %159, %159 : vector<32x128xf32>
    %cst_36 = arith.constant dense<0.000000e+00> : vector<32xf32>
    %161 = vector.multi_reduction <add>, %160, %cst_36 [1] : vector<32x128xf32> to vector<32xf32>
    %162 = vector.shape_cast %161 : vector<32xf32> to vector<32x1xf32>
    %cst_37 = arith.constant 1.280000e+02 : f32
    %163 = vector.broadcast %cst_37 : f32 to vector<32x1xf32>
    %164 = arith.divf %162, %163 : vector<32x1xf32>
    %165 = vector.broadcast %157 : vector<32x1xf32> to vector<32x128xf32>
    %166 = arith.subf %149, %165 : vector<32x128xf32>
    %cst_38 = arith.constant 9.99999974E-6 : f32
    %167 = vector.broadcast %cst_38 : f32 to vector<32x1xf32>
    %168 = arith.addf %164, %167 : vector<32x1xf32>
    %169 = math.rsqrt %168 : vector<32x1xf32>
    %170 = vector.broadcast %169 : vector<32x1xf32> to vector<32x128xf32>
    %171 = arith.mulf %166, %170 : vector<32x128xf32>
    %172 = vector.broadcast %151 : vector<1x128xf32> to vector<32x128xf32>
    %173 = arith.mulf %171, %172 : vector<32x128xf32>
    %174 = vector.broadcast %153 : vector<1x128xf32> to vector<32x128xf32>
    %175 = arith.addf %173, %174 : vector<32x128xf32>
    %176 = arith.truncf %175 : vector<32x128xf32> to vector<32x128xbf16>
    %c0_39 = arith.constant 0 : index
    %c0_40 = arith.constant 0 : index
    %c0_41 = arith.constant 0 : index
    %177 = vector.load %arg16[%c0_39, %c0_40, %c0_41] : memref<1x128x512xbf16, #tpu.memory_space<vmem>>, vector<1x128x512xbf16>
    %178 = vector.shape_cast %177 : vector<1x128x512xbf16> to vector<128x512xbf16>
    %cst_42 = arith.constant dense<0.000000e+00> : vector<32x512xf32>
    %179 = tpu.matmul %176, %178, %cst_42 {dimension_numbers = #tpu.dot_dimension_numbers<[1], [0], [0], [1], [0, 0, 1, 1], [], []>} : vector<32x128xbf16>, vector<128x512xbf16>, vector<32x512xf32> -> vector<32x512xf32>
    %c0_43 = arith.constant 0 : index
    %c0_44 = arith.constant 0 : index
    %c0_45 = arith.constant 0 : index
    %180 = vector.load %arg17[%c0_43, %c0_44, %c0_45] : memref<1x1x512xf32, #tpu.memory_space<vmem>>, vector<1x1x512xf32>
    %181 = vector.shape_cast %180 : vector<1x1x512xf32> to vector<1x512xf32>
    %182 = vector.broadcast %181 : vector<1x512xf32> to vector<32x512xf32>
    %183 = arith.addf %179, %182 : vector<32x512xf32>
    %cst_46 = arith.constant 5.000000e-01 : f32
    %184 = vector.broadcast %cst_46 : f32 to vector<32x512xf32>
    %185 = arith.mulf %184, %183 : vector<32x512xf32>
    %cst_47 = arith.constant 0.707106769 : f32
    %186 = vector.broadcast %cst_47 : f32 to vector<32x512xf32>
    %187 = arith.mulf %183, %186 : vector<32x512xf32>
    %188 = math.absf %187 : vector<32x512xf32>
    %cst_48 = arith.constant 0.327591091 : f32
    %189 = vector.broadcast %cst_48 : f32 to vector<32x512xf32>
    %190 = arith.mulf %189, %188 : vector<32x512xf32>
    %cst_49 = arith.constant 1.000000e+00 : f32
    %191 = vector.broadcast %cst_49 : f32 to vector<32x512xf32>
    %192 = arith.addf %191, %190 : vector<32x512xf32>
    %193 = tpu.reciprocal %192 {approx = true} : vector<32x512xf32> -> vector<32x512xf32>
    %cst_50 = arith.constant 1.06140542 : f32
    %194 = vector.broadcast %cst_50 : f32 to vector<32x512xf32>
    %195 = arith.mulf %194, %193 : vector<32x512xf32>
    %cst_51 = arith.constant -1.45315206 : f32
    %196 = vector.broadcast %cst_51 : f32 to vector<32x512xf32>
    %197 = arith.addf %195, %196 : vector<32x512xf32>
    %198 = arith.mulf %197, %193 : vector<32x512xf32>
    %cst_52 = arith.constant 1.42141378 : f32
    %199 = vector.broadcast %cst_52 : f32 to vector<32x512xf32>
    %200 = arith.addf %198, %199 : vector<32x512xf32>
    %201 = arith.mulf %200, %193 : vector<32x512xf32>
    %cst_53 = arith.constant -0.284496725 : f32
    %202 = vector.broadcast %cst_53 : f32 to vector<32x512xf32>
    %203 = arith.addf %201, %202 : vector<32x512xf32>
    %204 = arith.mulf %203, %193 : vector<32x512xf32>
    %cst_54 = arith.constant 0.254829586 : f32
    %205 = vector.broadcast %cst_54 : f32 to vector<32x512xf32>
    %206 = arith.addf %204, %205 : vector<32x512xf32>
    %207 = arith.mulf %206, %193 : vector<32x512xf32>
    %cst_55 = arith.constant 0.000000e+00 : f32
    %208 = vector.broadcast %cst_55 : f32 to vector<32x512xf32>
    %209 = arith.subf %208, %188 : vector<32x512xf32>
    %210 = arith.mulf %209, %188 : vector<32x512xf32>
    %211 = math.exp %210 : vector<32x512xf32>
    %212 = arith.mulf %207, %211 : vector<32x512xf32>
    %cst_56 = arith.constant 1.000000e+00 : f32
    %213 = vector.broadcast %cst_56 : f32 to vector<32x512xf32>
    %214 = arith.subf %213, %212 : vector<32x512xf32>
    %cst_57 = arith.constant 0.000000e+00 : f32
    %215 = vector.broadcast %cst_57 : f32 to vector<32x512xf32>
    %216 = arith.cmpf oge, %187, %215 : vector<32x512xf32>
    %cst_58 = arith.constant 0.000000e+00 : f32
    %217 = vector.broadcast %cst_58 : f32 to vector<32x512xf32>
    %218 = arith.subf %217, %214 : vector<32x512xf32>
    %219 = arith.select %216, %214, %218 : vector<32x512xi1>, vector<32x512xf32>
    %cst_59 = arith.constant 1.000000e+00 : f32
    %220 = vector.broadcast %cst_59 : f32 to vector<32x512xf32>
    %221 = arith.addf %220, %219 : vector<32x512xf32>
    %222 = arith.mulf %185, %221 : vector<32x512xf32>
    %223 = arith.truncf %222 : vector<32x512xf32> to vector<32x512xbf16>
    %c0_60 = arith.constant 0 : index
    %c0_61 = arith.constant 0 : index
    %c0_62 = arith.constant 0 : index
    %224 = vector.load %arg18[%c0_60, %c0_61, %c0_62] : memref<1x512x128xbf16, #tpu.memory_space<vmem>>, vector<1x512x128xbf16>
    %225 = vector.shape_cast %224 : vector<1x512x128xbf16> to vector<512x128xbf16>
    %cst_63 = arith.constant dense<0.000000e+00> : vector<32x128xf32>
    %226 = tpu.matmul %223, %225, %cst_63 {dimension_numbers = #tpu.dot_dimension_numbers<[1], [0], [0], [1], [0, 0, 1, 1], [], []>} : vector<32x512xbf16>, vector<512x128xbf16>, vector<32x128xf32> -> vector<32x128xf32>
    %c0_64 = arith.constant 0 : index
    %c0_65 = arith.constant 0 : index
    %c0_66 = arith.constant 0 : index
    %227 = vector.load %arg19[%c0_64, %c0_65, %c0_66] : memref<1x1x128xf32, #tpu.memory_space<vmem>>, vector<1x1x128xf32>
    %228 = vector.shape_cast %227 : vector<1x1x128xf32> to vector<1x128xf32>
    %229 = vector.broadcast %228 : vector<1x128xf32> to vector<32x128xf32>
    %230 = arith.addf %226, %229 : vector<32x128xf32>
    %cst_67 = arith.constant 5.000000e-01 : f32
    %231 = vector.broadcast %cst_67 : f32 to vector<32x128xf32>
    %232 = arith.mulf %231, %230 : vector<32x128xf32>
    %cst_68 = arith.constant 0.707106769 : f32
    %233 = vector.broadcast %cst_68 : f32 to vector<32x128xf32>
    %234 = arith.mulf %230, %233 : vector<32x128xf32>
    %235 = math.absf %234 : vector<32x128xf32>
    %cst_69 = arith.constant 0.327591091 : f32
    %236 = vector.broadcast %cst_69 : f32 to vector<32x128xf32>
    %237 = arith.mulf %236, %235 : vector<32x128xf32>
    %cst_70 = arith.constant 1.000000e+00 : f32
    %238 = vector.broadcast %cst_70 : f32 to vector<32x128xf32>
    %239 = arith.addf %238, %237 : vector<32x128xf32>
    %240 = tpu.reciprocal %239 {approx = true} : vector<32x128xf32> -> vector<32x128xf32>
    %cst_71 = arith.constant 1.06140542 : f32
    %241 = vector.broadcast %cst_71 : f32 to vector<32x128xf32>
    %242 = arith.mulf %241, %240 : vector<32x128xf32>
    %cst_72 = arith.constant -1.45315206 : f32
    %243 = vector.broadcast %cst_72 : f32 to vector<32x128xf32>
    %244 = arith.addf %242, %243 : vector<32x128xf32>
    %245 = arith.mulf %244, %240 : vector<32x128xf32>
    %cst_73 = arith.constant 1.42141378 : f32
    %246 = vector.broadcast %cst_73 : f32 to vector<32x128xf32>
    %247 = arith.addf %245, %246 : vector<32x128xf32>
    %248 = arith.mulf %247, %240 : vector<32x128xf32>
    %cst_74 = arith.constant -0.284496725 : f32
    %249 = vector.broadcast %cst_74 : f32 to vector<32x128xf32>
    %250 = arith.addf %248, %249 : vector<32x128xf32>
    %251 = arith.mulf %250, %240 : vector<32x128xf32>
    %cst_75 = arith.constant 0.254829586 : f32
    %252 = vector.broadcast %cst_75 : f32 to vector<32x128xf32>
    %253 = arith.addf %251, %252 : vector<32x128xf32>
    %254 = arith.mulf %253, %240 : vector<32x128xf32>
    %cst_76 = arith.constant 0.000000e+00 : f32
    %255 = vector.broadcast %cst_76 : f32 to vector<32x128xf32>
    %256 = arith.subf %255, %235 : vector<32x128xf32>
    %257 = arith.mulf %256, %235 : vector<32x128xf32>
    %258 = math.exp %257 : vector<32x128xf32>
    %259 = arith.mulf %254, %258 : vector<32x128xf32>
    %cst_77 = arith.constant 1.000000e+00 : f32
    %260 = vector.broadcast %cst_77 : f32 to vector<32x128xf32>
    %261 = arith.subf %260, %259 : vector<32x128xf32>
    %cst_78 = arith.constant 0.000000e+00 : f32
    %262 = vector.broadcast %cst_78 : f32 to vector<32x128xf32>
    %263 = arith.cmpf oge, %234, %262 : vector<32x128xf32>
    %cst_79 = arith.constant 0.000000e+00 : f32
    %264 = vector.broadcast %cst_79 : f32 to vector<32x128xf32>
    %265 = arith.subf %264, %261 : vector<32x128xf32>
    %266 = arith.select %263, %261, %265 : vector<32x128xi1>, vector<32x128xf32>
    %cst_80 = arith.constant 1.000000e+00 : f32
    %267 = vector.broadcast %cst_80 : f32 to vector<32x128xf32>
    %268 = arith.addf %267, %266 : vector<32x128xf32>
    %269 = arith.mulf %232, %268 : vector<32x128xf32>
    %270 = arith.addf %149, %269 : vector<32x128xf32>
    %c0_81 = arith.constant 0 : index
    %c0_82 = arith.constant 0 : index
    %271 = vector.load %arg25[%c0_81, %c0_82] : memref<32x128xf32, #tpu.memory_space<vmem>>, vector<32x128xf32>
    tpu.vector_store %arg25[%c0_81, %c0_82], %270 {strides = array<i32>} : memref<32x128xf32, #tpu.memory_space<vmem>>, vector<32x128xf32>,
    %c1_i32 = arith.constant 1 : i32
    %272 = arith.cmpi eq, %arg1, %c1_i32 : i32
    %273 = arith.extui %272 : i1 to i32
    %c0_i32_83 = arith.constant 0 : i32
    %274 = arith.cmpi ne, %273, %c0_i32_83 : i32
    scf.if %274 {
      %c0_84 = arith.constant 0 : index
      %c0_85 = arith.constant 0 : index
      %275 = vector.load %arg20[%c0_84, %c0_85] : memref<1x128xf32, #tpu.memory_space<vmem>>, vector<1x128xf32>
      %c0_86 = arith.constant 0 : index
      %c0_87 = arith.constant 0 : index
      %276 = vector.load %arg21[%c0_86, %c0_87] : memref<1x128xf32, #tpu.memory_space<vmem>>, vector<1x128xf32>
      %cst_88 = arith.constant dense<0.000000e+00> : vector<32xf32>
      %277 = vector.multi_reduction <add>, %270, %cst_88 [1] : vector<32x128xf32> to vector<32xf32>
      %278 = vector.shape_cast %277 : vector<32xf32> to vector<32x1xf32>
      %cst_89 = arith.constant 1.280000e+02 : f32
      %279 = vector.broadcast %cst_89 : f32 to vector<32x1xf32>
      %280 = arith.divf %278, %279 : vector<32x1xf32>
      %281 = vector.broadcast %280 : vector<32x1xf32> to vector<32x128xf32>
      %282 = arith.subf %270, %281 : vector<32x128xf32>
      %283 = arith.mulf %282, %282 : vector<32x128xf32>
      %cst_90 = arith.constant dense<0.000000e+00> : vector<32xf32>
      %284 = vector.multi_reduction <add>, %283, %cst_90 [1] : vector<32x128xf32> to vector<32xf32>
      %285 = vector.shape_cast %284 : vector<32xf32> to vector<32x1xf32>
      %cst_91 = arith.constant 1.280000e+02 : f32
      %286 = vector.broadcast %cst_91 : f32 to vector<32x1xf32>
      %287 = arith.divf %285, %286 : vector<32x1xf32>
      %288 = vector.broadcast %280 : vector<32x1xf32> to vector<32x128xf32>
      %289 = arith.subf %270, %288 : vector<32x128xf32>
      %cst_92 = arith.constant 9.99999974E-6 : f32
      %290 = vector.broadcast %cst_92 : f32 to vector<32x1xf32>
      %291 = arith.addf %287, %290 : vector<32x1xf32>
      %292 = math.rsqrt %291 : vector<32x1xf32>
      %293 = vector.broadcast %292 : vector<32x1xf32> to vector<32x128xf32>
      %294 = arith.mulf %289, %293 : vector<32x128xf32>
      %295 = vector.broadcast %275 : vector<1x128xf32> to vector<32x128xf32>
      %296 = arith.mulf %294, %295 : vector<32x128xf32>
      %297 = vector.broadcast %276 : vector<1x128xf32> to vector<32x128xf32>
      %298 = arith.addf %296, %297 : vector<32x128xf32>
      %299 = vector.shape_cast %298 : vector<32x128xf32> to vector<2x16x128xf32>
      %cst_93 = arith.constant dense<0.000000e+00> : vector<2x128xf32>
      %300 = vector.multi_reduction <add>, %299, %cst_93 [1] : vector<2x16x128xf32> to vector<2x128xf32>
      %cst_94 = arith.constant 1.600000e+01 : f32
      %301 = vector.broadcast %cst_94 : f32 to vector<2x128xf32>
      %302 = arith.divf %300, %301 : vector<2x128xf32>
      %303 = arith.truncf %302 : vector<2x128xf32> to vector<2x128xbf16>
      %c0_95 = arith.constant 0 : index
      %c0_96 = arith.constant 0 : index
      %304 = vector.load %arg22[%c0_95, %c0_96] : memref<128x128xbf16, #tpu.memory_space<vmem>>, vector<128x128xbf16>
      %cst_97 = arith.constant dense<0.000000e+00> : vector<2x128xf32>
      %305 = tpu.matmul %303, %304, %cst_97 {dimension_numbers = #tpu.dot_dimension_numbers<[1], [0], [0], [1], [0, 0, 1, 1], [], []>} : vector<2x128xbf16>, vector<128x128xbf16>, vector<2x128xf32> -> vector<2x128xf32>
      %c0_98 = arith.constant 0 : index
      %c0_99 = arith.constant 0 : index
      %306 = vector.load %arg23[%c0_98, %c0_99] : memref<1x128xf32, #tpu.memory_space<vmem>>, vector<1x128xf32>
      %307 = vector.broadcast %306 : vector<1x128xf32> to vector<2x128xf32>
      %308 = arith.addf %305, %307 : vector<2x128xf32>
      %c0_100 = arith.constant 0 : index
      %c0_101 = arith.constant 0 : index
      %c0_102 = arith.constant 0 : index
      %309 = vector.load %arg24[%c0_100, %c0_101, %c0_102] : memref<1x2x128xf32, #tpu.memory_space<vmem>>, vector<1x2x128xf32>
      %310 = vector.shape_cast %309 : vector<1x2x128xf32> to vector<2x128xf32>
      %311 = vector.shape_cast %308 : vector<2x128xf32> to vector<1x2x128xf32>
      tpu.vector_store %arg24[%c0_100, %c0_101, %c0_102], %311 {strides = array<i32>} : memref<1x2x128xf32, #tpu.memory_space<vmem>>, vector<1x2x128xf32>,
    } else {
    }
    return
  }
  func.func @transform_0(%arg0: i32, %arg1: i32) -> (i32, i32, i32) {
    %c0_i32 = arith.constant 0 : i32
    %c0_i32_0 = arith.constant 0 : i32
    %c0_i32_1 = arith.constant 0 : i32
    return %arg0, %c0_i32, %c0_i32_0 : i32, i32, i32
  }
  func.func @transform_1(%arg0: i32, %arg1: i32) -> (i32, i32) {
    %c0_i32 = arith.constant 0 : i32
    %c0_i32_0 = arith.constant 0 : i32
    %c0_i32_1 = arith.constant 0 : i32
    return %c0_i32, %c0_i32_0 : i32, i32
  }
  func.func @transform_2(%arg0: i32, %arg1: i32) -> (i32, i32) {
    %c0_i32 = arith.constant 0 : i32
    %c0_i32_0 = arith.constant 0 : i32
    %c0_i32_1 = arith.constant 0 : i32
    return %c0_i32, %c0_i32_0 : i32, i32
  }
  func.func @transform_3(%arg0: i32, %arg1: i32) -> (i32, i32) {
    %c0_i32 = arith.constant 0 : i32
    %c0_i32_0 = arith.constant 0 : i32
    %c0_i32_1 = arith.constant 0 : i32
    return %c0_i32, %c0_i32_0 : i32, i32
  }
  func.func @transform_4(%arg0: i32, %arg1: i32) -> (i32, i32) {
    %c0_i32 = arith.constant 0 : i32
    %c0_i32_0 = arith.constant 0 : i32
    %c0_i32_1 = arith.constant 0 : i32
    return %c0_i32, %c0_i32_0 : i32, i32
  }
  func.func @transform_5(%arg0: i32, %arg1: i32) -> (i32, i32) {
    %c0_i32 = arith.constant 0 : i32
    %c0_i32_0 = arith.constant 0 : i32
    %c0_i32_1 = arith.constant 0 : i32
    return %c0_i32, %c0_i32_0 : i32, i32
  }
  func.func @transform_6(%arg0: i32, %arg1: i32) -> (i32, i32) {
    %c0_i32 = arith.constant 0 : i32
    %c0_i32_0 = arith.constant 0 : i32
    %c0_i32_1 = arith.constant 0 : i32
    return %c0_i32, %c0_i32_0 : i32, i32
  }
  func.func @transform_7(%arg0: i32, %arg1: i32) -> (i32, i32) {
    %c0_i32 = arith.constant 0 : i32
    %c0_i32_0 = arith.constant 0 : i32
    %c0_i32_1 = arith.constant 0 : i32
    return %c0_i32, %c0_i32_0 : i32, i32
  }
  func.func @transform_8(%arg0: i32, %arg1: i32) -> (i32, i32, i32) {
    %c0_i32 = arith.constant 0 : i32
    %c0_i32_0 = arith.constant 0 : i32
    %c0_i32_1 = arith.constant 0 : i32
    return %arg1, %c0_i32, %c0_i32_0 : i32, i32, i32
  }
  func.func @transform_9(%arg0: i32, %arg1: i32) -> (i32, i32, i32) {
    %c0_i32 = arith.constant 0 : i32
    %c0_i32_0 = arith.constant 0 : i32
    %c0_i32_1 = arith.constant 0 : i32
    return %arg1, %c0_i32, %c0_i32_0 : i32, i32, i32
  }
  func.func @transform_10(%arg0: i32, %arg1: i32) -> (i32, i32, i32) {
    %c0_i32 = arith.constant 0 : i32
    %c0_i32_0 = arith.constant 0 : i32
    %c0_i32_1 = arith.constant 0 : i32
    return %arg1, %c0_i32, %c0_i32_0 : i32, i32, i32
  }
  func.func @transform_11(%arg0: i32, %arg1: i32) -> (i32, i32, i32) {
    %c0_i32 = arith.constant 0 : i32
    %c0_i32_0 = arith.constant 0 : i32
    %c0_i32_1 = arith.constant 0 : i32
    return %arg1, %c0_i32, %c0_i32_0 : i32, i32, i32
  }
  func.func @transform_12(%arg0: i32, %arg1: i32) -> (i32, i32, i32) {
    %c0_i32 = arith.constant 0 : i32
    %c0_i32_0 = arith.constant 0 : i32
    %c0_i32_1 = arith.constant 0 : i32
    return %arg1, %c0_i32, %c0_i32_0 : i32, i32, i32
  }
  func.func @transform_13(%arg0: i32, %arg1: i32) -> (i32, i32, i32) {
    %c0_i32 = arith.constant 0 : i32
    %c0_i32_0 = arith.constant 0 : i32
    %c0_i32_1 = arith.constant 0 : i32
    return %arg1, %c0_i32, %c0_i32_0 : i32, i32, i32
  }
  func.func @transform_14(%arg0: i32, %arg1: i32) -> (i32, i32, i32) {
    %c0_i32 = arith.constant 0 : i32
    %c0_i32_0 = arith.constant 0 : i32
    %c0_i32_1 = arith.constant 0 : i32
    return %arg1, %c0_i32, %c0_i32_0 : i32, i32, i32
  }
  func.func @transform_15(%arg0: i32, %arg1: i32) -> (i32, i32, i32) {
    %c0_i32 = arith.constant 0 : i32
    %c0_i32_0 = arith.constant 0 : i32
    %c0_i32_1 = arith.constant 0 : i32
    return %arg1, %c0_i32, %c0_i32_0 : i32, i32, i32
  }
  func.func @transform_16(%arg0: i32, %arg1: i32) -> (i32, i32, i32) {
    %c0_i32 = arith.constant 0 : i32
    %c0_i32_0 = arith.constant 0 : i32
    %c0_i32_1 = arith.constant 0 : i32
    return %arg1, %c0_i32, %c0_i32_0 : i32, i32, i32
  }
  func.func @transform_17(%arg0: i32, %arg1: i32) -> (i32, i32, i32) {
    %c0_i32 = arith.constant 0 : i32
    %c0_i32_0 = arith.constant 0 : i32
    %c0_i32_1 = arith.constant 0 : i32
    return %arg1, %c0_i32, %c0_i32_0 : i32, i32, i32
  }
  func.func @transform_18(%arg0: i32, %arg1: i32) -> (i32, i32) {
    %c0_i32 = arith.constant 0 : i32
    %c0_i32_0 = arith.constant 0 : i32
    %c0_i32_1 = arith.constant 0 : i32
    return %c0_i32, %c0_i32_0 : i32, i32
  }
  func.func @transform_19(%arg0: i32, %arg1: i32) -> (i32, i32) {
    %c0_i32 = arith.constant 0 : i32
    %c0_i32_0 = arith.constant 0 : i32
    %c0_i32_1 = arith.constant 0 : i32
    return %c0_i32, %c0_i32_0 : i32, i32
  }
  func.func @transform_20(%arg0: i32, %arg1: i32) -> (i32, i32) {
    %c0_i32 = arith.constant 0 : i32
    %c0_i32_0 = arith.constant 0 : i32
    %c0_i32_1 = arith.constant 0 : i32
    return %c0_i32, %c0_i32_0 : i32, i32
  }
  func.func @transform_21(%arg0: i32, %arg1: i32) -> (i32, i32) {
    %c0_i32 = arith.constant 0 : i32
    %c0_i32_0 = arith.constant 0 : i32
    %c0_i32_1 = arith.constant 0 : i32
    return %c0_i32, %c0_i32_0 : i32, i32
  }
  func.func @transform_22(%arg0: i32, %arg1: i32) -> (i32, i32, i32) {
    %c0_i32 = arith.constant 0 : i32
    %c0_i32_0 = arith.constant 0 : i32
    %c0_i32_1 = arith.constant 0 : i32
    return %arg0, %c0_i32, %c0_i32_0 : i32, i32, i32
  }
}

</mosaic_0001>

<bundles_post_ra>
// kernel: tpu_custom_call.1
= control target key start
LH: loop header
LB: loop body
LE: loop exit
PB: predicated region body
PF: predicated region fallthrough
CT: control target
= control target key end

     0   :  { %s8608_s0 = inlined_call_operand.hbm [shape: f32[4,16,256], index: 0, kind: input, shape index: {}]   ;;  %s8609_s1 = inlined_call_operand.hbm [shape: f32[16,128], index: 1, kind: input, shape index: {}]   ;;  %s8610_s2 = inlined_call_operand.vmem [shape: f32[1,256], index: 2, kind: input, shape index: {}]   ;;  %s8611_s3 = inlined_call_operand.hbm [shape: f32[1,256], index: 3, kind: input, shape index: {}]   ;;  %s8612_s4 = inlined_call_operand.hbm [shape: bf16[256,128], index: 4, kind: input, shape index: {}]   ;;  %s8613_s5 = inlined_call_operand.vmem [shape: f32[1,128], index: 5, kind: input, shape index: {}]   ;;  %s8614_s6 = inlined_call_operand.hbm [shape: f32[1,128], index: 6, kind: input, shape index: {}]   ;;  %s8615_s7 = inlined_call_operand.hbm [shape: f32[1,128], index: 7, kind: input, shape index: {}]   ;;  %s8616_s8 = inlined_call_operand.hbm [shape: f32[2,1,128], index: 8, kind: input, shape index: {}]   ;;  %s8617_s9 = inlined_call_operand.hbm [shape: f32[2,1,128], index: 9, kind: input, shape index: {}]   ;;  %s8618_s10 = inlined_call_operand.hbm [shape: bf16[2,128,384], index: 10, kind: input, shape index: {}]   ;;  %s8619_s11 = inlined_call_operand.hbm [shape: bf16[2,128,128], index: 11, kind: input, shape index: {}]   ;;  %s8620_s12 = inlined_call_operand.hbm [shape: f32[2,1,128], index: 12, kind: input, shape index: {}]   ;;  %s8621_s13 = inlined_call_operand.hbm [shape: f32[2,1,128], index: 13, kind: input, shape index: {}]   ;;  %s8622_s14 = inlined_call_operand.hbm [shape: bf16[2,128,512], index: 14, kind: input, shape index: {}]   ;;  %s8623_s15 = inlined_call_operand.vmem [shape: f32[2,1,512], index: 15, kind: input, shape index: {}]   ;;  %s8624_s16 = inlined_call_operand.hbm [shape: bf16[2,512,128], index: 16, kind: input, shape index: {}]   ;;  %s8625_s17 = inlined_call_operand.hbm [shape: f32[2,1,128], index: 17, kind: input, shape index: {}]   ;;  %s8626_s18 = inlined_call_operand.hbm [shape: f32[1,128], index: 18, kind: input, shape index: {}]   ;;  %s8627_s19 = inlined_call_operand.hbm [shape: f32[1,128], index: 19, kind: input, shape index: {}]   ;;  %s8628_s20 = inlined_call_operand.vmem [shape: bf16[128,128], index: 20, kind: input, shape index: {}]   ;;  %s8629_s21 = inlined_call_operand.vmem [shape: f32[1,128], index: 21, kind: input, shape index: {}]   ;;  %s8630_s22 = inlined_call_operand.hbm [shape: f32[2,2,128], index: 22, kind: output, shape index: {}]  }
   0x1   :  { %8690 = sst [smem:[#allocation57_spill]] %s8608_s0 }
   0x2   :  { %8691 = sst [smem:[#allocation58_spill]] %s8609_s1 }
   0x3   :  { %8692 = sst [smem:[#allocation59_spill]] %s8610_s2 }
   0x4   :  { %8693 = sst [smem:[#allocation60_spill]] %s8611_s3 }
   0x5   :  { %8694 = sst [smem:[#allocation61_spill]] %s8612_s4 }
   0x6   :  { %8695 = sst [smem:[#allocation62_spill]] %s8613_s5 }
   0x7   :  { %8696 = sst [smem:[#allocation63_spill]] %s8614_s6 }
   0x8   :  { %8697 = sst [smem:[#allocation64_spill]] %s8616_s8 }
   0x9   :  { %8698 = sst [smem:[#allocation65_spill]] %s8617_s9 }
   0xa   :  { %8699 = sst [smem:[#allocation66_spill]] %s8618_s10 }
   0xb   :  { %8700 = sst [smem:[#allocation67_spill]] %s8619_s11 }
   0xc   :  { %8701 = sst [smem:[#allocation68_spill]] %s8620_s12 }
   0xd   :  { %8702 = sst [smem:[#allocation69_spill]] %s8621_s13 }
   0xe   :  { %8703 = sst [smem:[#allocation70_spill]] %s8622_s14 }
   0xf   :  { %8704 = sst [smem:[#allocation71_spill]] %s8623_s15 }
  0x10   :  { %8705 = sst [smem:[#allocation72_spill]] %s8625_s17 }
  0x11   :  { %8706 = sst [smem:[#allocation73_spill]] %s8627_s19 }
  0x12   :  { %8707 = sst [smem:[#allocation74_spill]] %s8628_s20 }
  0x13   :  { %8708 = sst [smem:[#allocation75_spill]] %s8629_s21 }
  0x14   :  { %8709 = sst [smem:[#allocation76_spill]] %s8630_s22 }
  0x15   :  { %27 = vsyncpa [#allocation4], 0 }
  0x16   :  { %29 = vsyncpa [#allocation4 + $0x1], 0 }
  0x17   :  { %30 = vsyncpa [#allocation7], 0 }
  0x18   :  { %31 = vsyncpa [#allocation10], 0 }
  0x19   :  { %32 = vsyncpa [#allocation13], 0 }
  0x1a   :  { %33 = vsyncpa [#allocation5], 0 }
  0x1b   :  { %35 = vsyncpa [#allocation5 + $0x1], 0  ;;  %s6924_s3 = smov 0   ;;  %s6926_s28 = smov 0  }
  0x1c   :  { %s6928_s29 = smov 0   ;;  %s6930_s30 = smov 0  }
  0x1d   :  { %s6932_s4 = smov 0   ;;  %s6934_s0 = smov 0  }
  0x1e   :  { %s6936_s23 = smov 0   ;;  %s6938_s1 = smov 0  }
  0x1f   :  { %s6940_s5 = smov 0   ;;  %s6942_s24 = smov 0  }
  0x20   :  { %s6944_s6 = smov 0  }
  0x21 LB: > { %8710 = sst [smem:[#allocation34_spill]] %s6737_s28  ;;  %s6980_s25 = sadd.s32 4294967295, %s6773_s6   ;;  %s6773_s6 = sphi %s6944_s6, %s41_s6   ;;  %s6769_s24 = sphi %s6942_s24, %s8830_s24   ;;  %s6765_s5 = sphi %s6940_s5, %s8829_s5   ;;  %s6761_s1 = sphi %s6938_s1, %s8825_s1   ;;  %s6757_s23 = sphi %s6936_s23, %s8828_s23   ;;  %s6753_s0 = sphi %s6934_s0, %s8824_s0   ;;  %s6749_s4 = sphi %s6932_s4, %s8823_s4   ;;  %s6745_s30 = sphi %s6930_s30, %s8822_s30   ;;  %s6741_s29 = sphi %s6928_s29, %s8821_s29   ;;  %s6737_s28 = sphi %s6926_s28, %s8820_s28   ;;  %s6733_s3 = sphi %s6924_s3, %s8819_s3  }
  0x22   : > { %8711 = sst [smem:[#allocation35_spill]] %s6741_s29  ;;  %s4924_s26 = sadd.s32 4294967294, %s6773_s6  }
  0x23   : > { %8712 = sst [smem:[#allocation36_spill]] %s6745_s30  ;;  %s50_s2 = sadd.s32 1, %s6765_s5 }
  0x24   : > { %8713 = sst [smem:[#allocation37_spill]] %s6749_s4  ;;  %s53_s27 = sadd.s32 1, %s6769_s24 }
  0x25   : > { %8714 = sst [smem:[#allocation38_spill]] %s6753_s0  ;;  %p51_p0 = scmp.ge.s32.totalorder %s50_s2, 2 }
  0x26   : > { %8715 = sst [smem:[#allocation39_spill]] %s6757_s23  ;;  %s60_s22 = sadd.s32 1, %s6753_s0 }
  0x27   : > { %8716 = sst [smem:[#allocation40_spill]] %s6761_s1  ;;  %p67_p1 = scmp.ne.s32.totalorder %s6753_s0, %s6749_s4 }
  0x28   : > { %8717 = sst [smem:[#allocation41_spill]] %s6769_s24  ;;  %p68_p2 = scmp.eq.s32.totalorder %s6773_s6, 0 }
  0x29   : > { %8718 = sst [smem:[#allocation42_spill]] %s6773_s6  ;;  %s8832_s2 = smov (%p51_p0, %s50_s2), 0 }
  0x2a   : > { %8719 = sst [smem:[#allocation43_spill]] %s8832_s2  ;;  %s8834_s27 = smov (!%p51_p0, %s53_s27), %s6769_s24 }
  0x2b   : > { %p6997_p3 = por %p68_p2, %p67_p1  ;;  %p8642_p4 = scmp.ne.s32.totalorder %s6749_s4, %s6745_s30 }
  0x2c   : > { %p55_p5 = scmp.ge.s32.totalorder %s8834_s27, 2  ;;  %p8643_p6 = scmp.eq.s32.totalorder %s6980_s25, 0 }
  0x2d   : > { %s230_s21 = ssub.s32 %s6765_s5, %s8832_s2  ;;  %s233_s20 = sadd.s32 1, %s6741_s29 }
  0x2e   : > { %s8836_s27 = smov (%p55_p5, %s8834_s27), 0  ;;  %p7014_p7 = por %p8643_p6, %p8642_p4 }
  0x2f   : > { %8721 = sst [smem:[#allocation44_spill]] %s8836_s27  ;;  %p231_p8 = scmp.eq.s32.totalorder %s230_s21, 0 }
  0x30   : > { %s8722_s15 = scalar_select %p7014_p7, 1, 0 }
  0x31   : > { %s57_s23 = ssub.s32 %s6769_s24, %s8836_s27  ;;  %p240_p9 = scmp.ne.s32.totalorder %s6741_s29, %s6737_s28 }
  0x32   : > { %8723 = sst [smem:[#allocation45_spill]] %s8722_s15  ;;  %p58_p10 = scmp.eq.s32.totalorder %s57_s23, 0 }
  0x33   : > { %p246_p11 = scmp.ne.s32.totalorder %s6737_s28, %s6733_s3  ;;  %p7032_p12 = por %p240_p9, %p68_p2 }
  0x34   : > { %s7025_s2 = scalar_select %p231_p8, %s6741_s29, %s233_s20  }
  0x35   : > { %s7028_s17 = scalar_select %p58_p10, %s6753_s0, %s60_s22  }
  0x36   : > { %8724 = sst [smem:[#allocation46_spill]] %s7025_s2  ;;  %p7038_p13 = por %p246_p11, %p8643_p6 }
  0x37   : > { %8725 = sst [smem:[#allocation47_spill]] %s7028_s17  ;;  %p588_p0 = scmp.eq.s32.totalorder %s6980_s25, 3 }
  0x38   : > { %s8727_s21 = scalar_select %p7038_p13, 1, 0 }
  0x39   : > { %p594_p5 = scmp.eq.s32.totalorder %s4924_s26, 3  ;;  %p4925_p4 = scmp.ge.s32.totalorder %s6773_s6, 1 }
  0x3a   : > { %8728 = sst [smem:[#allocation48_spill]] %s8727_s21  ;;  %p601_p8 = scmp.lt.s32.totalorder %s6773_s6, 5 }
  0x3b   : > { %p7048_p10 = por %p588_p0, %p67_p1  ;;  %p8731_p2 = scmp.ne.s32.totalorder %s6749_s4, %s6745_s30 }
  0x3c   : > { %p7059_p11 = pnand %p4925_p4, %p601_p8  ;;  %p8657_p6 = scmp.lt.s32.totalorder %s6773_s6, 4 }
  0x3d   : > { %s8729_s20 = scalar_select %p7048_p10, 1, 0 }
  0x3e   : > { %p7055_p9 = por %p594_p5, %p8731_p2  ;;  %p5495_p13 = pneg %p7059_p11 }
  0x3f   : > { %8730 = sst [smem:[#allocation49_spill]] %s8729_s20  ;;  %s707_s23 = sand.u32 1, %s6773_s6  }
  0x40   : > { %s8732_s22 = scalar_select %p7055_p9, 1, 0 }
  0x41   : > { %s8734_s3 = scalar_select %p7059_p11, 1, 0 }
  0x42   : > { %8733 = sst [smem:[#allocation50_spill]] %s8732_s22  ;;  %s709_s26 = sand.u32 1, %s6753_s0  }
  0x43   : > { %p8735_p7 = scmp.eq.s32.totalorder %s6980_s25, 0  ;;  %s4934_s17 = sshll.u32 %s709_s26, 6 }
  0x44   : > { %s5121_s2 = sshll.u32 %s6769_s24, 10  ;;  %s8737_s22 = sld [smem:[#allocation57_spill]] }
  0x45   : > { %p7070_p1 = pnand %p5495_p13, %p8735_p7  ;;  %s711_s28 = scalar_lea.vmem [#allocation3], %s4934_s17 }
  0x46   : > { %s719_s15 = sshll.u32 %s711_s28, 4  ;;  %p7084_p4 = pnand %p8657_p6, %p6997_p3  ;;  %s7088_s15 = int_to_ptr.vmem [resolvable:$true] %s719_s15 }
  0x47   : > { %s8736_s27 = scalar_select %p7070_p1, 1, 0 }
  0x48   : > { %s7090_s26 = scalar_lea.sflag [#allocation4], %s707_s23  ;;  %p6133_p13 = pneg %p7084_p4 }
  0x4a   : > { %s7078_s21 = scalar_lea.hbm %s8737_s22, %s5121_s2  ;;  %s6136_s1 = scalar_lea.hbm %s8737_s22, 2048 }
  0x4b   : > { %s6131_s30 = scalar_lea.hbm %s7078_s21, 1024  ;;  %p6137_p3 = scmp.lt.u32.totalorder %s7078_s21, %s8737_s22 }
  0x4c   : > { %p6132_p7 = scmp.ne.s32.totalorder %s7078_s21, %s6131_s30  ;;  %p6138_p8 = scmp.lt.u32.totalorder %s6136_s1, %s6131_s30 }
  0x4d   : > { %p6140_p6 = scmp.lt.u32.totalorder %s6131_s30, %s7078_s21 }
  0x4e   : > { %p6134_p0 = pnand %p6133_p13, %p6132_p7  ;;  %p6139_p2 = por %p6138_p8, %p6137_p3 }
  0x50   : > { %p6135_p5 = pneg %p6134_p0  ;;  %p6141_p9 = por %p6140_p6, %p6139_p2 }
  0x52   : > { %p6142_p10 = pnand %p6141_p9, %p6135_p5 }
  0x54   : > { %6145 = shalt.err (!%p6142_p10)
}
  0x55   : > { %s6146_s23 = scalar_lea.vmem %s7088_s15, 1024  ;;  %s6775_s17 = smov [#allocation3]  }
  0x56   : > { %p6147_p7 = scmp.ne.s32.totalorder %s7088_s15, %s6146_s23  ;;  %s6151_s28 = sshll.u32 %s6775_s17, 4  ;;  %s6152_s28 = int_to_ptr.vmem [resolvable:$false] %s6151_s28 }
  0x57   : > { %s6153_s2 = scalar_lea.vmem %s6152_s28, 2048  ;;  %p6154_p1 = scmp.lt.s32.totalorder %s7088_s15, %s6152_s28 }
  0x58   : > { %p6149_p0 = pnand %p6147_p7, %p6133_p13  ;;  %p6155_p3 = scmp.lt.s32.totalorder %s6153_s2, %s6146_s23 }
  0x5a   : > { %p6150_p11 = pneg %p6149_p0  ;;  %p6156_p8 = por %p6155_p3, %p6154_p1 }
  0x5c   : > { %p6157_p6 = pnand %p6156_p8, %p6150_p11 }
  0x5e   : > { %6160 = shalt.err (!%p6157_p6)
}
  0x5f   : > { %s8661_s30 = smov 256   ;;  %s8662_s1 = smov 16  }
  0x60   : > { %5520 = dma.hbm_to_vmem [thread:$0]  (!%p7084_p4), %s7078_s21, 1024, %s7088_s15, %s7090_s26, %s8661_s30, %s8661_s30, %s8662_s1  }
  0x61   : > { %p8739_p10 = scmp.lt.s32.totalorder %s6773_s6, 4  ;;  %s7130_s23 = sand.u32 1, %s6741_s29  }
  0x62   : > { %s7133_s17 = sshll.u32 %s6765_s5, 4  ;;  %s8741_s8 = sld [smem:[#allocation64_spill]] }
  0x63   : > { %p7125_p9 = pnand %p8739_p10, %p7032_p12  ;;  %s732_s15 = scalar_lea.vmem [#allocation14], %s7130_s23 }
  0x64   : > { %s739_s19 = sshll.u32 %s732_s15, 4  ;;  %s8742_s9 = sld [smem:[#allocation65_spill]]  ;;  %s7142_s19 = int_to_ptr.vmem [resolvable:$true] %s739_s19 }
  0x65   : > { %s8740_s20 = scalar_select %p7125_p9, 1, 0 }
  0x66   : > { %p7154_p11 = pneg %p7125_p9 }
  0x68   : > { %s7139_s0 = scalar_lea.hbm %s8741_s8, %s7133_s17  ;;  %s6166_s24 = scalar_lea.hbm %s8741_s8, 32 }
  0x69   : > { %s6161_s22 = scalar_lea.hbm %s7139_s0, 16  ;;  %p6167_p13 = scmp.lt.u32.totalorder %s7139_s0, %s8741_s8 }
  0x6a   : > { %s7148_s1 = scalar_lea.hbm %s8742_s9, %s7133_s17  ;;  %p6162_p12 = scmp.ne.s32.totalorder %s7139_s0, %s6161_s22 }
  0x6b   : > { %s8743_s28 = scalar_select %p7154_p11, 1, 0 }
  0x6c   : > { %p6164_p1 = pnand %p7154_p11, %p6162_p12  ;;  %p6168_p5 = scmp.lt.u32.totalorder %s6166_s24, %s6161_s22 }
  0x6d   : > { %p6170_p7 = scmp.lt.u32.totalorder %s6161_s22, %s7139_s0 }
  0x6e   : > { %p6165_p4 = pneg %p6164_p1  ;;  %p6169_p2 = por %p6168_p5, %p6167_p13 }
  0x70   : > { %p6171_p0 = por %p6170_p7, %p6169_p2 }
  0x72   : > { %p6172_p3 = pnand %p6171_p0, %p6165_p4 }
  0x74   : > { %6175 = shalt.err (!%p6172_p3)
}
  0x75   : > { %s6176_s30 = scalar_lea.vmem %s7142_s19, 16  ;;  %s6778_s21 = smov [#allocation14]  }
  0x76   : > { %p6177_p8 = scmp.ne.s32.totalorder %s7142_s19, %s6176_s30  ;;  %s6181_s2 = sshll.u32 %s6778_s21, 4  ;;  %s6182_s2 = int_to_ptr.vmem [resolvable:$false] %s6181_s2 }
  0x77   : > { %s6183_s29 = scalar_lea.vmem %s6182_s2, 32  ;;  %p6184_p12 = scmp.lt.s32.totalorder %s7142_s19, %s6182_s2 }
  0x78   : > { %p6179_p6 = pnand %p6177_p8, %p7154_p11  ;;  %p6185_p1 = scmp.lt.s32.totalorder %s6183_s29, %s6176_s30 }
  0x7a   : > { %p6180_p10 = pneg %p6179_p6  ;;  %p6186_p13 = por %p6185_p1, %p6184_p12 }
  0x7c   : > { %p6187_p5 = pnand %p6186_p13, %p6180_p10 }
  0x7e   : > { %6190 = shalt.err (!%p6187_p5)
}
  0x7f   : > { %5523 = dma.hbm_to_vmem [thread:$0]  (!%p7125_p9), %s7139_s0, 16, %s7142_s19, %s7090_s26  }
  0x80   : > { %s749_s24 = scalar_lea.vmem [#allocation15], %s7130_s23  ;;  %s5442_s22 = smul.u32 192, %s7130_s23 }
  0x81   : > { %s756_s6 = sshll.u32 %s749_s24, 4  ;;  %s5443_s15 = smul.u32 3072, %s6765_s5  ;;  %s757_s6 = int_to_ptr.vmem [resolvable:$true] %s756_s6 }
  0x82   : > { %s6191_s30 = scalar_lea.hbm %s7148_s1, 16  ;;  %s6196_s29 = scalar_lea.hbm %s8742_s9, 32 }
  0x83   : > { %p6192_p4 = scmp.ne.s32.totalorder %s7148_s1, %s6191_s30  ;;  %p6197_p0 = scmp.lt.u32.totalorder %s7148_s1, %s8742_s9 }
  0x84   : > { %p6198_p3 = scmp.lt.u32.totalorder %s6196_s29, %s6191_s30  ;;  %p6200_p6 = scmp.lt.u32.totalorder %s6191_s30, %s7148_s1 }
  0x85   : > { %p6194_p2 = pnand %p6192_p4, %p7154_p11 }
  0x86   : > { %p6199_p8 = por %p6198_p3, %p6197_p0 }
  0x87   : > { %p6195_p7 = pneg %p6194_p2 }
  0x88   : > { %p6201_p10 = por %p6200_p6, %p6199_p8 }
  0x8a   : > { %p6202_p12 = pnand %p6201_p10, %p6195_p7 }
  0x8c   : > { %6205 = shalt.err (!%p6202_p12)
}
  0x8d   : > { %s6206_s0 = scalar_lea.vmem %s757_s6, 16  ;;  %s6779_s19 = smov [#allocation15]  }
  0x8e   : > { %p6207_p1 = scmp.ne.s32.totalorder %s757_s6, %s6206_s0  ;;  %s6211_s24 = sshll.u32 %s6779_s19, 4  ;;  %s6212_s24 = int_to_ptr.vmem [resolvable:$false] %s6211_s24 }
  0x8f   : > { %s6213_s21 = scalar_lea.vmem %s6212_s24, 32  ;;  %p6214_p4 = scmp.lt.s32.totalorder %s757_s6, %s6212_s24 }
  0x90   : > { %p6209_p13 = pnand %p6207_p1, %p7154_p11  ;;  %p6215_p2 = scmp.lt.s32.totalorder %s6213_s21, %s6206_s0 }
  0x92   : > { %p6210_p5 = pneg %p6209_p13  ;;  %p6216_p9 = por %p6215_p2, %p6214_p4 }
  0x94   : > { %p6217_p0 = pnand %p6216_p9, %p6210_p5 }
  0x96   : > { %6220 = shalt.err (!%p6217_p0)
}
  0x97   : > { %p8744_p3 = scmp.ne.s32.totalorder %s8740_s20, 0  ;;  %s8745_s10 = sld [smem:[#allocation66_spill]] }
  0x98   : > { %s767_s2 = scalar_lea.vmem [#allocation16], %s5442_s22 }
  0x99   : > { %5526 = dma.hbm_to_vmem [thread:$0]  (!%p8744_p3), %s7148_s1, 16, %s757_s6, %s7090_s26  }
  0x9a   : > { %s774_s29 = sshll.u32 %s767_s2, 4  ;;  %s7206_s29 = int_to_ptr.vmem [resolvable:$true] %s774_s29 }
  0x9d   : > { %s7202_s30 = scalar_lea.hbm %s8745_s10, %s5443_s15  ;;  %s6226_s19 = scalar_lea.hbm %s8745_s10, 6144 }
  0x9e   : > { %s6221_s0 = scalar_lea.hbm %s7202_s30, 3072  ;;  %p6227_p6 = scmp.lt.u32.totalorder %s7202_s30, %s8745_s10 }
  0x9f   : > { %p6222_p9 = scmp.ne.s32.totalorder %s7202_s30, %s6221_s0  ;;  %p6228_p10 = scmp.lt.u32.totalorder %s6226_s19, %s6221_s0 }
  0xa0   : > { %p6230_p1 = scmp.lt.u32.totalorder %s6221_s0, %s7202_s30 }
  0xa1   : > { %p6224_p7 = pnand %p6222_p9, %p7154_p11  ;;  %p6229_p12 = por %p6228_p10, %p6227_p6 }
  0xa3   : > { %p6225_p8 = pneg %p6224_p7  ;;  %p6231_p13 = por %p6230_p1, %p6229_p12 }
  0xa5   : > { %p6232_p5 = pnand %p6231_p13, %p6225_p8 }
  0xa7   : > { %6235 = shalt.err (!%p6232_p5)
}
  0xa8   : > { %s6236_s22 = scalar_lea.vmem %s7206_s29, 3072  ;;  %s6780_s21 = smov [#allocation16]  }
  0xa9   : > { %p6237_p4 = scmp.ne.s32.totalorder %s7206_s29, %s6236_s22  ;;  %s6241_s8 = sshll.u32 %s6780_s21, 4  ;;  %s6242_s8 = int_to_ptr.vmem [resolvable:$false] %s6241_s8 }
  0xaa   : > { %s6243_s4 = scalar_lea.vmem %s6242_s8, 6144  ;;  %p6244_p9 = scmp.lt.s32.totalorder %s7206_s29, %s6242_s8 }
  0xab   : > { %p6239_p2 = pnand %p6237_p4, %p7154_p11  ;;  %p6245_p7 = scmp.lt.s32.totalorder %s6243_s4, %s6236_s22 }
  0xad   : > { %p6240_p0 = pneg %p6239_p2  ;;  %p6246_p6 = por %p6245_p7, %p6244_p9 }
  0xaf   : > { %p6247_p10 = pnand %p6246_p6, %p6240_p0 }
  0xb1   : > { %6250 = shalt.err (!%p6247_p10)
}
  0xb2   : > { %s6781_s2 = smov 192   ;;  %s6782_s0 = smov 12  }
  0xb3   : > { %5529 = dma.hbm_to_vmem [thread:$0]  (!%p8744_p3), %s7202_s30, 3072, %s7206_s29, %s7090_s26, %s6781_s2, %s6781_s2, %s6782_s0  }
  0xb4   : > { %s4941_s1 = sshll.u32 %s7130_s23, 6  ;;  %s5122_s6 = sshll.u32 %s6765_s5, 10 }
  0xb5   : > { %s8746_s11 = sld [smem:[#allocation67_spill]]  ;;  %s788_s22 = scalar_lea.vmem [#allocation17], %s4941_s1 }
  0xb6   : > { %s795_s21 = sshll.u32 %s788_s22, 4  ;;  %s8747_s12 = sld [smem:[#allocation68_spill]]  ;;  %s7237_s21 = int_to_ptr.vmem [resolvable:$true] %s795_s21 }
  0xbb   : > { %s7235_s24 = scalar_lea.hbm %s8746_s11, %s5122_s6  ;;  %s6256_s0 = scalar_lea.hbm %s8746_s11, 2048 }
  0xbc   : > { %s7243_s9 = scalar_lea.hbm %s8747_s12, %s7133_s17  ;;  %s6251_s30 = scalar_lea.hbm %s7235_s24, 1024 }
  0xbd   : > { %p6252_p8 = scmp.ne.s32.totalorder %s7235_s24, %s6251_s30  ;;  %p6257_p13 = scmp.lt.u32.totalorder %s7235_s24, %s8746_s11 }
  0xbe   : > { %p6258_p5 = scmp.lt.u32.totalorder %s6256_s0, %s6251_s30  ;;  %p6260_p2 = scmp.lt.u32.totalorder %s6251_s30, %s7235_s24 }
  0xbf   : > { %p6254_p12 = pnand %p6252_p8, %p7154_p11 }
  0xc0   : > { %p6259_p4 = por %p6258_p5, %p6257_p13 }
  0xc1   : > { %p6255_p1 = pneg %p6254_p12 }
  0xc2   : > { %p6261_p0 = por %p6260_p2, %p6259_p4 }
  0xc4   : > { %p6262_p9 = pnand %p6261_p0, %p6255_p1 }
  0xc6   : > { %6265 = shalt.err (!%p6262_p9)
}
  0xc7   : > { %s6266_s1 = scalar_lea.vmem %s7237_s21, 1024  ;;  %s6783_s15 = smov [#allocation17]  }
  0xc8   : > { %p6267_p7 = scmp.ne.s32.totalorder %s7237_s21, %s6266_s1  ;;  %s6271_s22 = sshll.u32 %s6783_s15, 4  ;;  %s6272_s22 = int_to_ptr.vmem [resolvable:$false] %s6271_s22 }
  0xc9   : > { %s6273_s8 = scalar_lea.vmem %s6272_s22, 2048  ;;  %p6274_p8 = scmp.lt.s32.totalorder %s7237_s21, %s6272_s22 }
  0xca   : > { %p6269_p6 = pnand %p6267_p7, %p7154_p11  ;;  %p6275_p12 = scmp.lt.s32.totalorder %s6273_s8, %s6266_s1 }
  0xcc   : > { %p6270_p10 = pneg %p6269_p6  ;;  %p6276_p13 = por %p6275_p12, %p6274_p8 }
  0xce   : > { %p6277_p5 = pnand %p6276_p13, %p6270_p10 }
  0xd0   : > { %6280 = shalt.err (!%p6277_p5)
}
  0xd1   : > { %s8674_s4 = smov 64   ;;  %s8676_s30 = smov 4  }
  0xd2   : > { %5532 = dma.hbm_to_vmem [thread:$0]  (!%p8744_p3), %s7235_s24, 1024, %s7237_s21, %s7090_s26, %s8674_s4, %s8674_s4, %s8676_s30  }
  0xd3   : > { %s808_s29 = scalar_lea.vmem [#allocation18], %s7130_s23  ;;  %s8748_s13 = sld [smem:[#allocation69_spill]] }
  0xd4   : > { %s815_s2 = sshll.u32 %s808_s29, 4  ;;  %s6281_s1 = scalar_lea.hbm %s7243_s9, 16  ;;  %s816_s2 = int_to_ptr.vmem [resolvable:$true] %s815_s2 }
  0xd5   : > { %p6282_p1 = scmp.ne.s32.totalorder %s7243_s9, %s6281_s1  ;;  %s6286_s8 = scalar_lea.hbm %s8747_s12, 32 }
  0xd6   : > { %p6287_p0 = scmp.lt.u32.totalorder %s7243_s9, %s8747_s12  ;;  %p6288_p9 = scmp.lt.u32.totalorder %s6286_s8, %s6281_s1 }
  0xd7   : > { %p6284_p4 = pnand %p6282_p1, %p7154_p11  ;;  %p6290_p6 = scmp.lt.u32.totalorder %s6281_s1, %s7243_s9 }
  0xd8   : > { %p6289_p7 = por %p6288_p9, %p6287_p0 }
  0xd9   : > { %s7275_s19 = scalar_lea.hbm %s8748_s13, %s7133_s17  ;;  %p6285_p2 = pneg %p6284_p4 }
  0xda   : > { %p6291_p10 = por %p6290_p6, %p6289_p7 }
  0xdc   : > { %p6292_p8 = pnand %p6291_p10, %p6285_p2 }
  0xde   : > { %6295 = shalt.err (!%p6292_p8)
}
  0xdf   : > { %s6296_s24 = scalar_lea.vmem %s816_s2, 16  ;;  %s6786_s21 = smov [#allocation18]  }
  0xe0   : > { %p6297_p12 = scmp.ne.s32.totalorder %s816_s2, %s6296_s24  ;;  %s6301_s29 = sshll.u32 %s6786_s21, 4  ;;  %s6302_s29 = int_to_ptr.vmem [resolvable:$false] %s6301_s29 }
  0xe1   : > { %s6303_s0 = scalar_lea.vmem %s6302_s29, 32  ;;  %p6304_p1 = scmp.lt.s32.totalorder %s816_s2, %s6302_s29 }
  0xe2   : > { %p6299_p13 = pnand %p6297_p12, %p7154_p11  ;;  %p6305_p4 = scmp.lt.s32.totalorder %s6303_s0, %s6296_s24 }
  0xe4   : > { %p6300_p5 = pneg %p6299_p13  ;;  %p6306_p3 = por %p6305_p4, %p6304_p1 }
  0xe6   : > { %p6307_p0 = pnand %p6306_p3, %p6300_p5 }
  0xe8   : > { %6310 = shalt.err (!%p6307_p0)
}
  0xe9   : > { %p8749_p9 = scmp.ne.s32.totalorder %s8740_s20, 0  ;;  %s825_s10 = scalar_lea.vmem [#allocation19], %s7130_s23 }
  0xea   : > { %s832_s11 = sshll.u32 %s825_s10, 4  ;;  %s6311_s6 = scalar_lea.hbm %s7275_s19, 16  ;;  %s833_s11 = int_to_ptr.vmem [resolvable:$true] %s832_s11 }
  0xeb   : > { %5535 = dma.hbm_to_vmem [thread:$0]  (!%p8749_p9), %s7243_s9, 16, %s816_s2, %s7090_s26  }
  0xec   : > { %p6312_p2 = scmp.ne.s32.totalorder %s7275_s19, %s6311_s6  ;;  %s6316_s22 = scalar_lea.hbm %s8748_s13, 32 }
  0xed   : > { %p6317_p6 = scmp.lt.u32.totalorder %s7275_s19, %s8748_s13  ;;  %p6318_p10 = scmp.lt.u32.totalorder %s6316_s22, %s6311_s6 }
  0xee   : > { %p6314_p7 = pnand %p6312_p2, %p7154_p11  ;;  %p6320_p12 = scmp.lt.u32.totalorder %s6311_s6, %s7275_s19 }
  0xef   : > { %p6319_p8 = por %p6318_p10, %p6317_p6 }
  0xf0   : > { %p6315_p3 = pneg %p6314_p7 }
  0xf1   : > { %p6321_p13 = por %p6320_p12, %p6319_p8 }
  0xf3   : > { %p6322_p5 = pnand %p6321_p13, %p6315_p3 }
  0xf5   : > { %6325 = shalt.err (!%p6322_p5)
}
  0xf6   : > { %s6326_s9 = scalar_lea.vmem %s833_s11, 16  ;;  %s6787_s2 = smov [#allocation19]  }
  0xf7   : > { %p6327_p1 = scmp.ne.s32.totalorder %s833_s11, %s6326_s9  ;;  %s6331_s21 = sshll.u32 %s6787_s2, 4  ;;  %s6332_s21 = int_to_ptr.vmem [resolvable:$false] %s6331_s21 }
  0xf8   : > { %s6333_s29 = scalar_lea.vmem %s6332_s21, 32  ;;  %p6334_p2 = scmp.lt.s32.totalorder %s833_s11, %s6332_s21 }
  0xf9   : > { %p6329_p4 = pnand %p6327_p1, %p7154_p11  ;;  %p6335_p7 = scmp.lt.s32.totalorder %s6333_s29, %s6326_s9 }
  0xfb   : > { %p6330_p0 = pneg %p6329_p4  ;;  %p6336_p9 = por %p6335_p7, %p6334_p2 }
  0xfd   : > { %p6337_p6 = pnand %p6336_p9, %p6330_p0 }
  0xff   : > { %6340 = shalt.err (!%p6337_p6)
}
 0x100   : > { %p8750_p10 = scmp.ne.s32.totalorder %s8740_s20, 0  ;;  %s6788_s0 = smov [#allocation6]  }
 0x101   : > { %s613_s10 = sshll.u32 %s6788_s0, 4  ;;  %s8751_s15 = sld [smem:[#allocation58_spill]]  ;;  %s614_s10 = int_to_ptr.vmem [resolvable:$true] %s613_s10 }
 0x102   : > { %5538 = dma.hbm_to_vmem [thread:$0]  (!%p8750_p10), %s7275_s19, 16, %s833_s11, %s7090_s26  }
 0x103   : > { %p8752_p8 = scmp.ne.s32.totalorder %s8736_s27, 0 }
 0x105   : > { %p7322_p9 = pneg %p8752_p8 }
 0x107   : > { %s6341_s22 = scalar_lea.hbm %s8751_s15, 256 }
 0x108   : > { %p6342_p3 = scmp.ne.s32.totalorder %s8751_s15, %s6341_s22  ;;  %p6348_p5 = scmp.lt.u32.totalorder %s6341_s22, %s8751_s15 }
 0x10a   : > { %p6344_p12 = pnand %p7322_p9, %p6342_p3 }
 0x10c   : > { %p6345_p13 = pneg %p6344_p12 }
 0x10e   : > { %p6350_p1 = pnand %p6348_p5, %p6345_p13 }
 0x110   : > { %6353 = shalt.err (!%p6350_p1)
}
 0x111   : > { %s6354_s2 = scalar_lea.vmem %s614_s10, 256  ;;  %p6362_p7 = scmp.lt.s32.totalorder %s614_s10, %s614_s10 }
 0x112   : > { %p6355_p4 = scmp.ne.s32.totalorder %s614_s10, %s6354_s2  ;;  %p6363_p6 = scmp.lt.s32.totalorder %s6354_s2, %s6354_s2 }
 0x114   : > { %p6357_p0 = pnand %p6355_p4, %p7322_p9  ;;  %p6364_p10 = por %p6363_p6, %p6362_p7 }
 0x116   : > { %p6358_p2 = pneg %p6357_p0 }
 0x118   : > { %p6365_p11 = pnand %p6364_p10, %p6358_p2 }
 0x11a   : > { %6368 = shalt.err (!%p6365_p11)
}
 0x11b   : > { %s6789_s21 = smov 128   ;;  %s6790_s29 = smov 8  }
 0x11c   : > { %5498 = dma.hbm_to_vmem [thread:$0]  (!%p8752_p8), %s8751_s15, 256, %s614_s10, [#allocation7], %s6789_s21, %s6789_s21, %s6790_s29  }
 0x11d   : > { %s6791_s1 = smov [#allocation9]   ;;  %s8679_s8 = sshll.u32 %s7130_s23, 8 }
 0x11e   : > { %s640_s22 = sshll.u32 %s6791_s1, 4  ;;  %s8754_s11 = sld [smem:[#allocation61_spill]]  ;;  %s641_s22 = int_to_ptr.vmem [resolvable:$true] %s640_s22 }
 0x124   : > { %s6369_s2 = scalar_lea.hbm %s8754_s11, 2048 }
 0x125   : > { %p6370_p11 = scmp.ne.s32.totalorder %s8754_s11, %s6369_s2  ;;  %p6376_p12 = scmp.lt.u32.totalorder %s6369_s2, %s8754_s11 }
 0x127   : > { %p6372_p10 = pnand %p6370_p11, %p7322_p9 }
 0x129   : > { %p6373_p3 = pneg %p6372_p10 }
 0x12b   : > { %p6378_p13 = pnand %p6376_p12, %p6373_p3 }
 0x12d   : > { %6381 = shalt.err (!%p6378_p13)
}
 0x12e   : > { %s6382_s10 = scalar_lea.vmem %s641_s22, 2048  ;;  %p6390_p0 = scmp.lt.s32.totalorder %s641_s22, %s641_s22 }
 0x12f   : > { %p6383_p5 = scmp.ne.s32.totalorder %s641_s22, %s6382_s10  ;;  %p6391_p2 = scmp.lt.s32.totalorder %s6382_s10, %s6382_s10 }
 0x131   : > { %p6385_p1 = pnand %p6383_p5, %p7322_p9  ;;  %p6392_p7 = por %p6391_p2, %p6390_p0 }
 0x133   : > { %p6386_p4 = pneg %p6385_p1 }
 0x135   : > { %p6393_p6 = pnand %p6392_p7, %p6386_p4 }
 0x137   : > { %6396 = shalt.err (!%p6393_p6)
}
 0x138   : > { %s8755_s4 = smov 4   ;;  %s8756_s30 = smov 64  }
 0x139   : > { %5504 = dma.hbm_to_vmem [thread:$0]  (!%p8752_p8), %s8754_s11, 2048, %s641_s22, [#allocation10], %s8756_s30, %s8756_s30, %s8755_s4  }
 0x13a   : > { %s8680_s21 = sshll.u32 %s6765_s5, 12  ;;  %s843_s29 = scalar_lea.vmem [#allocation20], %s8679_s8 }
 0x13b   : > { %s850_s0 = sshll.u32 %s843_s29, 4  ;;  %s8757_s14 = sld [smem:[#allocation70_spill]]  ;;  %s7370_s0 = int_to_ptr.vmem [resolvable:$true] %s850_s0 }
 0x13c   : > { %p8758_p10 = scmp.ne.s32.totalorder %s8743_s28, 0 }
 0x141   : > { %s7368_s24 = scalar_lea.hbm %s8757_s14, %s8680_s21  ;;  %s6402_s10 = scalar_lea.hbm %s8757_s14, 8192 }
 0x142   : > { %s6397_s19 = scalar_lea.hbm %s7368_s24, 4096  ;;  %p6403_p13 = scmp.lt.u32.totalorder %s7368_s24, %s8757_s14 }
 0x143   : > { %p6398_p11 = scmp.ne.s32.totalorder %s7368_s24, %s6397_s19  ;;  %p6404_p5 = scmp.lt.u32.totalorder %s6402_s10, %s6397_s19 }
 0x144   : > { %p6406_p4 = scmp.lt.u32.totalorder %s6397_s19, %s7368_s24 }
 0x145   : > { %p6400_p3 = pnand %p6398_p11, %p8758_p10  ;;  %p6405_p1 = por %p6404_p5, %p6403_p13 }
 0x147   : > { %p6401_p12 = pneg %p6400_p3  ;;  %p6407_p0 = por %p6406_p4, %p6405_p1 }
 0x149   : > { %p6408_p2 = pnand %p6407_p0, %p6401_p12 }
 0x14b   : > { %6411 = shalt.err (!%p6408_p2)
}
 0x14c   : > { %s6412_s29 = scalar_lea.vmem %s7370_s0, 4096  ;;  %s6792_s6 = smov [#allocation20]  }
 0x14d   : > { %p6413_p7 = scmp.ne.s32.totalorder %s7370_s0, %s6412_s29  ;;  %s6417_s1 = sshll.u32 %s6792_s6, 4  ;;  %s6418_s1 = int_to_ptr.vmem [resolvable:$false] %s6417_s1 }
 0x14e   : > { %s6419_s22 = scalar_lea.vmem %s6418_s1, 8192  ;;  %p6420_p3 = scmp.lt.s32.totalorder %s7370_s0, %s6418_s1 }
 0x14f   : > { %p6415_p6 = pnand %p6413_p7, %p8758_p10  ;;  %p6421_p8 = scmp.lt.s32.totalorder %s6419_s22, %s6412_s29 }
 0x151   : > { %p6416_p11 = pneg %p6415_p6  ;;  %p6422_p13 = por %p6421_p8, %p6420_p3 }
 0x153   : > { %p6423_p5 = pnand %p6422_p13, %p6416_p11 }
 0x155   : > { %6426 = shalt.err (!%p6423_p5)
}
 0x156   : > { %p8759_p12 = scmp.ne.s32.totalorder %s8740_s20, 0  ;;  %s8760_s19 = smov 16  }
 0x157   : > { %s8761_s2 = smov 256   ;;  %s6793_s10 = smov [#allocation8]  }
 0x158   : > { %5541 = dma.hbm_to_vmem [thread:$0]  (!%p8759_p12), %s7368_s24, 4096, %s7370_s0, %s7090_s26, %s8761_s2, %s8761_s2, %s8760_s19  }
 0x159   : > { %s630_s12 = sshll.u32 %s6793_s10, 4  ;;  %s6794_s13 = smov [#allocation11]   ;;  %s631_s12 = int_to_ptr.vmem [resolvable:$true] %s630_s12 }
 0x15a   : > { %s657_s6 = sshll.u32 %s6794_s13, 4  ;;  %s8762_s22 = sld [smem:[#allocation60_spill]]  ;;  %s7397_s6 = int_to_ptr.vmem [resolvable:$true] %s657_s6 }
 0x160   : > { %s6427_s8 = scalar_lea.hbm %s8762_s22, 32 }
 0x161   : > { %p6428_p8 = scmp.ne.s32.totalorder %s8762_s22, %s6427_s8  ;;  %p6434_p0 = scmp.lt.u32.totalorder %s6427_s8, %s8762_s22 }
 0x163   : > { %p6430_p1 = pnand %p6428_p8, %p7322_p9 }
 0x165   : > { %p6431_p4 = pneg %p6430_p1 }
 0x167   : > { %p6436_p2 = pnand %p6434_p0, %p6431_p4 }
 0x169   : > { %6439 = shalt.err (!%p6436_p2)
}
 0x16a   : > { %s6440_s24 = scalar_lea.vmem %s631_s12, 32  ;;  %p6448_p3 = scmp.lt.s32.totalorder %s631_s12, %s631_s12 }
 0x16b   : > { %p6441_p7 = scmp.ne.s32.totalorder %s631_s12, %s6440_s24  ;;  %p6449_p13 = scmp.lt.s32.totalorder %s6440_s24, %s6440_s24 }
 0x16d   : > { %p6443_p6 = pnand %p6441_p7, %p7322_p9  ;;  %p6450_p5 = por %p6449_p13, %p6448_p3 }
 0x16f   : > { %p6444_p11 = pneg %p6443_p6 }
 0x171   : > { %p6451_p12 = pnand %p6450_p5, %p6444_p11 }
 0x173   : > { %6454 = shalt.err (!%p6451_p12)
}
 0x174   : > { %p8763_p8 = scmp.ne.s32.totalorder %s8736_s27, 0  ;;  %s8764_s19 = sld [smem:[#allocation63_spill]] }
 0x176   : > { %5501 = dma.hbm_to_vmem [thread:$0]  (!%p8763_p8), %s8762_s22, 32, %s631_s12, [#allocation7]  }
 0x17a   : > { %s6455_s2 = scalar_lea.hbm %s8764_s19, 16 }
 0x17b   : > { %p6456_p1 = scmp.ne.s32.totalorder %s8764_s19, %s6455_s2  ;;  %p6462_p12 = scmp.lt.u32.totalorder %s6455_s2, %s8764_s19 }
 0x17d   : > { %p6458_p4 = pnand %p6456_p1, %p7322_p9 }
 0x17f   : > { %p6459_p0 = pneg %p6458_p4 }
 0x181   : > { %p6464_p2 = pnand %p6462_p12, %p6459_p0 }
 0x183   : > { %6467 = shalt.err (!%p6464_p2)
}
 0x184   : > { %s6468_s12 = scalar_lea.vmem %s7397_s6, 16  ;;  %s6475_s0 = scalar_lea.vmem %s7397_s6, 32 }
 0x185   : > { %p6469_p7 = scmp.ne.s32.totalorder %s7397_s6, %s6468_s12  ;;  %p6476_p3 = scmp.lt.s32.totalorder %s7397_s6, %s7397_s6 }
 0x186   : > { %p6477_p13 = scmp.lt.s32.totalorder %s6475_s0, %s6468_s12 }
 0x187   : > { %p6471_p6 = pnand %p6469_p7, %p7322_p9 }
 0x188   : > { %p6478_p5 = por %p6477_p13, %p6476_p3 }
 0x189   : > { %p6472_p11 = pneg %p6471_p6 }
 0x18b   : > { %p6479_p1 = pnand %p6478_p5, %p6472_p11 }
 0x18d   : > { %6482 = shalt.err (!%p6479_p1)
}
 0x18e   : > { %5507 = dma.hbm_to_vmem [thread:$0]  (!%p8763_p8), %s8764_s19, 16, %s7397_s6, [#allocation10]  }
 0x18f   : > { %s8765_s21 = sshll.u32 %s6765_s5, 12  ;;  %s8766_s10 = sshll.u32 %s7130_s23, 8 }
 0x190   : > { %s7446_s2 = scalar_lea.hbm %s8624_s16, %s8765_s21  ;;  %s871_s13 = scalar_lea.vmem [#allocation21], %s8766_s10 }
 0x191   : > { %s878_s29 = sshll.u32 %s871_s13, 4  ;;  %s6795_s1 = smov [#allocation12]   ;;  %s7450_s29 = int_to_ptr.vmem [resolvable:$true] %s878_s29 }
 0x192   : > { %s7452_s12 = sshll.u32 %s6795_s1, 4  ;;  %s6483_s0 = scalar_lea.hbm %s7446_s2, 4096  ;;  %s669_s12 = int_to_ptr.vmem [resolvable:$true] %s7452_s12 }
 0x193   : > { %p6484_p4 = scmp.ne.s32.totalorder %s7446_s2, %s6483_s0  ;;  %s6488_s11 = scalar_lea.hbm %s8624_s16, 8192 }
 0x194   : > { %p6489_p2 = scmp.lt.u32.totalorder %s7446_s2, %s8624_s16  ;;  %p6490_p7 = scmp.lt.u32.totalorder %s6488_s11, %s6483_s0 }
 0x195   : > { %p6486_p0 = pnand %p6484_p4, %p8758_p10  ;;  %p6492_p11 = scmp.lt.u32.totalorder %s6483_s0, %s7446_s2 }
 0x196   : > { %p6491_p6 = por %p6490_p7, %p6489_p2 }
 0x197   : > { %p6487_p12 = pneg %p6486_p0 }
 0x198   : > { %p6493_p3 = por %p6492_p11, %p6491_p6 }
 0x19a   : > { %p6494_p13 = pnand %p6493_p3, %p6487_p12 }
 0x19c   : > { %6497 = shalt.err (!%p6494_p13)
}
 0x19d   : > { %s6498_s8 = scalar_lea.vmem %s7450_s29, 4096  ;;  %s6796_s10 = smov [#allocation21]  }
 0x19e   : > { %p6499_p5 = scmp.ne.s32.totalorder %s7450_s29, %s6498_s8  ;;  %s6503_s13 = sshll.u32 %s6796_s10, 4  ;;  %s6504_s13 = int_to_ptr.vmem [resolvable:$false] %s6503_s13 }
 0x19f   : > { %s6505_s1 = scalar_lea.vmem %s6504_s13, 8192  ;;  %p6506_p0 = scmp.lt.s32.totalorder %s7450_s29, %s6504_s13 }
 0x1a0   : > { %p6501_p1 = pnand %p6499_p5, %p8758_p10  ;;  %p6507_p8 = scmp.lt.s32.totalorder %s6505_s1, %s6498_s8 }
 0x1a2   : > { %p6502_p4 = pneg %p6501_p1  ;;  %p6508_p2 = por %p6507_p8, %p6506_p0 }
 0x1a4   : > { %p6509_p7 = pnand %p6508_p2, %p6502_p4 }
 0x1a6   : > { %6512 = shalt.err (!%p6509_p7)
}
 0x1a7   : > { %p8767_p12 = scmp.ne.s32.totalorder %s8740_s20, 0  ;;  %s6513_s24 = scalar_lea.hbm %s8615_s7, 16 }
 0x1a8   : > { %p6514_p8 = scmp.ne.s32.totalorder %s8615_s7, %s6513_s24  ;;  %p6520_p3 = scmp.lt.u32.totalorder %s6513_s24, %s8615_s7 }
 0x1a9   : > { %5544 = dma.hbm_to_vmem [thread:$0]  (!%p8767_p12), %s7446_s2, 4096, %s7450_s29, %s7090_s26, %s8756_s30, %s8756_s30, %s8755_s4  }
 0x1aa   : > { %p6516_p6 = pnand %p6514_p8, %p7322_p9 }
 0x1ac   : > { %p6517_p11 = pneg %p6516_p6 }
 0x1ae   : > { %p6522_p13 = pnand %p6520_p3, %p6517_p11 }
 0x1b0   : > { %6525 = shalt.err (!%p6522_p13)
}
 0x1b1   : > { %s6526_s10 = scalar_lea.vmem %s669_s12, 16  ;;  %s6533_s4 = scalar_lea.vmem %s669_s12, 32 }
 0x1b2   : > { %p6527_p5 = scmp.ne.s32.totalorder %s669_s12, %s6526_s10  ;;  %p6534_p0 = scmp.lt.s32.totalorder %s669_s12, %s669_s12 }
 0x1b3   : > { %p6535_p2 = scmp.lt.s32.totalorder %s6533_s4, %s6526_s10 }
 0x1b4   : > { %p6529_p1 = pnand %p6527_p5, %p7322_p9 }
 0x1b5   : > { %p6536_p7 = por %p6535_p2, %p6534_p0 }
 0x1b6   : > { %p6530_p4 = pneg %p6529_p1 }
 0x1b8   : > { %p6537_p12 = pnand %p6536_p7, %p6530_p4 }
 0x1ba   : > { %6540 = shalt.err (!%p6537_p12)
}
 0x1bb   : > { %p8768_p8 = scmp.ne.s32.totalorder %s8736_s27, 0  ;;  %s6797_s29 = smov [#allocation23]  }
 0x1bc   : > { %s679_s13 = sshll.u32 %s6797_s29, 4  ;;  %s6798_s1 = smov [#allocation24]   ;;  %s680_s13 = int_to_ptr.vmem [resolvable:$true] %s679_s13 }
 0x1bd   : > { %5510 = dma.hbm_to_vmem [thread:$0]  (!%p8768_p8), %s8615_s7, 16, %s669_s12, [#allocation13]  }
 0x1be   : > { %s690_s0 = sshll.u32 %s6798_s1, 4  ;;  %s6541_s11 = scalar_lea.hbm %s8626_s18, 16  ;;  %s691_s0 = int_to_ptr.vmem [resolvable:$true] %s690_s0 }
 0x1bf   : > { %p6542_p12 = scmp.ne.s32.totalorder %s8626_s18, %s6541_s11  ;;  %p6548_p3 = scmp.lt.u32.totalorder %s6541_s11, %s8626_s18 }
 0x1c1   : > { %p6544_p6 = pnand %p6542_p12, %p7322_p9 }
 0x1c3   : > { %p6545_p11 = pneg %p6544_p6 }
 0x1c5   : > { %p6550_p13 = pnand %p6548_p3, %p6545_p11 }
 0x1c7   : > { %6553 = shalt.err (!%p6550_p13)
}
 0x1c8   : > { %s6554_s12 = scalar_lea.vmem %s680_s13, 16  ;;  %s6561_s4 = scalar_lea.vmem %s680_s13, 32 }
 0x1c9   : > { %p6555_p5 = scmp.ne.s32.totalorder %s680_s13, %s6554_s12  ;;  %p6562_p0 = scmp.lt.s32.totalorder %s680_s13, %s680_s13 }
 0x1ca   : > { %p6563_p2 = scmp.lt.s32.totalorder %s6561_s4, %s6554_s12 }
 0x1cb   : > { %p6557_p1 = pnand %p6555_p5, %p7322_p9 }
 0x1cc   : > { %p6564_p7 = por %p6563_p2, %p6562_p0 }
 0x1cd   : > { %p6558_p4 = pneg %p6557_p1 }
 0x1cf   : > { %p6565_p10 = pnand %p6564_p7, %p6558_p4 }
 0x1d1   : > { %6568 = shalt.err (!%p6565_p10)
}
 0x1d2   : > { %5513 = dma.hbm_to_vmem [thread:$0]  (!%p8768_p8), %s8626_s18, 16, %s680_s13, [#allocation7]  }
 0x1d3   : > { %s8769_s6 = sld [smem:[#allocation73_spill]] }
 0x1d9   : > { %s8770_s11 = smov %s8769_s6  ;;  %s6569_s24 = scalar_lea.hbm %s8769_s6, 16 }
 0x1da   : > { %p6570_p12 = scmp.ne.s32.totalorder %s8770_s11, %s6569_s24  ;;  %p6576_p10 = scmp.lt.u32.totalorder %s6569_s24, %s8770_s11 }
 0x1dc   : > { %p6572_p6 = pnand %p6570_p12, %p7322_p9 }
 0x1de   : > { %p6573_p11 = pneg %p6572_p6 }
 0x1e0   : > { %p6578_p3 = pnand %p6576_p10, %p6573_p11 }
 0x1e2   : > { %6581 = shalt.err (!%p6578_p3)
}
 0x1e3   : > { %s6582_s12 = scalar_lea.vmem %s691_s0, 16  ;;  %s6589_s13 = scalar_lea.vmem %s691_s0, 32 }
 0x1e4   : > { %p6583_p13 = scmp.ne.s32.totalorder %s691_s0, %s6582_s12  ;;  %p6590_p4 = scmp.lt.s32.totalorder %s691_s0, %s691_s0 }
 0x1e5   : > { %p6591_p0 = scmp.lt.s32.totalorder %s6589_s13, %s6582_s12 }
 0x1e6   : > { %p6585_p5 = pnand %p6583_p13, %p7322_p9 }
 0x1e7   : > { %p6592_p2 = por %p6591_p0, %p6590_p4 }
 0x1e8   : > { %p6586_p1 = pneg %p6585_p5 }
 0x1ea   : > { %p6593_p7 = pnand %p6592_p2, %p6586_p1 }
 0x1ec   : > { %6596 = shalt.err (!%p6593_p7)
}
 0x1ed   : > { %5516 = dma.hbm_to_vmem [thread:$0]  (!%p8768_p8), %s8770_s11, 16, %s691_s0, [#allocation10]  }
 0x1ee   : > { %s8771_s9 = sld [smem:[#allocation72_spill]]  ;;  %s891_s6 = scalar_lea.vmem [#allocation22], %s7130_s23 }
 0x1ef   : > { %s898_s24 = sshll.u32 %s891_s6, 4  ;;  %p8772_p12 = scmp.ne.s32.totalorder %s8743_s28, 0  ;;  %s899_s24 = int_to_ptr.vmem [resolvable:$true] %s898_s24 }
 0x1f4   : > { %s7538_s1 = scalar_lea.hbm %s8771_s9, %s7133_s17  ;;  %s6602_s0 = scalar_lea.hbm %s8771_s9, 32 }
 0x1f5   : > { %s6597_s27 = scalar_lea.hbm %s7538_s1, 16  ;;  %p6603_p8 = scmp.lt.u32.totalorder %s7538_s1, %s8771_s9 }
 0x1f6   : > { %p6598_p9 = scmp.ne.s32.totalorder %s7538_s1, %s6597_s27  ;;  %p6604_p10 = scmp.lt.u32.totalorder %s6602_s0, %s6597_s27 }
 0x1f7   : > { %p6606_p13 = scmp.lt.u32.totalorder %s6597_s27, %s7538_s1 }
 0x1f8   : > { %p6600_p6 = pnand %p6598_p9, %p8772_p12  ;;  %p6605_p3 = por %p6604_p10, %p6603_p8 }
 0x1fa   : > { %p6601_p11 = pneg %p6600_p6  ;;  %p6607_p5 = por %p6606_p13, %p6605_p3 }
 0x1fc   : > { %p6608_p1 = pnand %p6607_p5, %p6601_p11 }
 0x1fe   : > { %6611 = shalt.err (!%p6608_p1)
}
 0x1ff   : > { %s6612_s23 = scalar_lea.vmem %s899_s24, 16  ;;  %s6799_s17 = smov [#allocation22]  }
 0x200   : > { %p6613_p4 = scmp.ne.s32.totalorder %s899_s24, %s6612_s23  ;;  %s6617_s12 = sshll.u32 %s6799_s17, 4  ;;  %s6618_s12 = int_to_ptr.vmem [resolvable:$false] %s6617_s12 }
 0x201   : > { %s6619_s13 = scalar_lea.vmem %s6618_s12, 32  ;;  %p6620_p7 = scmp.lt.s32.totalorder %s899_s24, %s6618_s12 }
 0x202   : > { %p6615_p0 = pnand %p6613_p4, %p8772_p12  ;;  %p6621_p9 = scmp.lt.s32.totalorder %s6619_s13, %s6612_s23 }
 0x204   : > { %p6616_p2 = pneg %p6615_p0  ;;  %p6622_p6 = por %p6621_p9, %p6620_p7 }
 0x206   : > { %p6623_p8 = pnand %p6622_p6, %p6616_p2 }
 0x208   : > { %6626 = shalt.err (!%p6623_p8)
}
 0x209   : > { %p8773_p10 = scmp.ne.s32.totalorder %s8740_s20, 0  ;;  %p8774_p11 = scmp.ne.s32.totalorder %s8734_s3, 0 }
 0x20b   : > { %5547 = dma.hbm_to_vmem [thread:$0]  (!%p8773_p10), %s7538_s1, 16, %s899_s24, %s7090_s26  }
 0x20c   : > { %907 = sbr.rel (%p8774_p11) target bundleno = 5097 (0x13e9), region = 108 }
 0x213   : > { %s8775_s28 = sld [smem:[#allocation37_spill]]  ;;  %s8776_s4 = sld [smem:[#allocation45_spill]] }
 0x214   : > { %s909_s30 = sand.u32 1, %s6980_s25  }
 0x215   : > { %s910_s6 = scalar_lea.sflag [#allocation4], %s909_s30 }
 0x219   : > { %s7563_s2 = sand.u32 1, %s8775_s28   ;;  %p8777_p12 = scmp.ne.s32.totalorder %s8776_s4, 0 }
 0x21a   : > { %s4954_s29 = sshll.u32 %s7563_s2, 6 }
 0x21b   : > { %s7566_s27 = scalar_lea.vmem [#allocation3], %s4954_s29 }
 0x21c   : > { %6700 = dma.done.wait (%p8777_p12), %s910_s6, 1024  }
 0x21d   : > { %6702 = vsyncadd (%p8777_p12), %s910_s6, 4294966272  ;;  %p8778_p3 = scmp.eq.s32.totalorder %s6980_s25, 0 }
 0x21f   : > { %6704 = dma.done.wait (%p8778_p3), [#allocation7], 288   ;;  %p8779_p13 = pmov %p8778_p3 }
 0x220   : > { %p8780_p5 = pmov %p8778_p3 }
 0x221   : > { %6706 = vsyncadd (%p8779_p13), [#allocation7], 4294967008 }
 0x222   : > { %6708 = dma.done.wait (%p8780_p5), [#allocation10], 2064   ;;  %p8781_p1 = pmov %p8778_p3 }
 0x224   : > { %6710 = vsyncadd (%p8781_p1), [#allocation10], 4294965232  ;;  %p8782_p4 = pmov %p8781_p1 }
 0x225   : > { %p8783_p0 = pmov %p8781_p1 }
 0x226   : > { %6712 = dma.done.wait (%p8782_p4), [#allocation13], 16  }
 0x227   : > { %6714 = vsyncadd (%p8783_p0), [#allocation13], 4294967280  ;;  %s8784_s3 = sld [smem:[#allocation34_spill]]  ;;  %s8785_s26 = sld [smem:[#allocation48_spill]] }
 0x22d   : > { %s7585_s20 = sand.u32 1, %s8784_s3   ;;  %p8786_p2 = scmp.ne.s32.totalorder %s8785_s26, 0 }
 0x22e   : > { %s941_s1 = scalar_lea.vmem [#allocation14], %s7585_s20 }
 0x22f   : > { %6716 = dma.done.wait (%p8786_p2), %s910_s6, 12368  }
 0x230   : > { %6718 = vsyncadd (%p8786_p2), %s910_s6, 4294954928  ;;  %s5444_s24 = smul.u32 192, %s7585_s20  ;;  %s4960_s21 = sshll.u32 %s7585_s20, 6 }
 0x231   : > { %s4961_s14 = sshll.u32 %s7585_s20, 8  ;;  %s949_s0 = scalar_lea.vmem [#allocation15], %s7585_s20 }
 0x232   : > { %s7596_s8 = scalar_lea.vmem [#allocation16], %s5444_s24  ;;  %s7598_s10 = scalar_lea.vmem [#allocation17], %s4960_s21 }
 0x233   : > { %s975_s23 = scalar_lea.vmem [#allocation18], %s7585_s20  ;;  %s983_s17 = scalar_lea.vmem [#allocation19], %s7585_s20 }
 0x234   : > { %s7602_s12 = scalar_lea.vmem [#allocation20], %s4961_s14  ;;  %s7604_s13 = scalar_lea.vmem [#allocation21], %s4961_s14 }
 0x235   : > { %s1009_s28 = scalar_lea.vmem [#allocation22], %s7585_s20  ;;  %p8787_p7 = pmov %p8783_p0 }
 0x236   : > { %p8788_p9 = pmov %p8783_p0 }
 0x237   : > { %6720 = dma.done.wait (%p8787_p7), [#allocation7], 16  }
 0x238   : > { %6722 = vsyncadd (%p8788_p9), [#allocation7], 4294967280  ;;  %p8789_p6 = pmov %p8783_p0 }
 0x239   : > { %p8790_p8 = pmov %p8783_p0 }
 0x23a   : > { %6724 = dma.done.wait (%p8789_p6), [#allocation10], 16  }
 0x23b   : > { %6726 = vsyncadd (%p8790_p8), [#allocation10], 4294967280  ;;  %s8791_s4 = sld [smem:[#allocation39_spill]]  ;;  %s4965_s30 = sshll.u32 %s7563_s2, 1 }
 0x23c   : > { %s8792_s24 = sld [smem:[#allocation71_spill]]  ;;  %s7623_s14 = scalar_lea.vmem [#allocation25], %s4965_s30 }
 0x241   : > { %p1123_p10 = scmp.lt.s32.totalorder %s8791_s4, 1  ;;  %p4967_p11 = scmp.ne.s32.totalorder %s8791_s4, 0 }
 0x242   : > { %v7627_v0 = vld [vmem:[%s7566_s27 + $0x20] sm:$0xff] (!%p4967_p11)  ;;  %v7630_v1 = vld [vmem:[%s7566_s27 + $0x28] sm:$0xff] (!%p4967_p11)  ;;  %v7641_v5 = vld [vmem:[%s7566_s27 + $0x30] sm:$0xff] (!%p4967_p11)  ;;  %v1215_v57 = vlaneseq (!%p4967_p11) }
 0x243   : > { %s1124_s29 = scalar_select %p1123_p10, %s8791_s4, 1 }
 0x244   : > { %1131 = sbr.rel (%p4967_p11) target bundleno = 1296 (0x510), region = 180  ;;  %v7633_v2 = vld [vmem:[%s7566_s27] sm:$0xff] (!%p4967_p11)  ;;  %v1148_v3 = vadd.f32 (!%p4967_p11), %v7630_v1, %v7627_v0  ;;  %v7638_v4 = vld [vmem:[%s7566_s27 + $0x8] sm:$0xff] (!%p4967_p11)  ;;  %v7644_v6 = vld [vmem:[%s7566_s27 + $0x38] sm:$0xff] (!%p4967_p11)  ;;  %v1160_v17 = vmul.f32 (!%p4967_p11), %v7641_v5, %v7641_v5  ;;  %v1158_v20 = vmul.f32 (!%p4967_p11), %v7627_v0, %v7627_v0  ;;  %v1159_v21 = vmul.f32 (!%p4967_p11), %v7630_v1, %v7630_v1  ;;  %s8793_s4 = sld [smem:[#allocation59_spill]] (!%p4967_p11) }
 0x245   : > { %s4966_s6 = sshll.u32 %s1124_s29, 2  ;;  %v1142_v7 = vadd.f32 (!%p4967_p11), %v7638_v4, %v7633_v2  ;;  %v7649_v8 = vld [vmem:[%s7566_s27 + $0x10] sm:$0xff] (!%p4967_p11)  ;;  %v7652_v9 = vld [vmem:[%s7566_s27 + $0x18] sm:$0xff] (!%p4967_p11)  ;;  %v1151_v10 = vadd.f32 (!%p4967_p11), %v7644_v6, %v7641_v5  ;;  %v1154_v14 = vmul.f32 (!%p4967_p11), %v7633_v2, %v7633_v2  ;;  %v1155_v15 = vmul.f32 (!%p4967_p11), %v7638_v4, %v7638_v4  ;;  %v5683_v28 = vld [vmem:[#allocation9 + $0x50] sm:$0xff] (!%p4967_p11)  }
 0x246   : > { %s7621_s21 = scalar_lea.vmem %s8792_s24, %s4966_s6  ;;  %1149 = vadd.xlane.f32.xlu1 (!%p4967_p11), %v1148_v3  ;;  %v1156_v11 = vmul.f32 (!%p4967_p11), %v7649_v8, %v7649_v8  ;;  %v1157_v12 = vmul.f32 (!%p4967_p11), %v7652_v9, %v7652_v9  ;;  %v1145_v13 = vadd.f32 (!%p4967_p11), %v7652_v9, %v7649_v8  ;;  %v1161_v18 = vmul.f32 (!%p4967_p11), %v7644_v6, %v7644_v6  ;;  %v5679_v24 = vld [vmem:[#allocation9 + $0x40] sm:$0xff] (!%p4967_p11)   ;;  %v5681_v26 = vld [vmem:[#allocation9 + $0x48] sm:$0xff] (!%p4967_p11)   ;;  %v5684_v29 = vld [vmem:[#allocation9 + $0x10] sm:$0xff] (!%p4967_p11)   ;;  %s8794_s6 = sld [smem:[#allocation62_spill]] (!%p4967_p11) }
 0x247   : > { %1143 = vadd.xlane.f32.xlu0 (!%p4967_p11), %v1142_v7  ;;  %v1162_v19 = vadd.f32 (!%p4967_p11), %v1155_v15, %v1154_v14  ;;  %v1168_v23 = vadd.f32 (!%p4967_p11), %v1159_v21, %v1158_v20  ;;  %v5680_v25 = vld [vmem:[#allocation9] sm:$0xff] (!%p4967_p11)   ;;  %5125 = vmatprep.subr.bf16.mxu0 (!%p4967_p11), %v5679_v24  ;;  %v5682_v27 = vld [vmem:[#allocation9 + $0x8] sm:$0xff] (!%p4967_p11)   ;;  %v5685_v30 = vld [vmem:[#allocation9 + $0x58] sm:$0xff] (!%p4967_p11)  }
 0x248   : > { %v1165_v16 = vadd.f32 (!%p4967_p11), %v1157_v12, %v1156_v11  ;;  %v1171_v22 = vadd.f32 (!%p4967_p11), %v1161_v18, %v1160_v17  ;;  %5426 = vmatprep.subr.bf16.mxu1 (!%p4967_p11), %v5679_v24  ;;  %5126 = vmatpush3.bf16.msra.mxu0 (!%p4967_p11), %v5680_v25  ;;  %v5686_v31 = vld [vmem:[#allocation9 + $0x18] sm:$0xff] (!%p4967_p11)   ;;  %v5687_v32 = vld [vmem:[#allocation9 + $0x60] sm:$0xff] (!%p4967_p11)   ;;  %v5689_v34 = vld [vmem:[#allocation9 + $0x68] sm:$0xff] (!%p4967_p11)   ;;  %v1216_v11 = vshrl.u32 (!%p4967_p11), %v1215_v57, 7 }
 0x249   : > { %5434 = vmatpush3.bf16.msra.mxu1 (!%p4967_p11), %v5680_v25  ;;  %5127 = vmatprep.subr.bf16.mxu0 (!%p4967_p11), %v5681_v26  ;;  %v5688_v33 = vld [vmem:[#allocation9 + $0x20] sm:$0xff] (!%p4967_p11)   ;;  %v5690_v35 = vld [vmem:[#allocation9 + $0x28] sm:$0xff] (!%p4967_p11)   ;;  %v5691_v36 = vld [vmem:[#allocation9 + $0x70] sm:$0xff] (!%p4967_p11)  }
 0x24a   : > { %1152 = vadd.xlane.f32.xlu1 (!%p4967_p11), %v1151_v10  ;;  %5427 = vmatprep.subr.bf16.mxu1 (!%p4967_p11), %v5681_v26  ;;  %v5692_v37 = vld [vmem:[#allocation9 + $0x30] sm:$0xff] (!%p4967_p11)   ;;  %v5693_v38 = vld [vmem:[#allocation9 + $0x78] sm:$0xff] (!%p4967_p11)   ;;  %v1217_v14 = vsub.s32 (!%p4967_p11), 0, %v1216_v11  ;;  %v1221_v15 = vsub.s32 (!%p4967_p11), 1, %v1216_v11 }
 0x24b   : > { %1146 = vadd.xlane.f32.xlu0 %v1145_v13  ;;  %v5694_v39 = vld [vmem:[#allocation9 + $0x38] sm:$0xff]  }
 0x24c   : > { %5128 = vmatpush3.bf16.msra.mxu0 %v5682_v27  ;;  %v1141_v17 = vld [vmem:[#allocation8] sm:$0x3] }
 0x24d   : > { %5435 = vmatpush3.bf16.msra.mxu1 %v5682_v27  ;;  %5129 = vmatprep.subr.bf16.mxu0 %v5683_v28  ;;  %v1237_v27 = vrot.slane %v1141_v17, %v1217_v14 }
 0x24e   : > { %1166 = vadd.xlane.f32.xlu1 %v1165_v16  ;;  %5428 = vmatprep.subr.bf16.mxu1 %v5683_v28  ;;  %v1140_v16 = vld [vmem:[%s8793_s4] sm:$0x3]  ;;  %v1241_v28 = vrot.slane %v1141_v17, %v1221_v15 }
 0x24f   : > { %1163 = vadd.xlane.f32.xlu0 %v1162_v19  ;;  %v1218_v20 = vrot.slane %v1140_v16, %v1217_v14  ;;  %v1222_v21 = vrot.slane %v1140_v16, %v1221_v15 }
 0x250   : > { %5130 = vmatpush3.bf16.msra.mxu0 %v5684_v29 }
 0x251   : > { %5436 = vmatpush3.bf16.msra.mxu1 %v5684_v29  ;;  %5131 = vmatprep.subr.bf16.mxu0 %v5685_v30 }
 0x252   : > { %1172 = vadd.xlane.f32.xlu1 %v1171_v22  ;;  %5429 = vmatprep.subr.bf16.mxu1 %v5685_v30 }
 0x253   : > { %1169 = vadd.xlane.f32.xlu0 %v1168_v23 }
 0x254   : > { %5132 = vmatpush3.bf16.msra.mxu0 %v5686_v31 }
 0x255   : > { %5437 = vmatpush3.bf16.msra.mxu1 %v5686_v31  ;;  %5133 = vmatprep.subr.bf16.mxu0 %v5687_v32 }
 0x256   : > { %5430 = vmatprep.subr.bf16.mxu1 %v5687_v32 }
 0x258   : > { %5134 = vmatpush3.bf16.msra.mxu0 %v5688_v33 }
 0x259   : > { %5438 = vmatpush3.bf16.msra.mxu1 %v5688_v33  ;;  %5135 = vmatprep.subr.bf16.mxu0 %v5689_v34 }
 0x25a   : > { %5431 = vmatprep.subr.bf16.mxu1 %v5689_v34 }
 0x25c   : > { %5136 = vmatpush3.bf16.msra.mxu0 %v5690_v35 }
 0x25d   : > { %5439 = vmatpush3.bf16.msra.mxu1 %v5690_v35  ;;  %5137 = vmatprep.subr.bf16.mxu0 %v5691_v36 }
 0x25e   : > { %5432 = vmatprep.subr.bf16.mxu1 %v5691_v36 }
 0x260   : > { %5138 = vmatpush3.bf16.msra.mxu0 %v5692_v37 }
 0x261   : > { %5440 = vmatpush3.bf16.msra.mxu1 %v5692_v37  ;;  %5139 = vmatprep.subr.bf16.mxu0 %v5693_v38 }
 0x262   : > { %5433 = vmatprep.subr.bf16.mxu1 %v5693_v38 }
 0x264   : > { %5140 = vmatpush3.bf16.msra.mxu0 %v5694_v39 }
 0x265   : > { %5441 = vmatpush3.bf16.msra.mxu1 %v5694_v39 }
 0x2d3   : > { %v1150_v40 = vpop.xlane.xlu1 %1149 }
 0x2d4   : > { %v1144_v41 = vpop.xlane.xlu0 %1143  ;;  %v1176_v51 = vmul.f32 0.0052083335, %v1150_v40 }
 0x2d5   : > { %v1174_v44 = vmul.f32 0.0052083335, %v1144_v41 }
 0x2d6   : > { %v1184_v63 = vmul.f32 %v1176_v51, %v1176_v51  ;;  %v1194_v35 = vsub.f32 %v7627_v0, %v1176_v51 }
 0x2d7   : > { %v1153_v42 = vpop.xlane.xlu1 %1152  ;;  %v1182_v52 = vmul.f32 %v1174_v44, %v1174_v44  ;;  %v1190_v23 = vsub.f32 %v7633_v2, %v1174_v44  ;;  %v1191_v24 = vsub.f32 %v7638_v4, %v1174_v44  ;;  %v1195_v2 = vsub.f32 %v7630_v1, %v1176_v51 }
 0x2d8   : > { %v1147_v43 = vpop.xlane.xlu0 %1146  ;;  %v1177_v47 = vmul.f32 0.0052083335, %v1153_v42 }
 0x2d9   : > { %v1175_v45 = vmul.f32 0.0052083335, %v1147_v43 }
 0x2da   : > { %v1185_v59 = vmul.f32 %v1177_v47, %v1177_v47  ;;  %v1196_v32 = vsub.f32 %v7641_v5, %v1177_v47 }
 0x2db   : > { %v1167_v46 = vpop.xlane.xlu1 %1166  ;;  %v1183_v49 = vmul.f32 %v1175_v45, %v1175_v45  ;;  %v1192_v18 = vsub.f32 %v7649_v8, %v1175_v45  ;;  %v1193_v19 = vsub.f32 %v7652_v9, %v1175_v45  ;;  %v1197_v8 = vsub.f32 %v7644_v6, %v1177_v47 }
 0x2dc   : > { %v1179_v48 = vmul.f32 0.0052083335, %v1167_v46  ;;  %v1164_v50 = vpop.xlane.xlu0 %1163 }
 0x2dd   : > { %v1178_v53 = vmul.f32 0.0052083335, %v1164_v50 }
 0x2de   : > { %v1187_v54 = vsub.f32 %v1179_v48, %v1183_v49 }
 0x2df   : > { %v1186_v55 = vsub.f32 %v1178_v53, %v1182_v52  ;;  %v1173_v56 = vpop.xlane.xlu1 %1172 }
 0x2e0   : > { %v1199_v58 = vadd.f32 1e-05, %v1187_v54  ;;  %v1181_v60 = vmul.f32 0.0052083335, %v1173_v56  ;;  %v1170_v61 = vpop.xlane.xlu0 %1169  ;;  %v4968_v56 = vld [vmem:[%s8794_s6] ss:$0 sm:$0xff] }
 0x2e1   : > { %v1198_v62 = vadd.f32 1e-05, %v1186_v55  ;;  %v1180_v3 = vmul.f32 0.0052083335, %v1170_v61 }
 0x2e2   : > { %5695 = vrsqrt.f32 %v1199_v58  ;;  %v1189_v7 = vsub.f32 %v1181_v60, %v1185_v59 }
 0x2e3   : > { %5697 = vrsqrt.f32 %v1198_v62  ;;  %v1188_v10 = vsub.f32 %v1180_v3, %v1184_v63 }
 0x2e4   : > { %v1201_v12 = vadd.f32 1e-05, %v1189_v7 }
 0x2e5   : > { %v1200_v13 = vadd.f32 1e-05, %v1188_v10 }
 0x2e6   : > { %5699 = vrsqrt.f32 %v1201_v12 }
 0x2e7   : > { %5701 = vrsqrt.f32 %v1200_v13 }
 0x2ec   : > { %v5696_v22 = vpop.eup %5695 }
 0x2ed   : > { %v5698_v25 = vpop.eup %5697  ;;  %v1209_v26 = vmul.f32 %v5696_v22, %v1193_v19  ;;  %v1208_v29 = vmul.f32 %v5696_v22, %v1192_v18 }
 0x2ee   : > { %v1207_v30 = vmul.f32 %v5698_v25, %v1191_v24  ;;  %v1206_v31 = vmul.f32 %v5698_v25, %v1190_v23 }
 0x2ef   : > { %v1228_v33 = vmul.f32 %v1222_v21, %v1209_v26  ;;  %v1227_v9 = vmul.f32 %v1218_v20, %v1208_v29 }
 0x2f0   : > { %v5700_v34 = vpop.eup %5699  ;;  %v1226_v36 = vmul.f32 %v1222_v21, %v1207_v30  ;;  %v1225_v4 = vmul.f32 %v1218_v20, %v1206_v31 }
 0x2f1   : > { %v5702_v37 = vpop.eup %5701  ;;  %v1247_v38 = vadd.f32 %v1241_v28, %v1228_v33  ;;  %v1246_v39 = vadd.f32 %v1237_v27, %v1227_v9  ;;  %v1213_v40 = vmul.f32 %v5700_v34, %v1197_v8  ;;  %v1212_v41 = vmul.f32 %v5700_v34, %v1196_v32 }
 0x2f2   : > { %v1245_v42 = vadd.f32 %v1241_v28, %v1226_v36  ;;  %v1244_v43 = vadd.f32 %v1237_v27, %v1225_v4  ;;  %v1211_v44 = vmul.f32 %v5702_v37, %v1195_v2  ;;  %v1210_v5 = vmul.f32 %v5702_v37, %v1194_v35 }
 0x2f3   : > { %v1232_v45 = vmul.f32 %v1222_v21, %v1213_v40  ;;  %v1231_v6 = vmul.f32 %v1218_v20, %v1212_v41  ;;  %v4985_v40 = vld [vmem:[#allocation11] ss:$0 sm:$0xff] }
 0x2f4   : > { %v1253_v46 = vpack.c.bf16 %v1247_v38, %v1245_v42  ;;  %v1252_v47 = vpack.c.bf16 %v1246_v39, %v1244_v43  ;;  %v1230_v48 = vmul.f32 %v1222_v21, %v1211_v44  ;;  %v1229_v49 = vmul.f32 %v1218_v20, %v1210_v5  ;;  %v4986_v43 = vld [vmem:[#allocation12] ss:$0 sm:$0xff] }
 0x2f5   : > { %v1251_v0 = vadd.f32 %v1241_v28, %v1232_v45  ;;  %v1250_v50 = vadd.f32 %v1237_v27, %v1231_v6  ;;  %v1507_v6 = vld [vmem:[#allocation6] sm:$0xff] }
 0x2f6   : > { %1423 = vmatprep.mubr.bf16.mxu0 %v1253_v46  ;;  %v1249_v1 = vadd.f32 %v1241_v28, %v1230_v48  ;;  %v1248_v51 = vadd.f32 %v1237_v27, %v1229_v49 }
 0x2f7   : > { %1424 = vmatmul.mubr.bf16.vlgmr.msra.gmra.mrb[0].mxu0 %v1252_v47 }
 0x2f8   : > { %v1255_v52 = vpack.c.bf16 %v1251_v0, %v1249_v1  ;;  %v1254_v53 = vpack.c.bf16 %v1250_v50, %v1248_v51  ;;  %v1508_v0 = vld [vmem:[#allocation6 + $0x8] sm:$0xff] }
 0x2fa   : > { %1431 = vmatprep.mubr.bf16.mxu1 %v1255_v52 }
 0x2fb   : > { %1432 = vmatmul.mubr.bf16.vlgmr.msra.gmra.mrb[0].mxu1 %v1254_v53 }
 0x3ca   : > { %v5141_v54 = vpop.f32.mrb[0].mxu0 }
 0x3cb   : > { %v5142_v55 = vpop.f32.mrb[1].mxu0 }
 0x3cc   : > { %v5143_v57 = vadd.f32 %v5142_v55, %v5141_v54  ;;  %v5144_v58 = vpop.f32.mrb[2].mxu0 }
 0x3cd   : > { %v5145_v59 = vpop.f32.mrb[3].mxu0 }
 0x3ce   : > { %v5146_v60 = vadd.f32 %v5145_v59, %v5144_v58  ;;  %v5147_v61 = vpop.f32.mrb[0].mxu1  ;;  %v1426_v62 = vadd.f32 %v5143_v57, %v4968_v56 }
 0x3cf   : > { %v5148_v63 = vpop.f32.mrb[1].mxu1 }
 0x3d0   : > { %v5149_v3 = vadd.f32 %v5148_v63, %v5147_v61  ;;  %1442 = vadd.xlane.f32.xlu0 %v1426_v62  ;;  %v5150_v7 = vpop.f32.mrb[2].mxu1  ;;  %v1429_v10 = vadd.f32 %v5146_v60, %v4968_v56 }
 0x3d1   : > { %v5151_v11 = vpop.f32.mrb[3].mxu1 }
 0x3d2   : > { %v5152_v12 = vadd.f32 %v5151_v11, %v5150_v7  ;;  %1444 = vadd.xlane.f32.xlu1 %v1429_v10  ;;  %v1434_v13 = vadd.f32 %v5149_v3, %v4968_v56 }
 0x3d4   : > { %1446 = vadd.xlane.f32.xlu0 %v1434_v13  ;;  %v1437_v14 = vadd.f32 %v5152_v12, %v4968_v56 }
 0x3d6   : > { %1448 = vadd.xlane.f32.xlu1 %v1437_v14 }
 0x45d   : > { %v1443_v15 = vpop.xlane.xlu0 %1442 }
 0x45e   : > { %v1451_v16 = vmul.f32 0.0078125, %v1443_v15 }
 0x45f   : > { %v1445_v17 = vpop.xlane.xlu1 %1444 }
 0x460   : > { %v1455_v18 = vsub.f32 %v1426_v62, %v1451_v16  ;;  %v1452_v19 = vmul.f32 0.0078125, %v1445_v17 }
 0x461   : > { %v1447_v20 = vpop.xlane.xlu0 %1446 }
 0x462   : > { %v1456_v21 = vsub.f32 %v1429_v10, %v1452_v19  ;;  %v1453_v22 = vmul.f32 0.0078125, %v1447_v20  ;;  %v1459_v23 = vmul.f32 %v1455_v18, %v1455_v18 }
 0x463   : > { %v1449_v24 = vpop.xlane.xlu1 %1448 }
 0x464   : > { %v1457_v25 = vsub.f32 %v1434_v13, %v1453_v22  ;;  %v1454_v26 = vmul.f32 0.0078125, %v1449_v24  ;;  %1463 = vadd.xlane.f32.xlu0 %v1459_v23  ;;  %v1460_v27 = vmul.f32 %v1456_v21, %v1456_v21 }
 0x466   : > { %v1458_v28 = vsub.f32 %v1437_v14, %v1454_v26  ;;  %1465 = vadd.xlane.f32.xlu1 %v1460_v27  ;;  %v1461_v29 = vmul.f32 %v1457_v25, %v1457_v25 }
 0x468   : > { %1467 = vadd.xlane.f32.xlu0 %v1461_v29  ;;  %v1462_v30 = vmul.f32 %v1458_v28, %v1458_v28 }
 0x46a   : > { %1469 = vadd.xlane.f32.xlu1 %v1462_v30 }
 0x4f1   : > { %v1464_v31 = vpop.xlane.xlu0 %1463 }
 0x4f2   : > { %v1471_v32 = vmul.f32 0.0078125, %v1464_v31 }
 0x4f3   : > { %v1466_v8 = vpop.xlane.xlu1 %1465 }
 0x4f4   : > { %v1475_v33 = vadd.f32 1e-05, %v1471_v32  ;;  %v1472_v9 = vmul.f32 0.0078125, %v1466_v8 }
 0x4f5   : > { %v1468_v34 = vpop.xlane.xlu0 %1467 }
 0x4f6   : > { %5703 = vrsqrt.f32 %v1475_v33  ;;  %v1476_v35 = vadd.f32 1e-05, %v1472_v9  ;;  %v1473_v2 = vmul.f32 0.0078125, %v1468_v34 }
 0x4f7   : > { %v1470_v36 = vpop.xlane.xlu1 %1469 }
 0x4f8   : > { %5705 = vrsqrt.f32 %v1476_v35  ;;  %v1477_v4 = vadd.f32 1e-05, %v1473_v2  ;;  %v1474_v37 = vmul.f32 0.0078125, %v1470_v36 }
 0x4fa   : > { %5707 = vrsqrt.f32 %v1477_v4  ;;  %v1478_v38 = vadd.f32 1e-05, %v1474_v37 }
 0x4fc   : > { %5709 = vrsqrt.f32 %v1478_v38 }
 0x500   : > { %v5704_v39 = vpop.eup %5703 }
 0x501   : > { %v1483_v41 = vmul.f32 %v5704_v39, %v1455_v18 }
 0x502   : > { %v5706_v42 = vpop.eup %5705 }
 0x503   : > { %v1493_v44 = vmul.f32 %v4985_v40, %v1483_v41  ;;  %v1484_v5 = vmul.f32 %v5706_v42, %v1456_v21 }
 0x504   : > { %v5708_v45 = vpop.eup %5707 }
 0x505   : > { %v1503_v46 = vadd.f32 %v4986_v43, %v1493_v44  ;;  %v1494_v47 = vmul.f32 %v4985_v40, %v1484_v5  ;;  %v1485_v48 = vmul.f32 %v5708_v45, %v1457_v25 }
 0x506   : > { %v5710_v49 = vpop.eup %5709 }
 0x507   : > { %v1509_v50 = vadd.f32 %v1507_v6, %v1503_v46  ;;  %v1504_v1 = vadd.f32 %v4986_v43, %v1494_v47  ;;  %v1495_v51 = vmul.f32 %v4985_v40, %v1485_v48  ;;  %v1486_v52 = vmul.f32 %v5710_v49, %v1458_v28 }
 0x509   : > { %1513 = vst [vmem:[#allocation2] sm:$0xff] %v1509_v50  ;;  %v1510_v53 = vadd.f32 %v1508_v0, %v1504_v1  ;;  %v1505_v54 = vadd.f32 %v4986_v43, %v1495_v51  ;;  %v1496_v55 = vmul.f32 %v4985_v40, %v1486_v52 }
 0x50b   : > { %1514 = vst [vmem:[#allocation2 + $0x8] sm:$0xff] %v1510_v53  ;;  %v1511_v56 = vadd.f32 %v1507_v6, %v1505_v54  ;;  %v1506_v57 = vadd.f32 %v4986_v43, %v1496_v55 }
 0x50d   : > { %1515 = vst [vmem:[#allocation2 + $0x10] sm:$0xff] %v1511_v56  ;;  %v1512_v58 = vadd.f32 %v1508_v0, %v1506_v57 }
 0x50f   : > { %1516 = vst [vmem:[#allocation2 + $0x18] sm:$0xff] %v1512_v58 }
 0x510 PF: > { %v1517_v59 = vld [vmem:[#allocation2] sm:$0xff]  ;;  %v5837_v19 = vld [vmem:[%s7596_s8 + $0x34] ss:$12 sps:$4 sm:$0xff]   ;;  %v5839_v20 = vld [vmem:[%s7596_s8 + $0x30] ss:$12 sps:$4 sm:$0xff]   ;;  %v6800_v26 = vmov 0  }
 0x511   : > { %1523 = vadd.xlane.f32.xlu0 %v1517_v59  ;;  %v5831_v62 = vld [vmem:[%s7596_s8 + $0x4] ss:$12 sps:$4 sm:$0xff]   ;;  %v5833_v63 = vld [vmem:[%s7596_s8] ss:$12 sps:$4 sm:$0xff]   ;;  %v5834_v3 = vld [vmem:[%s7596_s8 + $0x1c] ss:$12 sps:$4 sm:$0xff]   ;;  %1782 = vmatprep.mubr.bf16.mxu0 %v6800_v26 }
 0x512   : > { %v1518_v60 = vld [vmem:[#allocation2 + $0x8] sm:$0xff]  ;;  %1750 = vmatprep.subr.bf16.mxu0 %v5831_v62  ;;  %v5836_v18 = vld [vmem:[%s7596_s8 + $0x18] ss:$12 sps:$4 sm:$0xff]   ;;  %v5846_v25 = vld [vmem:[%s7596_s8 + $0x7c] ss:$12 sps:$4 sm:$0xff]   ;;  %v6801_v57 = vmov 0.0  }
 0x513   : > { %1751 = vmatpush1.bf16.msra.mxu0 %v5833_v63  ;;  %v5840_v21 = vld [vmem:[%s7596_s8 + $0x4c] ss:$12 sps:$4 sm:$0xff]   ;;  %v5842_v22 = vld [vmem:[%s7596_s8 + $0x48] ss:$12 sps:$4 sm:$0xff]   ;;  %v5843_v23 = vld [vmem:[%s7596_s8 + $0x64] ss:$12 sps:$4 sm:$0xff]  }
 0x514   : > { %v1519_v61 = vld [vmem:[#allocation2 + $0x10] sm:$0xff]  ;;  %1752 = vmatprep.subr.bf16.mxu0 %v5834_v3  ;;  %v5845_v24 = vld [vmem:[%s7596_s8 + $0x60] ss:$12 sps:$4 sm:$0xff]   ;;  %v4987_v6 = vld [vmem:[%s941_s1] ss:$0 sm:$0xff]  ;;  %vm6802_vm0 = vmmov 0  }
 0x515   : > { %1525 = vadd.xlane.f32.xlu0 %v1518_v60  ;;  %v5848_v27 = vld [vmem:[%s7596_s8 + $0x78] ss:$12 sps:$4 sm:$0xff]   ;;  %v5849_v28 = vld [vmem:[%s7596_s8 + $0x94] ss:$12 sps:$4 sm:$0xff]   ;;  %v5851_v30 = vld [vmem:[%s7596_s8 + $0x90] ss:$12 sps:$4 sm:$0xff]  }
 0x516   : > { %v1520_v17 = vld [vmem:[#allocation2 + $0x18] sm:$0xff]  ;;  %v5852_v31 = vld [vmem:[%s7596_s8 + $0xac] ss:$12 sps:$4 sm:$0xff]   ;;  %v5854_v8 = vld [vmem:[%s7596_s8 + $0xa8] ss:$12 sps:$4 sm:$0xff]   ;;  %vm1920_vm1 = vcmask 261120  }
 0x517   : > { %1753 = vmatpush1.bf16.msra.mxu0 %v5836_v18  ;;  %v5855_v34 = vld [vmem:[%s7596_s8 + $0x8] ss:$12 sps:$4 sm:$0xff]   ;;  %v5856_v35 = vld [vmem:[%s7596_s8 + $0x20] ss:$12 sps:$4 sm:$0xff]   ;;  %v5857_v2 = vld [vmem:[%s7596_s8 + $0x38] ss:$12 sps:$4 sm:$0xff]  }
 0x518   : > { %1754 = vmatprep.subr.bf16.mxu0 %v5837_v19  ;;  %5270 = vmatprep.subr.bf16.mxu1 %v5855_v34  ;;  %v4988_v49 = vld [vmem:[%s949_s0] ss:$0 sm:$0xff]  ;;  %v5858_v52 = vld [vmem:[%s7596_s8 + $0x50] ss:$12 sps:$4 sm:$0xff]   ;;  %v5859_v53 = vld [vmem:[%s7596_s8 + $0x68] ss:$12 sps:$4 sm:$0xff]  }
 0x519   : > { %1527 = vadd.xlane.f32.xlu0 %v1519_v61  ;;  %5271 = vmatpush3.bf16.msra.mxu1 %v5855_v34  ;;  %v5860_v54 = vld [vmem:[%s7596_s8 + $0x80] ss:$12 sps:$4 sm:$0xff]   ;;  %v5861_v55 = vld [vmem:[%s7596_s8 + $0x98] ss:$12 sps:$4 sm:$0xff]   ;;  %v5862_v56 = vld [vmem:[%s7596_s8 + $0xb0] ss:$12 sps:$4 sm:$0xff]  }
 0x51a   : > { %5272 = vmatprep.subr.bf16.mxu1 %v5856_v35  ;;  %s6803_s1 = smov 96   ;;  %s6804_s0 = smov 64   ;;  %vm2109_vm2 = vcmask 130048   ;;  %vm2408_vm3 = vcmask 523264   ;;  %vm2411_vm4 = vcmask 785408  }
 0x51b   : > { %1755 = vmatpush1.bf16.msra.mxu0 %v5839_v20  ;;  %s6805_s8 = smov 32   ;;  %s8807_s20 = sld [smem:[#allocation39_spill]] }
 0x51c   : > { %1756 = vmatprep.subr.bf16.mxu0 %v5840_v21 }
 0x51d   : > { %5273 = vmatpush3.bf16.msra.mxu1 %v5856_v35 }
 0x51e   : > { %5274 = vmatprep.subr.bf16.mxu1 %v5857_v2 }
 0x51f   : > { %1757 = vmatpush1.bf16.msra.mxu0 %v5842_v22 }
 0x520   : > { %1758 = vmatprep.subr.bf16.mxu0 %v5843_v23 }
 0x521   : > { %5275 = vmatpush3.bf16.msra.mxu1 %v5857_v2  ;;  %p5104_p12 = scmp.ne.s32.totalorder %s8807_s20, 1 }
 0x522   : > { %5276 = vmatprep.subr.bf16.mxu1 %v5858_v52  ;;  %s8809_s20 = sld [smem:[#allocation75_spill]] (!%p5104_p12) }
 0x523   : > { %1759 = vmatpush1.bf16.msra.mxu0 %v5845_v24 }
 0x524   : > { %1760 = vmatprep.subr.bf16.mxu0 %v5846_v25 }
 0x525   : > { %5277 = vmatpush3.bf16.msra.mxu1 %v5858_v52 }
 0x526   : > { %5278 = vmatprep.subr.bf16.mxu1 %v5859_v53 }
 0x527   : > { %1761 = vmatpush1.bf16.msra.mxu0 %v5848_v27 }
 0x528   : > { %1762 = vmatprep.subr.bf16.mxu0 %v5849_v28 }
 0x529   : > { %5279 = vmatpush3.bf16.msra.mxu1 %v5859_v53 }
 0x52a   : > { %5280 = vmatprep.subr.bf16.mxu1 %v5860_v54 }
 0x52b   : > { %1763 = vmatpush1.bf16.msra.mxu0 %v5851_v30 }
 0x52c   : > { %1764 = vmatprep.subr.bf16.mxu0 %v5852_v31 }
 0x52d   : > { %5281 = vmatpush3.bf16.msra.mxu1 %v5860_v54 }
 0x52e   : > { %5282 = vmatprep.subr.bf16.mxu1 %v5861_v55 }
 0x52f   : > { %1765 = vmatpush1.bf16.msra.mxu0 %v5854_v8 }
 0x530   : > { %5290 = vmatprep.subr.bf16.mxu0 %v6801_v57 }
 0x531   : > { %5283 = vmatpush3.bf16.msra.mxu1 %v5861_v55 }
 0x532   : > { %5284 = vmatprep.subr.bf16.mxu1 %v5862_v56 }
 0x535   : > { %5285 = vmatpush3.bf16.msra.mxu1 %v5862_v56 }
 0x536   : > { %5302 = vmatprep.subr.bf16.mxu1 %v6801_v57 }
 0x59e   : > { %v1524_v7 = vpop.xlane.xlu0 %1523 }
 0x59f   : > { %v1532_v10 = vmul.f32 0.0078125, %v1524_v7 }
 0x5a1   : > { %v7691_v11 = vsub.f32 %v1517_v59, %v1532_v10 }
 0x5a2   : > { %v1526_v12 = vpop.xlane.xlu0 %1525 }
 0x5a3   : > { %v1533_v13 = vmul.f32 0.0078125, %v1526_v12  ;;  %v1540_v14 = vmul.f32 %v7691_v11, %v7691_v11 }
 0x5a5   : > { %v7695_v15 = vsub.f32 %v1518_v60, %v1533_v13  ;;  %1544 = vadd.xlane.f32.xlu1 %v1540_v14 }
 0x5a6   : > { %v1528_v29 = vpop.xlane.xlu0 %1527 }
 0x5a7   : > { %v1541_v16 = vmul.f32 %v7695_v15, %v7695_v15  ;;  %v1534_v32 = vmul.f32 0.0078125, %v1528_v29 }
 0x5a9   : > { %1546 = vadd.xlane.f32.xlu1 %v1541_v16  ;;  %v7713_v33 = vsub.f32 %v1519_v61, %v1534_v32 }
 0x5ab   : > { %v1542_v9 = vmul.f32 %v7713_v33, %v7713_v33 }
 0x5ad   : > { %1529 = vadd.xlane.f32.xlu1 %v1520_v17  ;;  %1548 = vadd.xlane.f32.xlu0 %v1542_v9 }
 0x632   : > { %v1545_v36 = vpop.xlane.xlu1 %1544 }
 0x633   : > { %v1552_v4 = vmul.f32 0.0078125, %v1545_v36 }
 0x635   : > { %v1556_v37 = vadd.f32 1e-05, %v1552_v4 }
 0x636   : > { %v1547_v38 = vpop.xlane.xlu1 %1546 }
 0x637   : > { %5951 = vrsqrt.f32 %v1556_v37  ;;  %v1553_v39 = vmul.f32 0.0078125, %v1547_v38 }
 0x639   : > { %v1557_v40 = vadd.f32 1e-05, %v1553_v39 }
 0x63a   : > { %v1530_v41 = vpop.xlane.xlu1 %1529  ;;  %v1549_v58 = vpop.xlane.xlu0 %1548 }
 0x63b   : > { %5953 = vrsqrt.f32 %v1557_v40  ;;  %v1535_v42 = vmul.f32 0.0078125, %v1530_v41  ;;  %v1554_v59 = vmul.f32 0.0078125, %v1549_v58 }
 0x63d   : > { %v1539_v43 = vsub.f32 %v1520_v17, %v1535_v42  ;;  %v1558_v60 = vadd.f32 1e-05, %v1554_v59 }
 0x63f   : > { %v1543_v44 = vmul.f32 %v1539_v43, %v1539_v43  ;;  %5955 = vrsqrt.f32 %v1558_v60 }
 0x641   : > { %v5952_v5 = vpop.eup %5951  ;;  %1550 = vadd.xlane.f32.xlu1 %v1543_v44 }
 0x642   : > { %v1564_v45 = vmul.f32 %v5952_v5, %v7691_v11 }
 0x644   : > { %v1574_v48 = vmul.f32 %v4987_v6, %v1564_v45 }
 0x645   : > { %v5954_v46 = vpop.eup %5953 }
 0x646   : > { %v1565_v47 = vmul.f32 %v5954_v46, %v7695_v15  ;;  %v1584_v50 = vadd.f32 %v4988_v49, %v1574_v48 }
 0x648   : > { %v1575_v0 = vmul.f32 %v4987_v6, %v1565_v47 }
 0x649   : > { %v5956_v3 = vpop.eup %5955 }
 0x64a   : > { %v1585_v1 = vadd.f32 %v4988_v49, %v1575_v0  ;;  %v1566_v7 = vmul.f32 %v5956_v3, %v7713_v33 }
 0x64c   : > { %v1588_v51 = vpack.c.bf16 %v1585_v1, %v1584_v50  ;;  %v1576_v10 = vmul.f32 %v4987_v6, %v1566_v7 }
 0x64e   : > { %1783 = vmatmul.mubr.bf16.vlgmr.msra.gmra.mrb[0].mxu0 %v1588_v51  ;;  %5286 = vmatprep.mubr.bf16.mxu1 %v1588_v51  ;;  %v1586_v14 = vadd.f32 %v4988_v49, %v1576_v10 }
 0x64f   : > { %1792 = vmatprep.mubr.bf16.mxu0 %v6800_v26 }
 0x6ce   : > { %v1551_v61 = vpop.xlane.xlu1 %1550 }
 0x6cf   : > { %v1555_v62 = vmul.f32 0.0078125, %v1551_v61 }
 0x6d1   : > { %v1559_v63 = vadd.f32 1e-05, %v1555_v62 }
 0x6d3   : > { %5957 = vrsqrt.f32 %v1559_v63 }
 0x6dd   : > { %v5958_v11 = vpop.eup %5957 }
 0x6de   : > { %v1567_v12 = vmul.f32 %v5958_v11, %v1539_v43 }
 0x6e0   : > { %v1577_v13 = vmul.f32 %v4987_v6, %v1567_v12 }
 0x6e2   : > { %v1587_v15 = vadd.f32 %v4988_v49, %v1577_v13 }
 0x6e4   : > { %v1589_v16 = vpack.c.bf16 %v1587_v15, %v1586_v14 }
 0x6e6   : > { %1793 = vmatmul.mubr.bf16.gmra.mrb[4].mxu0 %v1589_v16  ;;  %5287 = vmatmul.mubr.bf16.vlgmr.msra.gmra.mrb[0].mxu1 %v1589_v16 }
 0x6e7   : > { %5292 = vmatprep.mubr.msk.bf16.mxu0 %vm6802_vm0, %v6801_v57  ;;  %5304 = vmatprep.mubr.msk.bf16.mxu1 %vm6802_vm0, %v6801_v57 }
 0x721   : > { %v1784_v17 = vpop.f32.mrb[0].mxu0 }
 0x722   : > { %v1786_v18 = vpop.f32.mrb[1].mxu0 }
 0x723   : > { %v1788_v19 = vpop.f32.mrb[2].mxu0 }
 0x724   : > { %v1912_v20 = vpack.c.bf16 %v1788_v19, %v1784_v17  ;;  %v1790_v21 = vpop.f32.mrb[3].mxu0  ;;  %v5716_v22 = vpack.i.bf16 %v1788_v19, %v1784_v17 }
 0x725   : > { %v5711_v23 = vpack.i.bf16 %v1790_v21, %v1786_v18  ;;  %v1916_v24 = vpack.c.bf16 %v1790_v21, %v1786_v18 }
 0x726   : > { %5717 = vrot.lane.b32.xlu1 %v5716_v22, %s6803_s1 }
 0x727   : > { %5712 = vrot.lane.b32.xlu0 %v5711_v23, %s6803_s1  ;;  %v1925_v25 = vsel %vm1920_vm1, %v1916_v24, 0 }
 0x728   : > { %5291 = vmatpush3.bf16.xpose.msra.mxu0 %v1925_v25 }
 0x729   : > { %5296 = vmatprep.subr.bf16.mxu0 %v6801_v57 }
 0x72a   : > { %5722 = vrot.lane.b32.xlu1 %v5711_v23, %s6804_s0 }
 0x72b   : > { %5732 = vrot.lane.b32.xlu0 %v5716_v22, %s6804_s0 }
 0x72e   : > { %5727 = vrot.lane.b32.xlu1 %v5711_v23, %s6805_s8 }
 0x72f   : > { %5293 = vmatmul.mubr.msk.bf16.vlgmr.msra.gmra.mrb[8].mxu0 %vm1920_vm1, %v1912_v20 }
 0x730   : > { %5298 = vmatprep.mubr.msk.bf16.mxu0 %vm6802_vm0, %v6801_v57 }
 0x732   : > { %5737 = vrot.lane.b32.xlu1 %v5716_v22, %s6805_s8 }
 0x798   : > { %v5718_v27 = vpop.permute.xlu1 %5717 }
 0x799   : > { %v5713_v28 = vpop.permute.xlu0 %5712  ;;  %v5720_v35 = vunpack.i.h.bf16 %v5718_v27  ;;  %v5719_v2 = vunpack.i.l.bf16 %v5718_v27 }
 0x79a   : > { %v5715_v29 = vunpack.i.h.bf16 %v5713_v28  ;;  %v5714_v30 = vunpack.i.l.bf16 %v5713_v28 }
 0x79b   : > { %v1913_v43 = vpack.c.bf16 %v5720_v35, %v5719_v2 }
 0x79c   : > { %v1917_v31 = vpack.c.bf16 %v5715_v29, %v5714_v30  ;;  %v5723_v32 = vpop.permute.xlu1 %5722 }
 0x79d   : > { %v5725_v8 = vunpack.i.h.bf16 %v5723_v32  ;;  %v5724_v33 = vunpack.i.l.bf16 %v5723_v32  ;;  %v5733_v36 = vpop.permute.xlu0 %5732 }
 0x79e   : > { %v1972_v9 = vsel %vm1920_vm1, %v1917_v31, 0  ;;  %v5735_v40 = vunpack.i.h.bf16 %v5733_v36  ;;  %v5734_v41 = vunpack.i.l.bf16 %v5733_v36 }
 0x79f   : > { %v1918_v34 = vpack.c.bf16 %v5725_v8, %v5724_v33  ;;  %5297 = vmatpush3.bf16.xpose.msra.mxu0 %v1972_v9 }
 0x7a0   : > { %v5728_v4 = vpop.permute.xlu1 %5727  ;;  %5308 = vmatprep.subr.bf16.mxu0 %v6801_v57  ;;  %v1914_v45 = vpack.c.bf16 %v5735_v40, %v5734_v41 }
 0x7a1   : > { %v5730_v37 = vunpack.i.h.bf16 %v5728_v4  ;;  %v5729_v38 = vunpack.i.l.bf16 %v5728_v4  ;;  %v2019_v39 = vsel %vm1920_vm1, %v1918_v34, 0 }
 0x7a2   : > { %5303 = vmatpush3.bf16.xpose.msra.mxu1 %v2019_v39 }
 0x7a3   : > { %v1919_v42 = vpack.c.bf16 %v5730_v37, %v5729_v38  ;;  %5314 = vmatprep.subr.bf16.mxu1 %v6801_v57 }
 0x7a4   : > { %v5738_v44 = vpop.permute.xlu1 %5737 }
 0x7a5   : > { %v2066_v5 = vsel %vm1920_vm1, %v1919_v42, 0  ;;  %v5740_v6 = vunpack.i.h.bf16 %v5738_v44  ;;  %v5739_v46 = vunpack.i.l.bf16 %v5738_v44 }
 0x7a6   : > { %5299 = vmatmul.mubr.msk.bf16.vlgmr.msra.gmra.mrb[12].mxu0 %vm1920_vm1, %v1913_v43 }
 0x7a7   : > { %5309 = vmatpush3.bf16.xpose.msra.mxu0 %v2066_v5  ;;  %5310 = vmatprep.mubr.msk.bf16.mxu0 %vm6802_vm0, %v6801_v57  ;;  %v1915_v47 = vpack.c.bf16 %v5740_v6, %v5739_v46 }
 0x7a8   : > { %5320 = vmatprep.subr.bf16.mxu0 %v6801_v57 }
 0x7a9   : > { %5305 = vmatmul.mubr.msk.bf16.vlgmr.msra.gmra.mrb[4].mxu1 %vm1920_vm1, %v1914_v45 }
 0x7aa   : > { %5316 = vmatprep.mubr.msk.bf16.mxu1 %vm6802_vm0, %v6801_v57 }
 0x7ae   : > { %5311 = vmatmul.mubr.msk.bf16.vlgmr.msra.gmra.mrb[16].mxu0 %vm1920_vm1, %v1915_v47 }
 0x7af   : > { %5322 = vmatprep.mubr.msk.bf16.mxu0 %vm6802_vm0, %v6801_v57 }
 0x7b9   : > { %v7765_v48 = vpop.f32.mrb[4].mxu0  ;;  %v7767_v49 = vpop.f32.mrb[0].mxu1 }
 0x7ba   : > { %v7769_v0 = vpop.f32.mrb[5].mxu0  ;;  %v1837_v50 = vpop.f32.mrb[1].mxu1 }
 0x7bb   : > { %v7771_v1 = vpop.f32.mrb[6].mxu0  ;;  %v7773_v51 = vpop.f32.mrb[2].mxu1 }
 0x7bc   : > { %v2474_v52 = vpack.c.bf16 %v7771_v1, %v7765_v48  ;;  %v2762_v53 = vpack.c.bf16 %v7773_v51, %v7767_v49  ;;  %v7779_v54 = vpop.f32.mrb[7].mxu0  ;;  %v1840_v55 = vpop.f32.mrb[3].mxu1  ;;  %v7783_v56 = vpack.i.bf16 %v7771_v1, %v7765_v48  ;;  %v7793_v62 = vpack.i.bf16 %v7773_v51, %v7767_v49 }
 0x7bd   : > { %v2202_v58 = vpack.c.bf16 %v1840_v55, %v1837_v50  ;;  %v5746_v59 = vpack.i.bf16 %v1840_v55, %v1837_v50  ;;  %v7787_v60 = vpack.i.bf16 %v7779_v54, %v7769_v0  ;;  %v2478_v61 = vpack.c.bf16 %v7779_v54, %v7769_v0 }
 0x7bf   : > { %5315 = vmatpush3.bf16.msra.mxu1 %v2202_v58 }
 0x7c0   : > { %5326 = vmatprep.subr.bf16.mxu1 %v6801_v57 }
 0x802   : > { %v1961_v63 = vpop.f32.mrb[8].mxu0 }
 0x803   : > { %v5294_v3 = vpop.f32.mrb[9].mxu0  ;;  %v2110_v7 = vsel %vm2109_vm2, %v1961_v63, -inf }
 0x804   : > { %2111 = vmax.xlane.f32.xlu0 %v2110_v7  ;;  %v1964_v10 = vpop.f32.mrb[10].mxu0 }
 0x805   : > { %v5295_v11 = vpop.f32.mrb[11].mxu0  ;;  %v2113_v12 = vsel %vm2109_vm2, %v1964_v10, -inf }
 0x806   : > { %2114 = vmax.xlane.f32.xlu1 %v2113_v12 }
 0x879   : > { %v2008_v13 = vpop.f32.mrb[12].mxu0 }
 0x87a   : > { %v5300_v14 = vpop.f32.mrb[13].mxu0  ;;  %v2116_v15 = vsel %vm2109_vm2, %v2008_v13, -inf }
 0x87b   : > { %2117 = vmax.xlane.f32.xlu0 %v2116_v15  ;;  %v2011_v16 = vpop.f32.mrb[14].mxu0 }
 0x87c   : > { %v5301_v17 = vpop.f32.mrb[15].mxu0  ;;  %v2055_v18 = vpop.f32.mrb[4].mxu1  ;;  %v2119_v21 = vsel %vm2109_vm2, %v2011_v16, -inf }
 0x87d   : > { %v5306_v19 = vpop.f32.mrb[5].mxu1  ;;  %v2122_v27 = vsel %vm2109_vm2, %v2055_v18, -inf }
 0x87e   : > { %v2058_v20 = vpop.f32.mrb[6].mxu1 }
 0x87f   : > { %v5307_v22 = vpop.f32.mrb[7].mxu1  ;;  %2120 = vmax.xlane.f32.xlu0 %v2119_v21  ;;  %v2125_v23 = vsel %vm2109_vm2, %v2058_v20, -inf }
 0x880   : > { %2126 = vmax.xlane.f32.xlu1 %v2125_v23 }
 0x881   : > { %v2102_v24 = vpop.f32.mrb[16].mxu0 }
 0x882   : > { %v5312_v25 = vpop.f32.mrb[17].mxu0  ;;  %v2128_v31 = vsel %vm2109_vm2, %v2102_v24, -inf }
 0x883   : > { %2123 = vmax.xlane.f32.xlu0 %v2122_v27  ;;  %v2105_v28 = vpop.f32.mrb[18].mxu0 }
 0x884   : > { %v5313_v29 = vpop.f32.mrb[19].mxu0  ;;  %v2131_v30 = vsel %vm2109_vm2, %v2105_v28, -inf }
 0x885   : > { %2132 = vmax.xlane.f32.xlu1 %v2131_v30 }
 0x887   : > { %2129 = vmax.xlane.f32.xlu0 %v2128_v31 }
 0x891   : > { %v2112_v32 = vpop.xlane.xlu0 %2111 }
 0x892   : > { %v2134_v8 = vsub.f32 %v1961_v63, %v2112_v32 }
 0x893   : > { %v2115_v33 = vpop.xlane.xlu1 %2114 }
 0x894   : > { %v2142_v9 = vmul.f32 1.442695, %v2134_v8  ;;  %v2135_v34 = vsub.f32 %v1964_v10, %v2115_v33 }
 0x896   : > { %5747 = vrot.lane.b32.xlu1 %v5746_v59, %s6804_s0  ;;  %5959 = vpow2.f32 %v2142_v9  ;;  %v2144_v35 = vmul.f32 1.442695, %v2135_v34 }
 0x898   : > { %5961 = vpow2.f32 %v2144_v35 }
 0x89a   : > { %5752 = vrot.lane.b32.xlu1 %v5746_v59, %s6805_s8 }
 0x89d   : > { %5742 = vrot.lane.b32.xlu0 %v5746_v59, %s6803_s1 }
 0x89e   : > { %5757 = vrot.lane.b32.xlu1 %v7787_v60, %s6803_s1 }
 0x8a0   : > { %v7809_v2 = vpop.eup %5959 }
 0x8a1   : > { %v2158_v36 = vsel %vm2109_vm2, %v7809_v2, 0.0 }
 0x8a2   : > { %v7813_v4 = vpop.eup %5961 }
 0x8a3   : > { %v2161_v37 = vsel %vm2109_vm2, %v7813_v4, 0.0 }
 0x8bc   : > { %2159 = vadd.xlane.f32.xlu0 %v2158_v36 }
 0x8c2   : > { %2162 = vadd.xlane.f32.xlu1 %v2161_v37 }
 0x908   : > { %v2118_v38 = vpop.xlane.xlu0 %2117 }
 0x909   : > { %v2136_v39 = vsub.f32 %v2008_v13, %v2118_v38 }
 0x90b   : > { %v2146_v40 = vmul.f32 1.442695, %v2136_v39 }
 0x90c   : > { %v2121_v41 = vpop.xlane.xlu0 %2120 }
 0x90d   : > { %5963 = vpow2.f32 %v2146_v40  ;;  %v2137_v42 = vsub.f32 %v2011_v16, %v2121_v41  ;;  %v2127_v43 = vpop.xlane.xlu1 %2126 }
 0x90e   : > { %v2139_v44 = vsub.f32 %v2058_v20, %v2127_v43 }
 0x90f   : > { %v2148_v5 = vmul.f32 1.442695, %v2137_v42 }
 0x910   : > { %v2152_v45 = vmul.f32 1.442695, %v2139_v44  ;;  %v2124_v6 = vpop.xlane.xlu0 %2123 }
 0x911   : > { %5965 = vpow2.f32 %v2148_v5  ;;  %v2138_v46 = vsub.f32 %v2055_v18, %v2124_v6 }
 0x912   : > { %v2133_v47 = vpop.xlane.xlu1 %2132  ;;  %5967 = vpow2.f32 %v2152_v45 }
 0x913   : > { %v2150_v50 = vmul.f32 1.442695, %v2138_v46  ;;  %v2141_v55 = vsub.f32 %v2105_v28, %v2133_v47 }
 0x914   : > { %v2130_v58 = vpop.xlane.xlu0 %2129 }
 0x915   : > { %5969 = vpow2.f32 %v2150_v50  ;;  %v2156_v59 = vmul.f32 1.442695, %v2141_v55  ;;  %v2140_v63 = vsub.f32 %v2102_v24, %v2130_v58 }
 0x916   : > { %v5748_v25 = vpop.permute.xlu1 %5747 }
 0x917   : > { %v7817_v3 = vpop.eup %5963  ;;  %5971 = vpow2.f32 %v2156_v59  ;;  %v2154_v7 = vmul.f32 1.442695, %v2140_v63  ;;  %v5750_v8 = vunpack.i.h.bf16 %v5748_v25  ;;  %v5749_v33 = vunpack.i.l.bf16 %v5748_v25 }
 0x918   : > { %v5743_v10 = vpop.permute.xlu0 %5742  ;;  %v2164_v11 = vsel %vm2109_vm2, %v7817_v3, 0.0 }
 0x919   : > { %5973 = vpow2.f32 %v2154_v7  ;;  %v5745_v12 = vunpack.i.h.bf16 %v5743_v10  ;;  %v5744_v13 = vunpack.i.l.bf16 %v5743_v10  ;;  %2165 = vadd.xlane.f32.xlu0 %v2164_v11  ;;  %v2204_v36 = vpack.c.bf16 %v5750_v8, %v5749_v33 }
 0x91a   : > { %v5753_v27 = vpop.permute.xlu1 %5752  ;;  %v2486_v11 = vsel %vm1920_vm1, %v2478_v61, 0 }
 0x91b   : > { %v5966_v14 = vpop.eup %5965  ;;  %v2203_v15 = vpack.c.bf16 %v5745_v12, %v5744_v13  ;;  %v5755_v41 = vunpack.i.h.bf16 %v5753_v27  ;;  %v5754_v42 = vunpack.i.l.bf16 %v5753_v27 }
 0x91c   : > { %v2167_v16 = vsel %vm2109_vm2, %v5966_v14, 0.0  ;;  %v7822_v17 = vpop.eup %5967 }
 0x91d   : > { %5321 = vmatpush3.bf16.msra.mxu0 %v2203_v15  ;;  %2168 = vadd.xlane.f32.xlu1 %v2167_v16  ;;  %v2173_v20 = vsel %vm2109_vm2, %v7822_v17, 0.0  ;;  %v2205_v6 = vpack.c.bf16 %v5755_v41, %v5754_v42 }
 0x91e   : > { %5332 = vmatprep.subr.bf16.mxu0 %v6801_v57  ;;  %v5758_v28 = vpop.permute.xlu1 %5757 }
 0x91f   : > { %v5970_v18 = vpop.eup %5969  ;;  %v5760_v55 = vunpack.i.h.bf16 %v5758_v28  ;;  %v5759_v58 = vunpack.i.l.bf16 %v5758_v28 }
 0x920   : > { %v2170_v19 = vsel %vm2109_vm2, %v5970_v18, 0.0 }
 0x921   : > { %v7828_v21 = vpop.eup %5971  ;;  %2171 = vadd.xlane.f32.xlu0 %v2170_v19  ;;  %2174 = vadd.xlane.f32.xlu1 %v2173_v20  ;;  %v2479_v12 = vpack.c.bf16 %v5760_v55, %v5759_v58 }
 0x922   : > { %v2179_v24 = vsel %vm2109_vm2, %v7828_v21, 0.0 }
 0x923   : > { %v7830_v22 = vpop.eup %5973  ;;  %v2533_v61 = vsel %vm1920_vm1, %v2479_v12, 0 }
 0x924   : > { %v2176_v23 = vsel %vm2109_vm2, %v7830_v22, 0.0 }
 0x925   : > { %2177 = vadd.xlane.f32.xlu0 %v2176_v23  ;;  %2180 = vadd.xlane.f32.xlu1 %v2179_v24 }
 0x936   : > { %5767 = vrot.lane.b32.xlu1 %v7783_v56, %s6803_s1 }
 0x93a   : > { %5777 = vrot.lane.b32.xlu1 %v7783_v56, %s6804_s0 }
 0x93b   : > { %5762 = vrot.lane.b32.xlu0 %v7787_v60, %s6804_s0 }
 0x93f   : > { %5772 = vrot.lane.b32.xlu0 %v7787_v60, %s6805_s8 }
 0x943   : > { %5782 = vrot.lane.b32.xlu0 %v7783_v56, %s6805_s8 }
 0x949   : > { %v2160_v29 = vpop.xlane.xlu0 %2159 }
 0x94a   : > { %5975 = vrcp.f32 %v2160_v29 }
 0x94f   : > { %v2163_v30 = vpop.xlane.xlu1 %2162 }
 0x950   : > { %5977 = vrcp.f32 %v2163_v30 }
 0x954   : > { %v5976_v31 = vpop.eup %5975 }
 0x955   : > { %v2190_v9 = vmul.f32 %v5976_v31, %v7809_v2 }
 0x95a   : > { %v5978_v32 = vpop.eup %5977 }
 0x95b   : > { %v2191_v34 = vmul.f32 %v5978_v32, %v7813_v4 }
 0x95d   : > { %v2198_v35 = vpack.c.bf16 %v2191_v34, %v2190_v9 }
 0x95f   : > { %5317 = vmatmul.mubr.msk.bf16.vlgmr.msra.gmra.mrb[8].mxu1 %vm2109_vm2, %v2198_v35 }
 0x960   : > { %5327 = vmatpush3.bf16.msra.mxu1 %v2204_v36  ;;  %5328 = vmatprep.mubr.msk.bf16.mxu1 %vm6802_vm0, %v6801_v57 }
 0x961   : > { %5338 = vmatprep.subr.bf16.mxu1 %v6801_v57 }
 0x9a6   : > { %v2166_v56 = vpop.xlane.xlu0 %2165 }
 0x9a7   : > { %5979 = vrcp.f32 %v2166_v56 }
 0x9aa   : > { %v2169_v60 = vpop.xlane.xlu1 %2168 }
 0x9ab   : > { %5981 = vrcp.f32 %v2169_v60 }
 0x9ae   : > { %v2172_v37 = vpop.xlane.xlu0 %2171  ;;  %v2175_v38 = vpop.xlane.xlu1 %2174 }
 0x9af   : > { %5983 = vrcp.f32 %v2172_v37 }
 0x9b0   : > { %5985 = vrcp.f32 %v2175_v38 }
 0x9b1   : > { %v5980_v39 = vpop.eup %5979 }
 0x9b2   : > { %v2178_v2 = vpop.xlane.xlu0 %2177  ;;  %v2181_v4 = vpop.xlane.xlu1 %2180  ;;  %v2192_v43 = vmul.f32 %v5980_v39, %v7817_v3 }
 0x9b3   : > { %5987 = vrcp.f32 %v2178_v2 }
 0x9b4   : > { %5989 = vrcp.f32 %v2181_v4 }
 0x9b5   : > { %v5982_v40 = vpop.eup %5981 }
 0x9b6   : > { %v2193_v44 = vmul.f32 %v5982_v40, %v5966_v14  ;;  %v5763_v50 = vpop.permute.xlu0 %5762  ;;  %v5768_v16 = vpop.permute.xlu1 %5767 }
 0x9b7   : > { %v5765_v14 = vunpack.i.h.bf16 %v5763_v50  ;;  %v5764_v15 = vunpack.i.l.bf16 %v5763_v50  ;;  %v5770_v20 = vunpack.i.h.bf16 %v5768_v16 }
 0x9b8   : > { %v2199_v5 = vpack.c.bf16 %v2193_v44, %v2192_v43 }
 0x9b9   : > { %v5984_v45 = vpop.eup %5983  ;;  %v2480_v19 = vpack.c.bf16 %v5765_v14, %v5764_v15 }
 0x9ba   : > { %v5986_v46 = vpop.eup %5985  ;;  %v2194_v47 = vmul.f32 %v5984_v45, %v5970_v18  ;;  %5323 = vmatmul.mubr.msk.bf16.vlgmr.msra.gmra.mrb[20].mxu0 %vm2109_vm2, %v2199_v5 }
 0x9bb   : > { %v2195_v59 = vmul.f32 %v5986_v46, %v7822_v17  ;;  %5333 = vmatpush3.bf16.msra.mxu0 %v2205_v6  ;;  %5334 = vmatprep.mubr.msk.bf16.mxu0 %vm6802_vm0, %v6801_v57  ;;  %v5773_v17 = vpop.permute.xlu0 %5772  ;;  %v2580_v24 = vsel %vm1920_vm1, %v2480_v19, 0 }
 0x9bc   : > { %5344 = vmatprep.subr.bf16.mxu0 %v6801_v57  ;;  %v5775_v0 = vunpack.i.h.bf16 %v5773_v17  ;;  %v5774_v54 = vunpack.i.l.bf16 %v5773_v17 }
 0x9bd   : > { %v5988_v63 = vpop.eup %5987  ;;  %v2200_v3 = vpack.c.bf16 %v2195_v59, %v2194_v47 }
 0x9be   : > { %v5990_v7 = vpop.eup %5989  ;;  %v2196_v10 = vmul.f32 %v5988_v63, %v7830_v22  ;;  %v5778_v22 = vpop.permute.xlu1 %5777  ;;  %v2481_v23 = vpack.c.bf16 %v5775_v0, %v5774_v54 }
 0x9bf   : > { %v2197_v13 = vmul.f32 %v5990_v7, %v7828_v21  ;;  %5329 = vmatmul.mubr.msk.bf16.vlgmr.msra.gmra.mrb[12].mxu1 %vm2109_vm2, %v2200_v3  ;;  %v5769_v21 = vunpack.i.l.bf16 %v5768_v16  ;;  %v5780_v27 = vunpack.i.h.bf16 %v5778_v22  ;;  %v5779_v28 = vunpack.i.l.bf16 %v5778_v22  ;;  %v5783_v29 = vpop.permute.xlu0 %5782 }
 0x9c0   : > { %5339 = vmatpush3.bf16.xpose.msra.mxu1 %v2486_v11  ;;  %5340 = vmatprep.mubr.msk.bf16.mxu1 %vm6802_vm0, %v6801_v57  ;;  %v2627_v30 = vsel %vm1920_vm1, %v2481_v23, 0  ;;  %v5785_v1 = vunpack.i.h.bf16 %v5783_v29 }
 0x9c1   : > { %v2201_v18 = vpack.c.bf16 %v2197_v13, %v2196_v10  ;;  %5350 = vmatprep.subr.bf16.mxu1 %v6801_v57  ;;  %v2475_v25 = vpack.c.bf16 %v5770_v20, %v5769_v21  ;;  %v2476_v48 = vpack.c.bf16 %v5780_v27, %v5779_v28 }
 0x9c3   : > { %5335 = vmatmul.mubr.msk.bf16.vlgmr.msra.gmra.mrb[24].mxu0 %vm2109_vm2, %v2201_v18 }
 0x9c4   : > { %5345 = vmatpush3.bf16.xpose.msra.mxu0 %v2533_v61  ;;  %5346 = vmatprep.mubr.msk.bf16.mxu0 %vm6802_vm0, %v6801_v57 }
 0x9c5   : > { %5356 = vmatprep.subr.bf16.mxu0 %v6801_v57 }
 0x9c7   : > { %5341 = vmatmul.mubr.msk.bf16.vlgmr.msra.gmra.mrb[16].mxu1 %vm1920_vm1, %v2474_v52  ;;  %v5784_v52 = vunpack.i.l.bf16 %v5783_v29 }
 0x9c8   : > { %5351 = vmatpush3.bf16.xpose.msra.mxu1 %v2580_v24  ;;  %5352 = vmatprep.mubr.msk.bf16.mxu1 %vm6802_vm0, %v6801_v57 }
 0x9c9   : > { %5362 = vmatprep.subr.bf16.mxu1 %v6801_v57  ;;  %v2477_v31 = vpack.c.bf16 %v5785_v1, %v5784_v52 }
 0x9cb   : > { %5347 = vmatmul.mubr.msk.bf16.vlgmr.msra.gmra.mrb[28].mxu0 %vm1920_vm1, %v2475_v25 }
 0x9cc   : > { %5357 = vmatpush3.bf16.xpose.msra.mxu0 %v2627_v30  ;;  %5358 = vmatprep.mubr.msk.bf16.mxu0 %vm6802_vm0, %v6801_v57 }
 0x9cd   : > { %5368 = vmatprep.subr.bf16.mxu0 %v6801_v57 }
 0x9cf   : > { %5353 = vmatmul.mubr.msk.bf16.vlgmr.msra.gmra.mrb[20].mxu1 %vm1920_vm1, %v2476_v48 }
 0x9d0   : > { %5363 = vmatpush3.bf16.msra.mxu1 %v2762_v53  ;;  %5364 = vmatprep.mubr.msk.bf16.mxu1 %vm6802_vm0, %v6801_v57 }
 0x9d1   : > { %5374 = vmatprep.subr.bf16.mxu1 %v6801_v57 }
 0x9d3   : > { %5359 = vmatmul.mubr.msk.bf16.vlgmr.msra.gmra.mrb[32].mxu0 %vm1920_vm1, %v2477_v31 }
 0x9d4   : > { %5370 = vmatprep.mubr.msk.bf16.mxu0 %vm6802_vm0, %v6801_v57 }
 0xa32   : > { %v7896_v32 = vpop.f32.mrb[8].mxu1 }
 0xa33   : > { %v5318_v8 = vpop.f32.mrb[9].mxu1 }
 0xa34   : > { %v7898_v33 = vpop.f32.mrb[10].mxu1 }
 0xa35   : > { %v5319_v9 = vpop.f32.mrb[11].mxu1 }
 0xa8d   : > { %v7900_v34 = vpop.f32.mrb[20].mxu0 }
 0xa8e   : > { %v5324_v49 = vpop.f32.mrb[21].mxu0 }
 0xa8f   : > { %v7902_v51 = vpop.f32.mrb[22].mxu0 }
 0xa90   : > { %v5801_v53 = vpack.i.bf16 %v7902_v51, %v7900_v34  ;;  %v5325_v35 = vpop.f32.mrb[23].mxu0 }
 0xa92   : > { %v7906_v36 = vpop.f32.mrb[12].mxu1 }
 0xa93   : > { %v5330_v56 = vpop.f32.mrb[13].mxu1 }
 0xa94   : > { %v7908_v60 = vpop.f32.mrb[14].mxu1 }
 0xa95   : > { %v5806_v37 = vpack.i.bf16 %v7908_v60, %v7906_v36  ;;  %v5331_v38 = vpop.f32.mrb[15].mxu1 }
 0xa96   : > { %v7912_v2 = vpop.f32.mrb[24].mxu0 }
 0xa97   : > { %v5336_v4 = vpop.f32.mrb[25].mxu0 }
 0xa98   : > { %v7914_v39 = vpop.f32.mrb[26].mxu0 }
 0xa99   : > { %v5811_v40 = vpack.i.bf16 %v7914_v39, %v7912_v2  ;;  %v5337_v41 = vpop.f32.mrb[27].mxu0 }
 0xa9a   : > { %v2522_v42 = vpop.f32.mrb[16].mxu1 }
 0xa9b   : > { %v5342_v43 = vpop.f32.mrb[17].mxu1  ;;  %v2670_v44 = vsel %vm2109_vm2, %v2522_v42, -inf }
 0xa9c   : > { %2671 = vmax.xlane.f32.xlu1 %v2670_v44  ;;  %v2525_v5 = vpop.f32.mrb[18].mxu1 }
 0xa9d   : > { %v5343_v45 = vpop.f32.mrb[19].mxu1  ;;  %v2673_v6 = vsel %vm2109_vm2, %v2525_v5, -inf }
 0xa9e   : > { %2674 = vmax.xlane.f32.xlu0 %v2673_v6  ;;  %v2569_v46 = vpop.f32.mrb[28].mxu0 }
 0xa9f   : > { %v5348_v47 = vpop.f32.mrb[29].mxu0  ;;  %v2676_v58 = vsel %vm2109_vm2, %v2569_v46, -inf }
 0xaa0   : > { %v2572_v50 = vpop.f32.mrb[30].mxu0 }
 0xaa1   : > { %v5349_v55 = vpop.f32.mrb[31].mxu0  ;;  %v2679_v11 = vsel %vm2109_vm2, %v2572_v50, -inf }
 0xaa2   : > { %v2616_v59 = vpop.f32.mrb[20].mxu1  ;;  %2677 = vmax.xlane.f32.xlu0 %v2676_v58 }
 0xaa3   : > { %v5354_v63 = vpop.f32.mrb[21].mxu1  ;;  %v2682_v3 = vsel %vm2109_vm2, %v2616_v59, -inf }
 0xaa4   : > { %2683 = vmax.xlane.f32.xlu1 %v2682_v3  ;;  %v2619_v7 = vpop.f32.mrb[22].mxu1 }
 0xaa5   : > { %v5355_v10 = vpop.f32.mrb[23].mxu1  ;;  %v2685_v17 = vsel %vm2109_vm2, %v2619_v7, -inf }
 0xaa6   : > { %2680 = vmax.xlane.f32.xlu0 %v2679_v11  ;;  %v2663_v12 = vpop.f32.mrb[32].mxu0 }
 0xaa7   : > { %v5360_v13 = vpop.f32.mrb[33].mxu0  ;;  %v2688_v14 = vsel %vm2109_vm2, %v2663_v12, -inf }
 0xaa8   : > { %2689 = vmax.xlane.f32.xlu1 %v2688_v14  ;;  %v2666_v15 = vpop.f32.mrb[34].mxu0 }
 0xaa9   : > { %v5361_v16 = vpop.f32.mrb[35].mxu0  ;;  %v2691_v18 = vsel %vm2109_vm2, %v2666_v15, -inf }
 0xaaa   : > { %2686 = vmax.xlane.f32.xlu0 %v2685_v17 }
 0xaae   : > { %2692 = vmax.xlane.f32.xlu0 %v2691_v18 }
 0xab9   : > { %5787 = vrot.lane.b32.xlu1 %v7793_v62, %s6803_s1 }
 0xb29   : > { %v2672_v19 = vpop.xlane.xlu1 %2671 }
 0xb2a   : > { %v2694_v0 = vsub.f32 %v2522_v42, %v2672_v19 }
 0xb2b   : > { %v2675_v54 = vpop.xlane.xlu0 %2674 }
 0xb2c   : > { %v2702_v61 = vmul.f32 1.442695, %v2694_v0  ;;  %v2695_v20 = vsub.f32 %v2525_v5, %v2675_v54 }
 0xb2e   : > { %5991 = vpow2.f32 %v2702_v61  ;;  %v2704_v21 = vmul.f32 1.442695, %v2695_v20 }
 0xb2f   : > { %v2678_v22 = vpop.xlane.xlu0 %2677 }
 0xb30   : > { %5993 = vpow2.f32 %v2704_v21  ;;  %v2696_v23 = vsub.f32 %v2569_v46, %v2678_v22 }
 0xb31   : > { %v2684_v24 = vpop.xlane.xlu1 %2683 }
 0xb32   : > { %v2706_v25 = vmul.f32 1.442695, %v2696_v23  ;;  %v2698_v27 = vsub.f32 %v2616_v59, %v2684_v24 }
 0xb33   : > { %v2681_v28 = vpop.xlane.xlu0 %2680 }
 0xb34   : > { %5995 = vpow2.f32 %v2706_v25  ;;  %v2710_v29 = vmul.f32 1.442695, %v2698_v27  ;;  %v2697_v30 = vsub.f32 %v2572_v50, %v2681_v28 }
 0xb35   : > { %v2690_v48 = vpop.xlane.xlu1 %2689 }
 0xb36   : > { %5997 = vpow2.f32 %v2710_v29  ;;  %v2708_v1 = vmul.f32 1.442695, %v2697_v30  ;;  %v2700_v52 = vsub.f32 %v2663_v12, %v2690_v48 }
 0xb37   : > { %v2687_v31 = vpop.xlane.xlu0 %2686 }
 0xb38   : > { %v5992_v8 = vpop.eup %5991  ;;  %5999 = vpow2.f32 %v2708_v1  ;;  %v2714_v9 = vmul.f32 1.442695, %v2700_v52  ;;  %v2699_v49 = vsub.f32 %v2619_v7, %v2687_v31 }
 0xb39   : > { %v5788_v35 = vpop.permute.xlu1 %5787  ;;  %v2718_v56 = vsel %vm2109_vm2, %v5992_v8, 0.0 }
 0xb3a   : > { %v5994_v38 = vpop.eup %5993  ;;  %6001 = vpow2.f32 %v2714_v9  ;;  %v2712_v4 = vmul.f32 1.442695, %v2699_v49  ;;  %v5790_v41 = vunpack.i.h.bf16 %v5788_v35  ;;  %v5789_v42 = vunpack.i.l.bf16 %v5788_v35  ;;  %2719 = vadd.xlane.f32.xlu1 %v2718_v56 }
 0xb3b   : > { %v2693_v43 = vpop.xlane.xlu0 %2692  ;;  %v2721_v44 = vsel %vm2109_vm2, %v5994_v38, 0.0 }
 0xb3c   : > { %6003 = vpow2.f32 %v2712_v4  ;;  %v2763_v5 = vpack.c.bf16 %v5790_v41, %v5789_v42  ;;  %v2701_v45 = vsub.f32 %v2666_v15, %v2693_v43  ;;  %2722 = vadd.xlane.f32.xlu0 %v2721_v44 }
 0xb3e   : > { %v5996_v6 = vpop.eup %5995  ;;  %v2716_v46 = vmul.f32 1.442695, %v2701_v45  ;;  %5369 = vmatpush3.bf16.msra.mxu0 %v2763_v5 }
 0xb3f   : > { %v2724_v47 = vsel %vm2109_vm2, %v5996_v6, 0.0  ;;  %5380 = vmatprep.subr.bf16.mxu0 %v6801_v57 }
 0xb40   : > { %v7932_v50 = vpop.eup %5997  ;;  %6005 = vpow2.f32 %v2716_v46  ;;  %2725 = vadd.xlane.f32.xlu1 %v2724_v47 }
 0xb41   : > { %v2730_v58 = vsel %vm2109_vm2, %v7932_v50, 0.0 }
 0xb42   : > { %v6000_v55 = vpop.eup %5999 }
 0xb43   : > { %v2727_v59 = vsel %vm2109_vm2, %v6000_v55, 0.0 }
 0xb44   : > { %v7937_v63 = vpop.eup %6001  ;;  %2731 = vadd.xlane.f32.xlu1 %v2730_v58  ;;  %2728 = vadd.xlane.f32.xlu0 %v2727_v59  ;;  %v5866_v58 = vld [vmem:[%s7598_s10 + $0x18] sm:$0xff]   ;;  %v5867_v59 = vld [vmem:[%s7598_s10 + $0x20] sm:$0xff]  }
 0xb45   : > { %v2736_v7 = vsel %vm2109_vm2, %v7937_v63, 0.0 }
 0xb46   : > { %v6004_v3 = vpop.eup %6003 }
 0xb47   : > { %v2733_v10 = vsel %vm2109_vm2, %v6004_v3, 0.0 }
 0xb48   : > { %2737 = vadd.xlane.f32.xlu1 %v2736_v7  ;;  %2734 = vadd.xlane.f32.xlu0 %v2733_v10  ;;  %v5868_v7 = vld [vmem:[%s7598_s10 + $0x28] sm:$0xff]  }
 0xb4a   : > { %v7942_v11 = vpop.eup %6005 }
 0xb4b   : > { %v2739_v12 = vsel %vm2109_vm2, %v7942_v11, 0.0 }
 0xb4c   : > { %2740 = vadd.xlane.f32.xlu0 %v2739_v12  ;;  %v5869_v12 = vld [vmem:[%s7598_s10 + $0x30] sm:$0xff]  }
 0xb59   : > { %5797 = vrot.lane.b32.xlu1 %v7793_v62, %s6805_s8 }
 0xb5d   : > { %5802 = vrot.lane.b32.xlu1 %v5801_v53, %s6805_s8 }
 0xb61   : > { %5807 = vrot.lane.b32.xlu1 %v5806_v37, %s6804_s0 }
 0xb62   : > { %5792 = vrot.lane.b32.xlu0 %v7793_v62, %s6804_s0 }
 0xb65   : > { %5812 = vrot.lane.b32.xlu1 %v5811_v40, %s6803_s1 }
 0xbc7   : > { %v2720_v13 = vpop.xlane.xlu1 %2719 }
 0xbc8   : > { %6007 = vrcp.f32 %v2720_v13 }
 0xbc9   : > { %v2723_v14 = vpop.xlane.xlu0 %2722 }
 0xbca   : > { %6009 = vrcp.f32 %v2723_v14  ;;  %v5870_v14 = vld [vmem:[%s7598_s10 + $0x38] sm:$0xff]  }
 0xbcd   : > { %v2726_v15 = vpop.xlane.xlu1 %2725 }
 0xbce   : > { %6011 = vrcp.f32 %v2726_v15 }
 0xbd1   : > { %v2732_v34 = vpop.xlane.xlu1 %2731  ;;  %v2729_v51 = vpop.xlane.xlu0 %2728 }
 0xbd2   : > { %v6008_v53 = vpop.eup %6007  ;;  %6013 = vrcp.f32 %v2729_v51 }
 0xbd3   : > { %v2750_v60 = vmul.f32 %v6008_v53, %v5992_v8  ;;  %6015 = vrcp.f32 %v2732_v34 }
 0xbd4   : > { %v6010_v36 = vpop.eup %6009 }
 0xbd5   : > { %v2751_v37 = vmul.f32 %v6010_v36, %v5994_v38  ;;  %v2738_v62 = vpop.xlane.xlu1 %2737  ;;  %v2735_v16 = vpop.xlane.xlu0 %2734 }
 0xbd6   : > { %6017 = vrcp.f32 %v2735_v16 }
 0xbd7   : > { %v2758_v17 = vpack.c.bf16 %v2751_v37, %v2750_v60  ;;  %6019 = vrcp.f32 %v2738_v62 }
 0xbd8   : > { %v6012_v40 = vpop.eup %6011 }
 0xbd9   : > { %v5798_v2 = vpop.permute.xlu1 %5797  ;;  %5365 = vmatmul.mubr.msk.bf16.vlgmr.msra.gmra.mrb[24].mxu1 %vm2109_vm2, %v2758_v17  ;;  %v2741_v39 = vpop.xlane.xlu0 %2740  ;;  %v2752_v20 = vmul.f32 %v6012_v40, %v5996_v6 }
 0xbda   : > { %6021 = vrcp.f32 %v2741_v39  ;;  %5376 = vmatprep.mubr.msk.bf16.mxu1 %vm6802_vm0, %v6801_v57  ;;  %v5800_v19 = vunpack.i.h.bf16 %v5798_v2  ;;  %v5799_v0 = vunpack.i.l.bf16 %v5798_v2 }
 0xbdc   : > { %v6014_v18 = vpop.eup %6013  ;;  %v2765_v28 = vpack.c.bf16 %v5800_v19, %v5799_v0 }
 0xbdd   : > { %v5803_v54 = vpop.permute.xlu1 %5802  ;;  %v5793_v61 = vpop.permute.xlu0 %5792  ;;  %v2753_v21 = vmul.f32 %v6014_v18, %v6000_v55  ;;  %v5865_v55 = vld [vmem:[%s7598_s10 + $0x10] sm:$0xff]  }
 0xbde   : > { %v5795_v22 = vunpack.i.h.bf16 %v5793_v61  ;;  %v6016_v23 = vpop.eup %6015  ;;  %v5794_v24 = vunpack.i.l.bf16 %v5793_v61  ;;  %v5805_v31 = vunpack.i.h.bf16 %v5803_v54  ;;  %v5804_v8 = vunpack.i.l.bf16 %v5803_v54 }
 0xbdf   : > { %v2759_v25 = vpack.c.bf16 %v2753_v21, %v2752_v20  ;;  %v2754_v1 = vmul.f32 %v6016_v23, %v7932_v50  ;;  %v5864_v50 = vld [vmem:[%s7598_s10 + $0x8] sm:$0xff]  }
 0xbe0   : > { %v6018_v27 = vpop.eup %6017  ;;  %v2764_v29 = vpack.c.bf16 %v5795_v22, %v5794_v24  ;;  %v2407_v42 = vsel %vm1920_vm1, %v7898_v33, %v5805_v31  ;;  %v2406_v43 = vsel %vm1920_vm1, %v7896_v32, %v5804_v8  ;;  %v5863_v32 = vld [vmem:[%s7598_s10] sm:$0xff]  }
 0xbe1   : > { %v5808_v30 = vpop.permute.xlu1 %5807  ;;  %v6020_v48 = vpop.eup %6019  ;;  %v2755_v52 = vmul.f32 %v6018_v27, %v6004_v3  ;;  %5371 = vmatmul.mubr.msk.bf16.vlgmr.msra.gmra.mrb[36].mxu0 %vm2109_vm2, %v2759_v25  ;;  %v6111_v8 = vld [vmem:[#allocation2] sm:$0xff] }
 0xbe2   : > { %v5810_v9 = vunpack.i.h.bf16 %v5808_v30  ;;  %v5809_v49 = vunpack.i.l.bf16 %v5808_v30  ;;  %5381 = vmatpush3.bf16.msra.mxu0 %v2765_v28  ;;  %5375 = vmatpush3.bf16.msra.mxu1 %v2764_v29  ;;  %v2756_v38 = vmul.f32 %v6020_v48, %v7937_v63 }
 0xbe3   : > { %v2760_v56 = vpack.c.bf16 %v2755_v52, %v2754_v1  ;;  %5382 = vmatprep.mubr.msk.bf16.mxu0 %vm6802_vm0, %v6801_v57  ;;  %5386 = vmatprep.subr.bf16.mxu1 %v5863_v32 }
 0xbe4   : > { %v6022_v35 = vpop.eup %6021  ;;  %v2409_v57 = vsel %vm2408_vm3, %v2406_v43, %v5809_v49  ;;  %v2410_v45 = vsel %vm2408_vm3, %v2407_v42, %v5810_v9  ;;  %v6114_v42 = vld [vmem:[#allocation2 + $0x18] sm:$0xff] }
 0xbe5   : > { %v2757_v4 = vmul.f32 %v6022_v35, %v7942_v11  ;;  %v5813_v41 = vpop.permute.xlu1 %5812  ;;  %5377 = vmatmul.mubr.msk.bf16.vlgmr.msra.gmra.mrb[28].mxu1 %vm2109_vm2, %v2760_v56  ;;  %v6112_v56 = vld [vmem:[#allocation2 + $0x8] sm:$0xff] }
 0xbe6   : > { %v5815_v44 = vunpack.i.h.bf16 %v5813_v41  ;;  %v5814_v5 = vunpack.i.l.bf16 %v5813_v41  ;;  %5387 = vmatpush3.bf16.msra.mxu1 %v5863_v32 }
 0xbe7   : > { %v2761_v6 = vpack.c.bf16 %v2757_v4, %v2756_v38  ;;  %5388 = vmatprep.subr.bf16.mxu1 %v5864_v50  ;;  %v6113_v4 = vld [vmem:[#allocation2 + $0x10] sm:$0xff] }
 0xbe8   : > { %v2412_v46 = vsel %vm2411_vm4, %v2409_v57, %v5814_v5  ;;  %v2413_v47 = vsel %vm2411_vm4, %v2410_v45, %v5815_v44  ;;  %v5871_v44 = vld [vmem:[%s7602_s12] ss:$16 sps:$4 sm:$0xff]   ;;  %v5873_v5 = vld [vmem:[%s7602_s12 + $0x4] ss:$16 sps:$4 sm:$0xff]   ;;  %v5874_v57 = vld [vmem:[%s7602_s12 + $0x8] ss:$16 sps:$4 sm:$0xff]  }
 0xbe9   : > { %v2972_v33 = vpack.c.bf16 %v2413_v47, %v2412_v46  ;;  %5383 = vmatmul.mubr.msk.bf16.vlgmr.msra.gmra.mrb[40].mxu0 %vm2109_vm2, %v2761_v6  ;;  %v5876_v45 = vld [vmem:[%s7602_s12 + $0xc] ss:$16 sps:$4 sm:$0xff]   ;;  %v5879_v6 = vld [vmem:[%s7602_s12 + $0x24] ss:$16 sps:$4 sm:$0xff]   ;;  %3373 = vmatprep.subr.bf16.mxu0 %v5873_v5  ;;  %v5877_v47 = vld [vmem:[%s7602_s12 + $0x20] ss:$16 sps:$4 sm:$0xff]  }
 0xbea   : > { %3405 = vmatprep.mubr.bf16.mxu0 %v6800_v26  ;;  %5389 = vmatpush3.bf16.msra.mxu1 %v5864_v50  ;;  %v5882_v46 = vld [vmem:[%s7602_s12 + $0x2c] ss:$16 sps:$4 sm:$0xff]  }
 0xbeb   : > { %5402 = vmatprep.mubr.bf16.mxu1 %v2972_v33  ;;  %5390 = vmatprep.subr.bf16.mxu1 %v5865_v55  ;;  %v5880_v33 = vld [vmem:[%s7602_s12 + $0x28] ss:$16 sps:$4 sm:$0xff]  }
 0xbec   : > { %3374 = vmatpush1.bf16.msra.mxu0 %v5871_v44 }
 0xbed   : > { %3375 = vmatprep.subr.bf16.mxu0 %v5879_v6 }
 0xbee   : > { %5391 = vmatpush3.bf16.msra.mxu1 %v5865_v55 }
 0xbef   : > { %5392 = vmatprep.subr.bf16.mxu1 %v5866_v58 }
 0xbf0   : > { %3376 = vmatpush1.bf16.msra.mxu0 %v5877_v47 }
 0xbf2   : > { %5393 = vmatpush3.bf16.msra.mxu1 %v5866_v58 }
 0xbf3   : > { %5394 = vmatprep.subr.bf16.mxu1 %v5867_v59 }
 0xbf6   : > { %5395 = vmatpush3.bf16.msra.mxu1 %v5867_v59 }
 0xbf7   : > { %5396 = vmatprep.subr.bf16.mxu1 %v5868_v7 }
 0xbfa   : > { %5397 = vmatpush3.bf16.msra.mxu1 %v5868_v7 }
 0xbfb   : > { %5398 = vmatprep.subr.bf16.mxu1 %v5869_v12 }
 0xbfe   : > { %5399 = vmatpush3.bf16.msra.mxu1 %v5869_v12 }
 0xbff   : > { %5400 = vmatprep.subr.bf16.mxu1 %v5870_v14 }
 0xc02   : > { %5401 = vmatpush3.bf16.msra.mxu1 %v5870_v14 }
 0xc03   : > { %3426 = vmatprep.subr.bf16.mxu1 %v5876_v45 }
 0xcac   : > { %v2803_v63 = vpop.f32.mrb[24].mxu1 }
 0xcad   : > { %v5366_v3 = vpop.f32.mrb[25].mxu1 }
 0xcae   : > { %v2806_v10 = vpop.f32.mrb[26].mxu1 }
 0xcaf   : > { %v5367_v11 = vpop.f32.mrb[27].mxu1 }
 0xcb4   : > { %v2847_v13 = vpop.f32.mrb[36].mxu0 }
 0xcb5   : > { %v5372_v15 = vpop.f32.mrb[37].mxu0 }
 0xcb6   : > { %v2850_v34 = vpop.f32.mrb[38].mxu0 }
 0xcb7   : > { %v5816_v51 = vpack.i.bf16 %v2850_v34, %v2847_v13  ;;  %v5373_v53 = vpop.f32.mrb[39].mxu0 }
 0xcb8   : > { %v2891_v36 = vpop.f32.mrb[28].mxu1  ;;  %v5885_v53 = vld [vmem:[%s7602_s12 + $0x44] ss:$16 sps:$4 sm:$0xff]  }
 0xcb9   : > { %v5378_v60 = vpop.f32.mrb[29].mxu1  ;;  %5817 = vrot.lane.b32.xlu0 %v5816_v51, %s6805_s8  ;;  %3377 = vmatprep.subr.bf16.mxu0 %v5885_v53  ;;  %v5922_v53 = vld [vmem:[%s7604_s13 + $0x80] sm:$0xff]  }
 0xcba   : > { %v2894_v37 = vpop.f32.mrb[30].mxu1  ;;  %v5883_v60 = vld [vmem:[%s7602_s12 + $0x40] ss:$16 sps:$4 sm:$0xff]  }
 0xcbb   : > { %v5821_v62 = vpack.i.bf16 %v2894_v37, %v2891_v36  ;;  %v5379_v16 = vpop.f32.mrb[31].mxu1  ;;  %v5888_v36 = vld [vmem:[%s7602_s12 + $0x4c] ss:$16 sps:$4 sm:$0xff]   ;;  %v5886_v37 = vld [vmem:[%s7602_s12 + $0x48] ss:$16 sps:$4 sm:$0xff]   ;;  %3378 = vmatpush1.bf16.msra.mxu0 %v5883_v60 }
 0xcbc   : > { %v2935_v17 = vpop.f32.mrb[40].mxu0  ;;  %v5894_v16 = vld [vmem:[%s7602_s12 + $0x6c] ss:$16 sps:$4 sm:$0xff]  }
 0xcbd   : > { %5822 = vrot.lane.b32.xlu0 %v5821_v62, %s6804_s0  ;;  %v5384_v2 = vpop.f32.mrb[41].mxu0  ;;  %v5891_v62 = vld [vmem:[%s7602_s12 + $0x64] ss:$16 sps:$4 sm:$0xff]   ;;  %v5925_v60 = vld [vmem:[%s7604_s13 + $0x8] sm:$0xff]  }
 0xcbe   : > { %v2938_v39 = vpop.f32.mrb[42].mxu0  ;;  %v5892_v2 = vld [vmem:[%s7602_s12 + $0x68] ss:$16 sps:$4 sm:$0xff]   ;;  %3379 = vmatprep.subr.bf16.mxu0 %v5891_v62  ;;  %v5927_v62 = vld [vmem:[%s7604_s13 + $0x50] sm:$0xff]  }
 0xcbf   : > { %v5826_v40 = vpack.i.bf16 %v2938_v39, %v2935_v17  ;;  %v5385_v18 = vpop.f32.mrb[43].mxu0  ;;  %v5889_v17 = vld [vmem:[%s7602_s12 + $0x60] ss:$16 sps:$4 sm:$0xff]   ;;  %v5897_v39 = vld [vmem:[%s7602_s12 + $0x84] ss:$16 sps:$4 sm:$0xff]  }
 0xcc0   : > { %3380 = vmatpush1.bf16.msra.mxu0 %v5889_v17  ;;  %v5895_v18 = vld [vmem:[%s7602_s12 + $0x80] ss:$16 sps:$4 sm:$0xff]  }
 0xcc1   : > { %5827 = vrot.lane.b32.xlu1 %v5826_v40, %s6803_s1  ;;  %v5900_v40 = vld [vmem:[%s7602_s12 + $0x8c] ss:$16 sps:$4 sm:$0xff]   ;;  %3381 = vmatprep.subr.bf16.mxu0 %v5897_v39  ;;  %v5929_v17 = vld [vmem:[%s7604_s13 + $0x10] sm:$0xff]  }
 0xcc2   : > { %v5931_v39 = vld [vmem:[%s7604_s13 + $0x58] sm:$0xff]  }
 0xcc4   : > { %3382 = vmatpush1.bf16.msra.mxu0 %v5895_v18  ;;  %v5933_v18 = vld [vmem:[%s7604_s13 + $0x18] sm:$0xff]  }
 0xd2b   : > { %v5818_v19 = vpop.permute.xlu0 %5817 }
 0xd2c   : > { %v5820_v54 = vunpack.i.h.bf16 %v5818_v19  ;;  %v5819_v61 = vunpack.i.l.bf16 %v5818_v19  ;;  %v5898_v19 = vld [vmem:[%s7602_s12 + $0x88] ss:$16 sps:$4 sm:$0xff]  }
 0xd2e   : > { %v2967_v23 = vsel %vm1920_vm1, %v2806_v10, %v5820_v54  ;;  %v2966_v24 = vsel %vm1920_vm1, %v2803_v63, %v5819_v61  ;;  %v5906_v54 = vld [vmem:[%s7602_s12 + $0xac] ss:$16 sps:$4 sm:$0xff]   ;;  %v5901_v61 = vld [vmem:[%s7602_s12 + $0xa0] ss:$16 sps:$4 sm:$0xff]  }
 0xd2f   : > { %v5823_v0 = vpop.permute.xlu0 %5822 }
 0xd30   : > { %v5825_v20 = vunpack.i.h.bf16 %v5823_v0  ;;  %v5824_v21 = vunpack.i.l.bf16 %v5823_v0  ;;  %v5903_v0 = vld [vmem:[%s7602_s12 + $0xa4] ss:$16 sps:$4 sm:$0xff]  }
 0xd31   : > { %3383 = vmatprep.subr.bf16.mxu0 %v5903_v0  ;;  %v5935_v0 = vld [vmem:[%s7604_s13 + $0x60] sm:$0xff]  }
 0xd32   : > { %v2968_v28 = vsel %vm2408_vm3, %v2966_v24, %v5824_v21  ;;  %v2969_v29 = vsel %vm2408_vm3, %v2967_v23, %v5825_v20  ;;  %v5904_v20 = vld [vmem:[%s7602_s12 + $0xa8] ss:$16 sps:$4 sm:$0xff]   ;;  %3384 = vmatpush1.bf16.msra.mxu0 %v5901_v61  ;;  %v5909_v21 = vld [vmem:[%s7602_s12 + $0xc4] ss:$16 sps:$4 sm:$0xff]   ;;  %v5907_v23 = vld [vmem:[%s7602_s12 + $0xc0] ss:$16 sps:$4 sm:$0xff]  }
 0xd33   : > { %v5828_v22 = vpop.permute.xlu1 %5827  ;;  %v5910_v24 = vld [vmem:[%s7602_s12 + $0xc8] ss:$16 sps:$4 sm:$0xff]   ;;  %3385 = vmatprep.subr.bf16.mxu0 %v5909_v21  ;;  %v5937_v61 = vld [vmem:[%s7604_s13 + $0x20] sm:$0xff]  }
 0xd34   : > { %v5830_v25 = vunpack.i.h.bf16 %v5828_v22  ;;  %v5829_v27 = vunpack.i.l.bf16 %v5828_v22  ;;  %v5912_v22 = vld [vmem:[%s7602_s12 + $0xcc] ss:$16 sps:$4 sm:$0xff]  }
 0xd35   : > { %v5939_v21 = vld [vmem:[%s7604_s13 + $0x68] sm:$0xff]  }
 0xd36   : > { %v2971_v30 = vsel %vm2411_vm4, %v2969_v29, %v5830_v25  ;;  %v2970_v48 = vsel %vm2411_vm4, %v2968_v28, %v5829_v27  ;;  %v5915_v25 = vld [vmem:[%s7602_s12 + $0xe4] ss:$16 sps:$4 sm:$0xff]   ;;  %v5918_v27 = vld [vmem:[%s7602_s12 + $0xec] ss:$16 sps:$4 sm:$0xff]   ;;  %3386 = vmatpush1.bf16.msra.mxu0 %v5907_v23  ;;  %v5913_v28 = vld [vmem:[%s7602_s12 + $0xe0] ss:$16 sps:$4 sm:$0xff]  }
 0xd37   : > { %v2973_v1 = vpack.c.bf16 %v2971_v30, %v2970_v48  ;;  %v5916_v29 = vld [vmem:[%s7602_s12 + $0xe8] ss:$16 sps:$4 sm:$0xff]   ;;  %3387 = vmatprep.subr.bf16.mxu0 %v5915_v25  ;;  %v3193_v25 = vlaneseq }
 0xd38   : > { %v5941_v23 = vld [vmem:[%s7604_s13 + $0x28] sm:$0xff]  }
 0xd39   : > { %5403 = vmatmul.mubr.bf16.vlgmr.msra.gmra.mrb[32].mxu1 %v2973_v1 }
 0xd3a   : > { %3458 = vmatprep.mubr.bf16.mxu1 %v6800_v26  ;;  %3427 = vmatpush1.bf16.msra.mxu1 %v5874_v57  ;;  %v5037_v57 = vld [vmem:[%s975_s23] ss:$0 sm:$0xff] }
 0xd3b   : > { %3428 = vmatprep.subr.bf16.mxu1 %v5882_v46  ;;  %3388 = vmatpush1.bf16.msra.mxu0 %v5913_v28  ;;  %v5944_v28 = vld [vmem:[%s7604_s13 + $0xf0] sm:$0xff]  }
 0xd3e   : > { %3429 = vmatpush1.bf16.msra.mxu1 %v5880_v33 }
 0xd3f   : > { %3430 = vmatprep.subr.bf16.mxu1 %v5888_v36  ;;  %v5924_v36 = vld [vmem:[%s7604_s13 + $0xc8] sm:$0xff]  }
 0xd42   : > { %3431 = vmatpush1.bf16.msra.mxu1 %v5886_v37  ;;  %v5926_v37 = vld [vmem:[%s7604_s13 + $0x88] sm:$0xff]  }
 0xd43   : > { %3432 = vmatprep.subr.bf16.mxu1 %v5894_v16  ;;  %v5928_v16 = vld [vmem:[%s7604_s13 + $0xd0] sm:$0xff]  }
 0xd46   : > { %3433 = vmatpush1.bf16.msra.mxu1 %v5892_v2  ;;  %v5930_v2 = vld [vmem:[%s7604_s13 + $0x90] sm:$0xff]  }
 0xd47   : > { %3434 = vmatprep.subr.bf16.mxu1 %v5900_v40  ;;  %v5932_v40 = vld [vmem:[%s7604_s13 + $0xd8] sm:$0xff]  }
 0xd4a   : > { %3435 = vmatpush1.bf16.msra.mxu1 %v5898_v19  ;;  %v5934_v19 = vld [vmem:[%s7604_s13 + $0x98] sm:$0xff]  }
 0xd4b   : > { %3436 = vmatprep.subr.bf16.mxu1 %v5906_v54  ;;  %v5936_v54 = vld [vmem:[%s7604_s13 + $0xe0] sm:$0xff]  }
 0xd4e   : > { %3437 = vmatpush1.bf16.msra.mxu1 %v5904_v20  ;;  %v5938_v20 = vld [vmem:[%s7604_s13 + $0xa0] sm:$0xff]  }
 0xd4f   : > { %3438 = vmatprep.subr.bf16.mxu1 %v5912_v22  ;;  %v5940_v22 = vld [vmem:[%s7604_s13 + $0xe8] sm:$0xff]  }
 0xd52   : > { %3439 = vmatpush1.bf16.msra.mxu1 %v5910_v24  ;;  %v5942_v24 = vld [vmem:[%s7604_s13 + $0xa8] sm:$0xff]  }
 0xd53   : > { %3440 = vmatprep.subr.bf16.mxu1 %v5918_v27  ;;  %v5943_v27 = vld [vmem:[%s7604_s13 + $0x70] sm:$0xff]  }
 0xd56   : > { %3441 = vmatpush1.bf16.msra.mxu1 %v5916_v29  ;;  %v5945_v29 = vld [vmem:[%s7604_s13 + $0x30] sm:$0xff]  }
 0xe0c   : > { %v5404_v52 = vpop.f32.mrb[32].mxu1 }
 0xe0d   : > { %v3072_v31 = vpop.f32.mrb[33].mxu1  ;;  %v8005_v41 = vadd.f32 %v6113_v4, %v5404_v52 }
 0xe0e   : > { %v8000_v9 = vadd.f32 %v6111_v8, %v3072_v31  ;;  %v5405_v49 = vpop.f32.mrb[34].mxu1 }
 0xe0f   : > { %v3075_v35 = vpop.f32.mrb[35].mxu1  ;;  %8797 = vst [vmem:[#allocation53_spill] sm:$0xff] %v8005_v41  ;;  %v8009_v43 = vadd.f32 %v6114_v42, %v5405_v49 }
 0xe10   : > { %8795 = vst [vmem:[#allocation51_spill] sm:$0xff] %v8000_v9  ;;  %v8002_v38 = vadd.f32 %v6112_v56, %v3075_v35  ;;  %3093 = vadd.xlane.f32.xlu0 %v8000_v9 }
 0xe11   : > { %8798 = vst [vmem:[#allocation54_spill] sm:$0xff] %v8009_v43 }
 0xe12   : > { %8796 = vst [vmem:[#allocation52_spill] sm:$0xff] %v8002_v38  ;;  %3095 = vadd.xlane.f32.xlu1 %v8002_v38 }
 0xe14   : > { %3097 = vadd.xlane.f32.xlu0 %v8005_v41 }
 0xe18   : > { %3099 = vadd.xlane.f32.xlu0 %v8009_v43 }
 0xe9d   : > { %v3094_v32 = vpop.xlane.xlu0 %3093 }
 0xe9e   : > { %v3101_v50 = vmul.f32 0.0078125, %v3094_v32  ;;  %v5038_v32 = vld [vmem:[%s983_s17] ss:$0 sm:$0xff]  ;;  %s8808_s17 = sld [smem:[#allocation74_spill]] (!%p5104_p12) }
 0xe9f   : > { %v3096_v55 = vpop.xlane.xlu1 %3095 }
 0xea0   : > { %v8021_v58 = vsub.f32 %v8000_v9, %v3101_v50  ;;  %v3102_v59 = vmul.f32 0.0078125, %v3096_v55 }
 0xea1   : > { %v3098_v63 = vpop.xlane.xlu0 %3097 }
 0xea2   : > { %v8024_v3 = vsub.f32 %v8002_v38, %v3102_v59  ;;  %v3103_v7 = vmul.f32 0.0078125, %v3098_v63  ;;  %v3109_v10 = vmul.f32 %v8021_v58, %v8021_v58 }
 0xea4   : > { %v8029_v11 = vsub.f32 %v8005_v41, %v3103_v7  ;;  %3113 = vadd.xlane.f32.xlu0 %v3109_v10  ;;  %v3110_v12 = vmul.f32 %v8024_v3, %v8024_v3 }
 0xea5   : > { %v3100_v13 = vpop.xlane.xlu0 %3099 }
 0xea6   : > { %v3104_v14 = vmul.f32 0.0078125, %v3100_v13  ;;  %3115 = vadd.xlane.f32.xlu1 %v3110_v12  ;;  %v3111_v15 = vmul.f32 %v8029_v11, %v8029_v11 }
 0xea8   : > { %v8036_v34 = vsub.f32 %v8009_v43, %v3104_v14  ;;  %3117 = vadd.xlane.f32.xlu0 %v3111_v15  ;;  %v5919_v15 = vld [vmem:[%s7604_s13 + $0x40] sm:$0xff]  }
 0xea9   : > { %5205 = vmatprep.subr.bf16.mxu0 %v5919_v15 }
 0xeaa   : > { %v3112_v51 = vmul.f32 %v8036_v34, %v8036_v34 }
 0xeac   : > { %3119 = vadd.xlane.f32.xlu1 %v3112_v51  ;;  %v5921_v51 = vld [vmem:[%s7604_s13] sm:$0xff]  }
 0xf31   : > { %v3114_v30 = vpop.xlane.xlu0 %3113 }
 0xf32   : > { %v3121_v48 = vmul.f32 0.0078125, %v3114_v30  ;;  %v5946_v30 = vld [vmem:[%s7604_s13 + $0xb0] sm:$0xff]  }
 0xf33   : > { %v3116_v1 = vpop.xlane.xlu1 %3115 }
 0xf34   : > { %v3125_v52 = vadd.f32 1e-05, %v3121_v48  ;;  %v3122_v31 = vmul.f32 0.0078125, %v3116_v1  ;;  %v3194_v48 = vshrl.u32 %v3193_v25, 7  ;;  %v5947_v1 = vld [vmem:[%s7604_s13 + $0x78] sm:$0xff]  }
 0xf35   : > { %v3118_v8 = vpop.xlane.xlu0 %3117 }
 0xf36   : > { %6023 = vrsqrt.f32 %v3125_v52  ;;  %v3126_v49 = vadd.f32 1e-05, %v3122_v31  ;;  %v3123_v35 = vmul.f32 0.0078125, %v3118_v8  ;;  %v5948_v52 = vld [vmem:[%s7604_s13 + $0xf8] sm:$0xff]  }
 0xf37   : > { %v5949_v31 = vld [vmem:[%s7604_s13 + $0x38] sm:$0xff]  }
 0xf38   : > { %6025 = vrsqrt.f32 %v3126_v49  ;;  %v3127_v56 = vadd.f32 1e-05, %v3123_v35  ;;  %v5950_v8 = vld [vmem:[%s7604_s13 + $0xb8] sm:$0xff]   ;;  %v3195_v49 = vsub.s32 0, %v3194_v48  ;;  %v3203_v35 = vsub.s32 2, %v3194_v48 }
 0xf39   : > { %v3120_v4 = vpop.xlane.xlu1 %3119 }
 0xf3a   : > { %6027 = vrsqrt.f32 %v3127_v56  ;;  %v3124_v42 = vmul.f32 0.0078125, %v3120_v4  ;;  %v3191_v56 = vld [vmem:[%s7621_s21] sm:$0xf]  ;;  %v3199_v4 = vsub.s32 1, %v3194_v48 }
 0xf3c   : > { %v3128_v44 = vadd.f32 1e-05, %v3124_v42  ;;  %v3207_v42 = vsub.s32 3, %v3194_v48 }
 0xf3e   : > { %6029 = vrsqrt.f32 %v3128_v44  ;;  %v8107_v44 = vrot.slane %v3191_v56, %v3195_v49 }
 0xf40   : > { %v6024_v5 = vpop.eup %6023 }
 0xf41   : > { %v3133_v45 = vmul.f32 %v6024_v5, %v8021_v58  ;;  %v8109_v5 = vrot.slane %v3191_v56, %v3203_v35 }
 0xf42   : > { %v6026_v6 = vpop.eup %6025 }
 0xf43   : > { %v3134_v46 = vmul.f32 %v6026_v6, %v8024_v3  ;;  %v3143_v47 = vmul.f32 %v5037_v57, %v3133_v45  ;;  %v8113_v45 = vrot.slane %v3191_v56, %v3207_v42 }
 0xf44   : > { %v6028_v33 = vpop.eup %6027 }
 0xf45   : > { %v3144_v50 = vmul.f32 %v5037_v57, %v3134_v46  ;;  %v3153_v55 = vadd.f32 %v5038_v32, %v3143_v47  ;;  %v3135_v63 = vmul.f32 %v6028_v33, %v8029_v11 }
 0xf47   : > { %v3154_v59 = vadd.f32 %v5038_v32, %v3144_v50  ;;  %v3145_v3 = vmul.f32 %v5037_v57, %v3135_v63 }
 0xf48   : > { %v6030_v7 = vpop.eup %6029 }
 0xf49   : > { %v3157_v10 = vpack.c.bf16 %v3154_v59, %v3153_v55  ;;  %v3136_v58 = vmul.f32 %v6030_v7, %v8036_v34  ;;  %v3155_v11 = vadd.f32 %v5038_v32, %v3145_v3  ;;  %v5920_v34 = vld [vmem:[%s7604_s13 + $0xc0] sm:$0xff]  }
 0xf4a   : > { %5233 = vmatprep.subr.bf16.mxu1 %v5920_v34 }
 0xf4b   : > { %3406 = vmatmul.mubr.bf16.vlgmr.msra.gmra.mrb[44].mxu0 %v3157_v10  ;;  %3459 = vmatmul.mubr.bf16.vlgmr.msra.gmra.mrb[36].mxu1 %v3157_v10  ;;  %v3146_v12 = vmul.f32 %v5037_v57, %v3136_v58  ;;  %v8111_v57 = vrot.slane %v3191_v56, %v3199_v4 }
 0xf4c   : > { %3415 = vmatprep.mubr.bf16.mxu0 %v6800_v26  ;;  %3468 = vmatprep.mubr.bf16.mxu1 %v6800_v26  ;;  %v5923_v26 = vld [vmem:[%s7604_s13 + $0x48] sm:$0xff]  }
 0xf4d   : > { %v3156_v13 = vadd.f32 %v5038_v32, %v3146_v12  ;;  %5206 = vmatpush3.bf16.msra.mxu0 %v5921_v51  ;;  %5234 = vmatpush3.bf16.msra.mxu1 %v5922_v53 }
 0xf4e   : > { %5207 = vmatprep.subr.bf16.mxu0 %v5923_v26  ;;  %5235 = vmatprep.subr.bf16.mxu1 %v5924_v36 }
 0xf4f   : > { %v3158_v14 = vpack.c.bf16 %v3156_v13, %v3155_v11 }
 0xf51   : > { %5208 = vmatpush3.bf16.msra.mxu0 %v5925_v60  ;;  %5236 = vmatpush3.bf16.msra.mxu1 %v5926_v37 }
 0xf52   : > { %5209 = vmatprep.subr.bf16.mxu0 %v5927_v62  ;;  %5237 = vmatprep.subr.bf16.mxu1 %v5928_v16 }
 0xf53   : > { %3416 = vmatmul.mubr.bf16.gmra.mrb[48].mxu0 %v3158_v14  ;;  %3469 = vmatmul.mubr.bf16.gmra.mrb[40].mxu1 %v3158_v14 }
 0xf55   : > { %5210 = vmatpush3.bf16.msra.mxu0 %v5929_v17  ;;  %5238 = vmatpush3.bf16.msra.mxu1 %v5930_v2 }
 0xf56   : > { %5211 = vmatprep.subr.bf16.mxu0 %v5931_v39  ;;  %5239 = vmatprep.subr.bf16.mxu1 %v5932_v40 }
 0xf59   : > { %5212 = vmatpush3.bf16.msra.mxu0 %v5933_v18  ;;  %5240 = vmatpush3.bf16.msra.mxu1 %v5934_v19 }
 0xf5a   : > { %5213 = vmatprep.subr.bf16.mxu0 %v5935_v0  ;;  %5241 = vmatprep.subr.bf16.mxu1 %v5936_v54 }
 0xf5d   : > { %5214 = vmatpush3.bf16.msra.mxu0 %v5937_v61  ;;  %5242 = vmatpush3.bf16.msra.mxu1 %v5938_v20 }
 0xf5e   : > { %5215 = vmatprep.subr.bf16.mxu0 %v5939_v21  ;;  %5243 = vmatprep.subr.bf16.mxu1 %v5940_v22 }
 0xf61   : > { %5216 = vmatpush3.bf16.msra.mxu0 %v5941_v23  ;;  %5244 = vmatpush3.bf16.msra.mxu1 %v5942_v24 }
 0xf62   : > { %5217 = vmatprep.subr.bf16.mxu0 %v5943_v27  ;;  %5245 = vmatprep.subr.bf16.mxu1 %v5944_v28 }
 0xf65   : > { %5218 = vmatpush3.bf16.msra.mxu0 %v5945_v29  ;;  %5246 = vmatpush3.bf16.msra.mxu1 %v5946_v30 }
 0xf66   : > { %5219 = vmatprep.subr.bf16.mxu0 %v5947_v1  ;;  %5247 = vmatprep.subr.bf16.mxu1 %v5948_v52 }
 0xf69   : > { %5220 = vmatpush3.bf16.msra.mxu0 %v5949_v31  ;;  %5248 = vmatpush3.bf16.msra.mxu1 %v5950_v8 }
0x101e   : > { %v3407_v6 = vpop.f32.mrb[44].mxu0  ;;  %v3460_v46 = vpop.f32.mrb[36].mxu1 }
0x101f   : > { %v8116_v47 = vadd.f32 %v3407_v6, %v8107_v44  ;;  %v8119_v33 = vadd.f32 %v3460_v46, %v8109_v5  ;;  %v3409_v32 = vpop.f32.mrb[45].mxu0  ;;  %v3462_v50 = vpop.f32.mrb[37].mxu1 }
0x1020   : > { %v8122_v55 = vadd.f32 %v3409_v32, %v8111_v57  ;;  %v8125_v59 = vadd.f32 %v3462_v50, %v8113_v45  ;;  %v3411_v63 = vpop.f32.mrb[46].mxu0  ;;  %v3464_v7 = vpop.f32.mrb[38].mxu1 }
0x1021   : > { %v8128_v10 = vmul.f32 0.70710677, %v8116_v47  ;;  %v8131_v58 = vmul.f32 0.70710677, %v8119_v33  ;;  %v3413_v37 = vpop.f32.mrb[47].mxu0  ;;  %v3466_v62 = vpop.f32.mrb[39].mxu1  ;;  %v8152_v39 = vadd.f32 %v3411_v63, %v8107_v44  ;;  %v8159_v19 = vadd.f32 %v3464_v7, %v8109_v5 }
0x1022   : > { %v8134_v3 = vmul.f32 0.70710677, %v8122_v55  ;;  %v8137_v12 = vmul.f32 0.70710677, %v8125_v59  ;;  %v8169_v21 = vadd.f32 %v3413_v37, %v8111_v57  ;;  %v8180_v28 = vadd.f32 %v3466_v62, %v8113_v45 }
0x1023   : > { %v3511_v13 = vand.u32 2147483647, %v8128_v10  ;;  %v3513_v11 = vand.u32 2147483647, %v8131_v58  ;;  %v8166_v20 = vmul.f32 0.70710677, %v8152_v39 }
0x1024   : > { %v8142_v14 = vand.u32 2147483647, %v8134_v3  ;;  %v8145_v15 = vand.u32 2147483647, %v8137_v12  ;;  %v8176_v25 = vmul.f32 0.70710677, %v8159_v19 }
0x1025   : > { %v3527_v34 = vmul.f32 0.3275911, %v3511_v13  ;;  %v3529_v51 = vmul.f32 0.3275911, %v3513_v11  ;;  %v3719_v24 = vsub.f32 0.0, %v3511_v13  ;;  %v3721_v29 = vsub.f32 0.0, %v3513_v11 }
0x1026   : > { %v3528_v53 = vmul.f32 0.3275911, %v8142_v14  ;;  %v3530_v60 = vmul.f32 0.3275911, %v8145_v15  ;;  %v3417_v16 = vpop.f32.mrb[48].mxu0  ;;  %v8149_v17 = vpop.f32.mrb[40].mxu1 }
0x1027   : > { %v3543_v26 = vadd.f32 1.0, %v3527_v34  ;;  %v3545_v36 = vadd.f32 1.0, %v3529_v51  ;;  %v8154_v40 = vpop.f32.mrb[49].mxu0  ;;  %v8156_v18 = vpop.f32.mrb[41].mxu1  ;;  %v3515_v27 = vand.u32 2147483647, %v8166_v20  ;;  %v3735_v52 = vmul.f32 %v3719_v24, %v3511_v13 }
0x1028   : > { %v3544_v2 = vadd.f32 1.0, %v3528_v53  ;;  %v8161_v0 = vpop.f32.mrb[50].mxu0  ;;  %v8163_v54 = vpop.f32.mrb[42].mxu1  ;;  %v3546_v61 = vadd.f32 1.0, %v3530_v60  ;;  %v3517_v30 = vand.u32 2147483647, %v8176_v25  ;;  %v3737_v56 = vmul.f32 %v3721_v29, %v3513_v11 }
0x1029   : > { %6031 = vrcp.f32 %v3543_v26  ;;  %v8171_v22 = vpop.f32.mrb[51].mxu0  ;;  %v8173_v23 = vpop.f32.mrb[43].mxu1  ;;  %v8184_v48 = vmul.f32 0.70710677, %v8169_v21  ;;  %v3531_v1 = vmul.f32 0.3275911, %v3515_v27  ;;  %v8204_v60 = vadd.f32 %v3417_v16, %v8107_v44 }
0x102a   : > { %6033 = vrcp.f32 %v3545_v36  ;;  %v3533_v31 = vmul.f32 0.3275911, %v3517_v30  ;;  %v8188_v35 = vmul.f32 0.70710677, %v8180_v28  ;;  %v3723_v46 = vsub.f32 0.0, %v3515_v27 }
0x102b   : > { %6035 = vrcp.f32 %v3544_v2  ;;  %v3516_v8 = vand.u32 2147483647, %v8184_v48  ;;  %v3547_v49 = vadd.f32 1.0, %v3531_v1  ;;  %v3751_v7 = vmul.f32 1.442695, %v3735_v52  ;;  %8799 = vst [vmem:[#allocation55_spill] sm:$0xff] %v8204_v60 }
0x102c   : > { %6037 = vrcp.f32 %v3546_v61  ;;  %v3549_v4 = vadd.f32 1.0, %v3533_v31  ;;  %v8193_v32 = vand.u32 2147483647, %v8188_v35  ;;  %v3725_v51 = vsub.f32 0.0, %v3517_v30 }
0x102d   : > { %v3532_v42 = vmul.f32 0.3275911, %v3516_v8  ;;  %6039 = vrcp.f32 %v3547_v49  ;;  %v8201_v53 = vmul.f32 0.5, %v8116_v47  ;;  %v3755_v36 = vmul.f32 1.442695, %v3737_v56 }
0x102e   : > { %6041 = vrcp.f32 %v3549_v4  ;;  %v3534_v11 = vmul.f32 0.3275911, %v8193_v32  ;;  %v3739_v2 = vmul.f32 %v3723_v46, %v3515_v27  ;;  %v8210_v29 = vmul.f32 0.5, %v8119_v33 }
0x102f   : > { %v3548_v13 = vadd.f32 1.0, %v3532_v42  ;;  %v3720_v47 = vsub.f32 0.0, %v8142_v14  ;;  %v3741_v31 = vmul.f32 %v3725_v51, %v3517_v30  ;;  %v8218_v49 = vmul.f32 0.70710677, %v8204_v60 }
0x1030   : > { %v3550_v61 = vadd.f32 1.0, %v3534_v11  ;;  %v3759_v42 = vmul.f32 1.442695, %v3739_v2  ;;  %v3724_v46 = vsub.f32 0.0, %v3516_v8  ;;  %vm3815_vm5 = vcmp.ge.f32.partialorder %v8128_v10, 0.0 }
0x1031   : > { %6043 = vrcp.f32 %v3548_v13  ;;  %8800 = vst [vmem:[#allocation56_spill] sm:$0xff] %v8218_v49  ;;  %v3736_v11 = vmul.f32 %v3720_v47, %v8142_v14  ;;  %v3726_v14 = vsub.f32 0.0, %v8193_v32  ;;  %vm3817_vm6 = vcmp.ge.f32.partialorder %v8131_v58, 0.0 }
0x1032   : > { %6045 = vpow2.f32 %v3751_v7  ;;  %vm3819_vm7 = vcmp.ge.f32.partialorder %v8166_v20, 0.0  ;;  %vm3821_vm8 = vcmp.ge.f32.partialorder %v8176_v25, 0.0  ;;  %v8291_v20 = vadd.f32 %v8154_v40, %v8111_v57 }
0x1033   : > { %v8190_v6 = vpop.eup %6031  ;;  %6047 = vrcp.f32 %v3550_v61  ;;  %vm3820_vm9 = vcmp.ge.f32.partialorder %v8184_v48, 0.0  ;;  %vm3816_vm10 = vcmp.ge.f32.partialorder %v8134_v3, 0.0  ;;  %vm3818_vm11 = vcmp.ge.f32.partialorder %v8137_v12, 0.0 }
0x1034   : > { %v8195_v50 = vpop.eup %6033  ;;  %v3575_v63 = vmul.f32 1.0614054, %v8190_v6  ;;  %6049 = vpow2.f32 %v3755_v36  ;;  %vm3822_vm12 = vcmp.ge.f32.partialorder %v8188_v35, 0.0 }
0x1035   : > { %v3577_v34 = vmul.f32 1.0614054, %v8195_v50  ;;  %v8206_v37 = vpop.eup %6035  ;;  %6051 = vpow2.f32 %v3759_v42 }
0x1036   : > { %v3591_v26 = vadd.f32 -1.4531521, %v3575_v63  ;;  %v3576_v1 = vmul.f32 1.0614054, %v8206_v37  ;;  %v8214_v52 = vpop.eup %6037 }
0x1037   : > { %v3593_v62 = vadd.f32 -1.4531521, %v3577_v34  ;;  %v3578_v4 = vmul.f32 1.0614054, %v8214_v52  ;;  %v8224_v34 = vand.u32 2147483647, %v8218_v49  ;;  %v8226_v30 = vpop.eup %6039 }
0x1038   : > { %v3607_v24 = vmul.f32 %v8190_v6, %v3591_v26  ;;  %v3592_v56 = vadd.f32 -1.4531521, %v3576_v1  ;;  %v3722_v26 = vsub.f32 0.0, %v8145_v15  ;;  %v8231_v36 = vpop.eup %6041  ;;  %v3579_v1 = vmul.f32 1.0614054, %v8226_v30 }
0x1039   : > { %v3609_v16 = vmul.f32 %v8195_v50, %v3593_v62  ;;  %v3594_v7 = vadd.f32 -1.4531521, %v3578_v4  ;;  %v3763_v62 = vmul.f32 1.442695, %v3741_v31  ;;  %v3535_v47 = vmul.f32 0.3275911, %v8224_v34 }
0x103a   : > { %v3623_v27 = vadd.f32 1.4214138, %v3607_v24  ;;  %v3608_v13 = vmul.f32 %v8206_v37, %v3592_v56  ;;  %v3740_v56 = vmul.f32 %v3724_v46, %v3516_v8 }
0x103b   : > { %v3625_v33 = vadd.f32 1.4214138, %v3609_v16  ;;  %v3610_v24 = vmul.f32 %v8214_v52, %v3594_v7  ;;  %v8239_v31 = vpop.eup %6043  ;;  %6053 = vpow2.f32 %v3763_v62  ;;  %v3551_v62 = vadd.f32 1.0, %v3535_v47 }
0x103c   : > { %v3639_v63 = vmul.f32 %v8190_v6, %v3623_v27  ;;  %v3624_v61 = vadd.f32 1.4214138, %v3608_v13  ;;  %v3581_v27 = vmul.f32 1.0614054, %v8231_v36  ;;  %v3738_v13 = vmul.f32 %v3722_v26, %v8145_v15  ;;  %v6046_v46 = vpop.eup %6045 }
0x103d   : > { %v3641_v51 = vmul.f32 %v8195_v50, %v3625_v33  ;;  %v3595_v33 = vadd.f32 -1.4531521, %v3579_v1  ;;  %v3626_v43 = vadd.f32 1.4214138, %v3610_v24  ;;  %v3580_v41 = vmul.f32 1.0614054, %v8239_v31  ;;  %v8247_v9 = vpop.eup %6047 }
0x103e   : > { %v3655_v2 = vadd.f32 -0.28449672, %v3639_v63  ;;  %v3597_v7 = vadd.f32 -1.4531521, %v3581_v27  ;;  %v3640_v42 = vmul.f32 %v8206_v37, %v3624_v61  ;;  %v3761_v38 = vmul.f32 1.442695, %v3740_v56  ;;  %v6050_v27 = vpop.eup %6049 }
0x103f   : > { %v3657_v16 = vadd.f32 -0.28449672, %v3641_v51  ;;  %v3611_v8 = vmul.f32 %v8226_v30, %v3595_v33  ;;  %v3742_v26 = vmul.f32 %v3726_v14, %v8193_v32  ;;  %v3582_v33 = vmul.f32 1.0614054, %v8247_v9 }
0x1040   : > { %v3671_v4 = vmul.f32 %v8190_v6, %v3655_v2  ;;  %v3613_v1 = vmul.f32 %v8231_v36, %v3597_v7  ;;  %v3656_v7 = vadd.f32 -0.28449672, %v3640_v42  ;;  %v3642_v49 = vmul.f32 %v8214_v52, %v3626_v43 }
0x1041   : > { %v3673_v63 = vmul.f32 %v8195_v50, %v3657_v16  ;;  %v3627_v15 = vadd.f32 1.4214138, %v3611_v8  ;;  %v3598_v32 = vadd.f32 -1.4531521, %v3582_v33  ;;  %v3753_v14 = vmul.f32 1.442695, %v3736_v11  ;;  %v6052_v8 = vpop.eup %6051 }
0x1042   : > { %v3687_v51 = vadd.f32 0.2548296, %v3671_v4  ;;  %v3629_v24 = vadd.f32 1.4214138, %v3613_v1  ;;  %v3596_v4 = vadd.f32 -1.4531521, %v3580_v41  ;;  %6055 = vpow2.f32 %v3761_v38 }
0x1043   : > { %v3689_v2 = vadd.f32 0.2548296, %v3673_v63  ;;  %v3643_v56 = vmul.f32 %v8226_v30, %v3627_v15  ;;  %6057 = vrcp.f32 %v3551_v62  ;;  %v3672_v1 = vmul.f32 %v8206_v37, %v3656_v7 }
0x1044   : > { %v3703_v16 = vmul.f32 %v8190_v6, %v3687_v51  ;;  %v3645_v6 = vmul.f32 %v8231_v36, %v3629_v24  ;;  %v3612_v51 = vmul.f32 %v8239_v31, %v3596_v4  ;;  %6059 = vpow2.f32 %v3753_v14 }
0x1045   : > { %v3705_v61 = vmul.f32 %v8195_v50, %v3689_v2  ;;  %v3659_v47 = vadd.f32 -0.28449672, %v3643_v56  ;;  %v3765_v50 = vmul.f32 1.442695, %v3742_v26  ;;  %v6054_v15 = vpop.eup %6053  ;;  %v3757_v26 = vmul.f32 1.442695, %v3738_v13 }
0x1046   : > { %v3783_v63 = vmul.f32 %v6046_v46, %v3703_v16  ;;  %v3661_v41 = vadd.f32 -0.28449672, %v3645_v6  ;;  %v3628_v2 = vadd.f32 1.4214138, %v3612_v51  ;;  %v3614_v46 = vmul.f32 %v8247_v9, %v3598_v32 }
0x1047   : > { %v3785_v60 = vmul.f32 %v6050_v27, %v3705_v61  ;;  %v3675_v16 = vmul.f32 %v8226_v30, %v3659_v47  ;;  %v3658_v27 = vadd.f32 -0.28449672, %v3642_v49  ;;  %6061 = vpow2.f32 %v3765_v50 }
0x1048   : > { %v3799_v42 = vsub.f32 1.0, %v3783_v63  ;;  %v3677_v61 = vmul.f32 %v8231_v36, %v3661_v41  ;;  %v3644_v11 = vmul.f32 %v8239_v31, %v3628_v2  ;;  %v3630_v38 = vadd.f32 1.4214138, %v3614_v46 }
0x1049   : > { %v3801_v43 = vsub.f32 1.0, %v3785_v60  ;;  %v3691_v24 = vadd.f32 0.2548296, %v3675_v16  ;;  %v3688_v63 = vadd.f32 0.2548296, %v3672_v1  ;;  %v3674_v7 = vmul.f32 %v8214_v52, %v3658_v27 }
0x104a   : > { %v3693_v62 = vadd.f32 0.2548296, %v3677_v61  ;;  %v3660_v60 = vadd.f32 -0.28449672, %v3644_v11  ;;  %v3831_v4 = vsub.f32 0.0, %v3799_v42  ;;  %v3646_v51 = vmul.f32 %v8247_v9, %v3630_v38 }
0x104b   : > { %v3833_v33 = vsub.f32 0.0, %v3801_v43  ;;  %v3707_v49 = vmul.f32 %v8226_v30, %v3691_v24  ;;  %6063 = vpow2.f32 %v3757_v26  ;;  %v3483_v13 = vmul.f32 0.5, %v8152_v39 }
0x104c   : > { %v3709_v56 = vmul.f32 %v8231_v36, %v3693_v62  ;;  %v3676_v6 = vmul.f32 %v8239_v31, %v3660_v60  ;;  %v8272_v14 = vadd.f32 %v8149_v17, %v8109_v5  ;;  %v3485_v47 = vmul.f32 0.5, %v8159_v19  ;;  %v6056_v2 = vpop.eup %6055 }
0x104d   : > { %v3787_v32 = vmul.f32 %v6052_v8, %v3707_v49  ;;  %v3662_v41 = vadd.f32 -0.28449672, %v3646_v51  ;;  %v3847_v36 = vsel %vm3815_vm5, %v3799_v42, %v3831_v4  ;;  %v3849_v46 = vsel %vm3817_vm6, %v3801_v43, %v3833_v33  ;;  %v8280_v39 = vpop.eup %6057 }
0x104e   : > { %v3789_v50 = vmul.f32 %v6054_v15, %v3709_v56  ;;  %v3692_v30 = vadd.f32 0.2548296, %v3676_v6  ;;  %v3704_v17 = vmul.f32 %v8206_v37, %v3688_v63  ;;  %v3690_v8 = vadd.f32 0.2548296, %v3674_v7  ;;  %v6060_v37 = vpop.eup %6059 }
0x104f   : > { %v3803_v1 = vsub.f32 1.0, %v3787_v32  ;;  %v3678_v10 = vmul.f32 %v8247_v9, %v3662_v41  ;;  %v8287_v42 = vmul.f32 0.70710677, %v8272_v14  ;;  %v3863_v58 = vadd.f32 1.0, %v3847_v36 }
0x1050   : > { %v3805_v16 = vsub.f32 1.0, %v3789_v50  ;;  %v3708_v19 = vmul.f32 %v8239_v31, %v3692_v30  ;;  %v3865_v43 = vadd.f32 1.0, %v3849_v46  ;;  %v3784_v24 = vmul.f32 %v6060_v37, %v3704_v17 }
0x1051   : > { %v3835_v15 = vsub.f32 0.0, %v3803_v1  ;;  %v3694_v38 = vadd.f32 0.2548296, %v3678_v10  ;;  %v8294_v31 = vand.u32 2147483647, %v8287_v42  ;;  %v6062_v26 = vpop.eup %6061  ;;  %v3706_v62 = vmul.f32 %v8214_v52, %v3690_v8 }
0x1052   : > { %v3837_v27 = vsub.f32 0.0, %v3805_v16  ;;  %v3788_v11 = vmul.f32 %v6056_v2, %v3708_v19  ;;  %v3583_v40 = vmul.f32 1.0614054, %v8280_v39  ;;  %v8303_v7 = vmul.f32 %v3863_v58, %v8201_v53 }
0x1053   : > { %v3851_v61 = vsel %vm3819_vm7, %v3803_v1, %v3835_v15  ;;  %v3710_v63 = vmul.f32 %v8247_v9, %v3694_v38  ;;  %v3537_v49 = vmul.f32 0.3275911, %v8294_v31  ;;  %v8306_v56 = vmul.f32 %v3865_v43, %v8210_v29 }
0x1054   : > { %v3867_v60 = vadd.f32 1.0, %v3851_v61  ;;  %v3853_v4 = vsel %vm3821_vm8, %v3805_v16, %v3837_v27  ;;  %v8311_v52 = vmul.f32 0.70710677, %v8291_v20  ;;  %v3804_v32 = vsub.f32 1.0, %v3788_v11 }
0x1055   : > { %v3869_v33 = vadd.f32 1.0, %v3853_v4  ;;  %v6064_v25 = vpop.eup %6063  ;;  %v3790_v9 = vmul.f32 %v6062_v26, %v3710_v63  ;;  %v3553_v50 = vadd.f32 1.0, %v3537_v49  ;;  %v3800_v29 = vsub.f32 1.0, %v3784_v24 }
0x1056   : > { %v8308_v6 = vmul.f32 %v3867_v60, %v3483_v13  ;;  %v3786_v30 = vmul.f32 %v6064_v25, %v3706_v62  ;;  %v8318_v53 = vand.u32 2147483647, %v8311_v52  ;;  %v3599_v2 = vadd.f32 -1.4531521, %v3583_v40 }
0x1057   : > { %v8313_v51 = vmul.f32 %v3869_v33, %v3485_v47  ;;  %6065 = vrcp.f32 %v3553_v50  ;;  %v3836_v47 = vsub.f32 0.0, %v3804_v32  ;;  %v3806_v46 = vsub.f32 1.0, %v3790_v9 }
0x1058   : > { %v3895_v41 = vpack.c.bf16 %v8308_v6, %v8303_v7  ;;  %v3536_v36 = vmul.f32 0.3275911, %v8318_v53  ;;  %v3802_v1 = vsub.f32 1.0, %v3786_v30  ;;  %v8325_v8 = vadd.f32 %v8156_v18, %v8113_v45 }
0x1059   : > { %v3897_v13 = vpack.c.bf16 %v8313_v51, %v8306_v56  ;;  %v3832_v16 = vsub.f32 0.0, %v3800_v29  ;;  %v3615_v19 = vmul.f32 %v8280_v39, %v3599_v2  ;;  %v8330_v15 = vadd.f32 %v8161_v0, %v8107_v44 }
0x105a   : > { %v3552_v17 = vadd.f32 1.0, %v3536_v36  ;;  %v8334_v10 = vadd.f32 %v8163_v54, %v8109_v5  ;;  %v3480_v58 = vmul.f32 0.5, %v8122_v55  ;;  %v3482_v43 = vmul.f32 0.5, %v8125_v59 }
0x105b   : > { %v3852_v18 = vsel %vm3820_vm9, %v3804_v32, %v3836_v47  ;;  %v3838_v27 = vsub.f32 0.0, %v3806_v46  ;;  %v8340_v37 = vmul.f32 0.70710677, %v8325_v8  ;;  %v8343_v61 = vmul.f32 0.70710677, %v8330_v15 }
0x105c   : > { %6067 = vrcp.f32 %v3552_v17  ;;  %v3834_v44 = vsub.f32 0.0, %v3802_v1  ;;  %v3727_v5 = vsub.f32 0.0, %v8224_v34  ;;  %v8348_v55 = vmul.f32 0.70710677, %v8334_v10 }
0x105d   : > { %v3848_v59 = vsel %vm3816_vm10, %v3800_v29, %v3832_v16  ;;  %v3631_v0 = vadd.f32 1.4214138, %v3615_v19  ;;  %v8351_v54 = vand.u32 2147483647, %v8340_v37  ;;  %v8354_v48 = vand.u32 2147483647, %v8343_v61 }
0x105e   : > { %v3868_v11 = vadd.f32 1.0, %v3852_v18  ;;  %v8359_v3 = vand.u32 2147483647, %v8348_v55  ;;  %v3484_v38 = vmul.f32 0.5, %v8169_v21  ;;  %v3854_v26 = vsel %vm3822_vm12, %v3806_v46, %v3838_v27 }
0x105f   : > { %v3538_v24 = vmul.f32 0.3275911, %v8351_v54  ;;  %v3539_v62 = vmul.f32 0.3275911, %v8354_v48  ;;  %v3864_v4 = vadd.f32 1.0, %v3848_v59  ;;  %v3850_v33 = vsel %vm3818_vm11, %v3802_v1, %v3834_v44 }
0x1060   : > { %v3743_v63 = vmul.f32 %v3727_v5, %v8224_v34  ;;  %v3541_v12 = vmul.f32 0.3275911, %v8359_v3  ;;  %v3647_v35 = vmul.f32 %v8280_v39, %v3631_v0  ;;  %v8372_v21 = vadd.f32 %v8171_v22, %v8111_v57 }
0x1061   : > { %v8364_v60 = vpop.eup %6065  ;;  %v3554_v49 = vadd.f32 1.0, %v3538_v24  ;;  %v3884_v25 = vmul.f32 %v3868_v11, %v3484_v38  ;;  %v3870_v32 = vadd.f32 1.0, %v3854_v26  ;;  %v3729_v9 = vsub.f32 0.0, %v8294_v31 }
0x1062   : > { %v3585_v40 = vmul.f32 1.0614054, %v8364_v60  ;;  %v3555_v50 = vadd.f32 1.0, %v3539_v62  ;;  %v3486_v30 = vmul.f32 0.5, %v8180_v28  ;;  %v3557_v34 = vadd.f32 1.0, %v3541_v12 }
0x1063   : > { %6069 = vrcp.f32 %v3554_v49  ;;  %v3880_v36 = vmul.f32 %v3864_v4, %v3480_v58  ;;  %v3866_v47 = vadd.f32 1.0, %v3850_v33  ;;  %v3767_v46 = vmul.f32 1.442695, %v3743_v63 }
0x1064   : > { %v3601_v29 = vadd.f32 -1.4531521, %v3585_v40  ;;  %6071 = vrcp.f32 %v3555_v50  ;;  %v3663_v1 = vadd.f32 -0.28449672, %v3647_v35  ;;  %v8381_v17 = vmul.f32 0.70710677, %v8372_v21 }
0x1065   : > { %v3886_v16 = vmul.f32 %v3870_v32, %v3486_v30  ;;  %v3745_v28 = vmul.f32 %v3729_v9, %v8294_v31  ;;  %v8386_v19 = vadd.f32 %v8173_v23, %v8113_v45  ;;  %v3896_v18 = vpack.c.bf16 %v3884_v25, %v3880_v36 }
0x1066   : > { %v8376_v2 = vpop.eup %6067  ;;  %v3617_v57 = vmul.f32 %v8364_v60, %v3601_v29  ;;  %6073 = vrcp.f32 %v3557_v34  ;;  %v8389_v44 = vand.u32 2147483647, %v8381_v17  ;;  %v3882_v5 = vmul.f32 %v3866_v47, %v3482_v43 }
0x1067   : > { %v3584_v22 = vmul.f32 1.0614054, %v8376_v2  ;;  %6075 = vpow2.f32 %v3767_v46  ;;  %v3728_v59 = vsub.f32 0.0, %v8318_v53  ;;  %v8393_v0 = vmul.f32 0.70710677, %v8386_v19  ;;  %4198 = vmatprep.mubr.bf16.mxu0 %v3896_v18 }
0x1068   : > { %v3633_v58 = vadd.f32 1.4214138, %v3617_v57  ;;  %v3679_v31 = vmul.f32 %v8280_v39, %v3663_v1  ;;  %v3540_v11 = vmul.f32 0.3275911, %v8389_v44  ;;  %4199 = vmatmul.mubr.bf16.vlgmr.msra.gmra.mrb[52].mxu0 %v3895_v41  ;;  %v3771_v43 = vmul.f32 1.442695, %v3745_v28 }
0x1069   : > { %v3600_v27 = vadd.f32 -1.4531521, %v3584_v22  ;;  %v3731_v38 = vsub.f32 0.0, %v8354_v48  ;;  %v8404_v26 = vand.u32 2147483647, %v8393_v0  ;;  %v3898_v24 = vpack.c.bf16 %v3886_v16, %v3882_v5 }
0x106a   : > { %v3649_v45 = vmul.f32 %v8364_v60, %v3633_v58  ;;  %v3556_v33 = vadd.f32 1.0, %v3540_v11  ;;  %v3744_v63 = vmul.f32 %v3728_v59, %v8318_v53  ;;  %v3730_v12 = vsub.f32 0.0, %v8351_v54 }
0x106b   : > { %v3616_v23 = vmul.f32 %v8376_v2, %v3600_v27  ;;  %v3542_v35 = vmul.f32 0.3275911, %v8404_v26  ;;  %4247 = vmatprep.mubr.bf16.mxu1 %v3898_v24  ;;  %v3695_v7 = vadd.f32 0.2548296, %v3679_v31  ;;  %v3733_v41 = vsub.f32 0.0, %v8359_v3 }
0x106c   : > { %v3665_v62 = vadd.f32 -0.28449672, %v3649_v45  ;;  %6077 = vrcp.f32 %v3556_v33  ;;  %4248 = vmatmul.mubr.bf16.vlgmr.msra.gmra.mrb[44].mxu1 %v3897_v13  ;;  %v3747_v32 = vmul.f32 %v3731_v38, %v8354_v48  ;;  %v3769_v29 = vmul.f32 1.442695, %v3744_v63 }
0x106d   : > { %v3632_v4 = vadd.f32 1.4214138, %v3616_v23  ;;  %v8409_v40 = vpop.eup %6069  ;;  %v3558_v9 = vadd.f32 1.0, %v3542_v35  ;;  %6079 = vpow2.f32 %v3771_v43  ;;  %v3746_v36 = vmul.f32 %v3730_v12, %v8351_v54 }
0x106e   : > { %v8416_v49 = vpop.eup %6071  ;;  %v3681_v53 = vmul.f32 %v8364_v60, %v3665_v62  ;;  %v3586_v25 = vmul.f32 1.0614054, %v8409_v40  ;;  %v3711_v51 = vmul.f32 %v8280_v39, %v3695_v7  ;;  %v3749_v47 = vmul.f32 %v3733_v41, %v8359_v3 }
0x106f   : > { %v3648_v6 = vmul.f32 %v8376_v2, %v3632_v4  ;;  %v3587_v30 = vmul.f32 1.0614054, %v8416_v49  ;;  %6081 = vrcp.f32 %v3558_v9  ;;  %v3775_v57 = vmul.f32 1.442695, %v3747_v32 }
0x1070   : > { %v3602_v34 = vadd.f32 -1.4531521, %v3586_v25  ;;  %v8423_v56 = vpop.eup %6073  ;;  %v3697_v1 = vadd.f32 0.2548296, %v3681_v53  ;;  %v3732_v54 = vsub.f32 0.0, %v8389_v44  ;;  %6083 = vpow2.f32 %v3769_v29 }
0x1071   : > { %v3664_v50 = vadd.f32 -0.28449672, %v3648_v6  ;;  %v3603_v13 = vadd.f32 -1.4531521, %v3587_v30  ;;  %v6076_v46 = vpop.eup %6075  ;;  %v3589_v22 = vmul.f32 1.0614054, %v8423_v56  ;;  %6085 = vpow2.f32 %v3775_v57 }
0x1072   : > { %v3618_v48 = vmul.f32 %v8409_v40, %v3602_v34  ;;  %v3773_v58 = vmul.f32 1.442695, %v3746_v36  ;;  %v3791_v27 = vmul.f32 %v6076_v46, %v3711_v51  ;;  %v3779_v3 = vmul.f32 1.442695, %v3749_v47 }
0x1073   : > { %v3680_v16 = vmul.f32 %v8376_v2, %v3664_v50  ;;  %v3619_v28 = vmul.f32 %v8416_v49, %v3603_v13  ;;  %v3605_v39 = vadd.f32 -1.4531521, %v3589_v22  ;;  %v3734_v59 = vsub.f32 0.0, %v8404_v26 }
0x1074   : > { %v3634_v18 = vadd.f32 1.4214138, %v3618_v48  ;;  %v3713_v31 = vmul.f32 %v8364_v60, %v3697_v1  ;;  %v3748_v24 = vmul.f32 %v3732_v54, %v8389_v44  ;;  %6087 = vpow2.f32 %v3773_v58  ;;  %v8801_v58 = vld [vmem:[#allocation55_spill] sm:$0xff] }
0x1075   : > { %v3635_v5 = vadd.f32 1.4214138, %v3619_v28  ;;  %v3621_v23 = vmul.f32 %v8423_v56, %v3605_v39  ;;  %v3696_v43 = vadd.f32 0.2548296, %v3680_v16  ;;  %v3807_v12 = vsub.f32 1.0, %v3791_v27  ;;  %v8802_v27 = vld [vmem:[#allocation56_spill] sm:$0xff] }
0x1076   : > { %v3650_v45 = vmul.f32 %v8409_v40, %v3634_v18  ;;  %v8436_v11 = vpop.eup %6077  ;;  %6089 = vpow2.f32 %v3779_v3  ;;  %v3750_v35 = vmul.f32 %v3734_v59, %v8404_v26  ;;  %v3777_v32 = vmul.f32 1.442695, %v3748_v24 }
0x1077   : > { %v3651_v38 = vmul.f32 %v8416_v49, %v3635_v5  ;;  %v3637_v4 = vadd.f32 1.4214138, %v3621_v23  ;;  %v3588_v33 = vmul.f32 1.0614054, %v8436_v11  ;;  %v6080_v63 = vpop.eup %6079  ;;  %v3712_v50 = vmul.f32 %v8376_v2, %v3696_v43 }
0x1078   : > { %v3666_v62 = vadd.f32 -0.28449672, %v3650_v45  ;;  %v3793_v6 = vmul.f32 %v6080_v63, %v3713_v31  ;;  %v3839_v26 = vsub.f32 0.0, %v3807_v12  ;;  %v3781_v48 = vmul.f32 1.442695, %v3750_v35 }
0x1079   : > { %v3667_v60 = vadd.f32 -0.28449672, %v3651_v38  ;;  %v8442_v7 = vpop.eup %6081  ;;  %v3653_v53 = vmul.f32 %v8423_v56, %v3637_v4  ;;  %v3604_v25 = vadd.f32 -1.4531521, %v3588_v33  ;;  %6091 = vpow2.f32 %v3777_v32 }
0x107a   : > { %v3682_v41 = vmul.f32 %v8409_v40, %v3666_v62  ;;  %v3590_v9 = vmul.f32 1.0614054, %v8442_v7  ;;  %v6084_v13 = vpop.eup %6083  ;;  %v3809_v47 = vsub.f32 1.0, %v3793_v6  ;;  %v3487_v39 = vmul.f32 0.5, %v8801_v58 }
0x107b   : > { %v3683_v44 = vmul.f32 %v8416_v49, %v3667_v60  ;;  %v3669_v29 = vadd.f32 -0.28449672, %v3653_v53  ;;  %v3620_v34 = vmul.f32 %v8436_v11, %v3604_v25  ;;  %v6086_v16 = vpop.eup %6085  ;;  %v3792_v28 = vmul.f32 %v6084_v13, %v3712_v50 }
0x107c   : > { %v3698_v30 = vadd.f32 0.2548296, %v3682_v41  ;;  %v3606_v51 = vadd.f32 -1.4531521, %v3590_v9  ;;  %vm3823_vm13 = vcmp.ge.f32.partialorder %v8802_v27, 0.0  ;;  %v3841_v31 = vsub.f32 0.0, %v3809_v47 }
0x107d   : > { %v3699_v36 = vadd.f32 0.2548296, %v3683_v44  ;;  %v3685_v46 = vmul.f32 %v8423_v56, %v3669_v29  ;;  %v3636_v1 = vadd.f32 1.4214138, %v3620_v34  ;;  %6093 = vpow2.f32 %v3781_v48 }
0x107e   : > { %v3714_v57 = vmul.f32 %v8409_v40, %v3698_v30  ;;  %v3622_v2 = vmul.f32 %v8442_v7, %v3606_v51  ;;  %v6088_v59 = vpop.eup %6087  ;;  %v3855_v23 = vsel %vm3823_vm13, %v3807_v12, %v3839_v26  ;;  %v3489_v62 = vmul.f32 0.5, %v8272_v14 }
0x107f   : > { %v3715_v22 = vmul.f32 %v8416_v49, %v3699_v36  ;;  %v3701_v54 = vadd.f32 0.2548296, %v3685_v46  ;;  %v3652_v18 = vmul.f32 %v8436_v11, %v3636_v1  ;;  %v3808_v4 = vsub.f32 1.0, %v3792_v28 }
0x1080   : > { %v3638_v3 = vadd.f32 1.4214138, %v3622_v2  ;;  %v6090_v49 = vpop.eup %6089  ;;  %v3794_v43 = vmul.f32 %v6088_v59, %v3714_v57  ;;  %vm3825_vm14 = vcmp.ge.f32.partialorder %v8287_v42, 0.0  ;;  %vm3827_vm15 = vcmp.ge.f32.partialorder %v8343_v61, 0.0 }
0x1081   : > { %v3795_v5 = vmul.f32 %v6086_v16, %v3715_v22  ;;  %v3717_v40 = vmul.f32 %v8423_v56, %v3701_v54  ;;  %v3668_v45 = vadd.f32 -0.28449672, %v3652_v18  ;;  %v3871_v35 = vadd.f32 1.0, %v3855_v23 }
0x1082   : > { %v3654_v24 = vmul.f32 %v8442_v7, %v3638_v3  ;;  %v3857_v6 = vsel %vm3825_vm14, %v3809_v47, %v3841_v31  ;;  %v3810_v53 = vsub.f32 1.0, %v3794_v43  ;;  %v3491_v25 = vmul.f32 0.5, %v8330_v15 }
0x1083   : > { %v3811_v38 = vsub.f32 1.0, %v3795_v5  ;;  %v3797_v33 = vmul.f32 %v6090_v49, %v3717_v40  ;;  %v3684_v63 = vmul.f32 %v8436_v11, %v3668_v45  ;;  %v3840_v32 = vsub.f32 0.0, %v3808_v4  ;;  %v6092_v42 = vpop.eup %6091 }
0x1084   : > { %v3670_v56 = vadd.f32 -0.28449672, %v3654_v24  ;;  %v3873_v29 = vadd.f32 1.0, %v3857_v6  ;;  %vm3824_vm0 = vcmp.ge.f32.partialorder %v8311_v52, 0.0  ;;  %vm3829_vm1 = vcmp.ge.f32.partialorder %v8348_v55, 0.0 }
0x1085   : > { %v3843_v60 = vsub.f32 0.0, %v3811_v38  ;;  %v3813_v41 = vsub.f32 1.0, %v3797_v33  ;;  %v3700_v12 = vadd.f32 0.2548296, %v3684_v63  ;;  %v3887_v34 = vmul.f32 %v3871_v35, %v3487_v39 }
0x1086   : > { %v3686_v14 = vmul.f32 %v8442_v7, %v3670_v56  ;;  %v3842_v15 = vsub.f32 0.0, %v3810_v53  ;;  %v3493_v13 = vmul.f32 0.5, %v8334_v10  ;;  %v3856_v48 = vsel %vm3824_vm0, %v3808_v4, %v3840_v32 }
0x1087   : > { %v3859_v44 = vsel %vm3827_vm15, %v3811_v38, %v3843_v60  ;;  %v3845_v50 = vsub.f32 0.0, %v3813_v41  ;;  %v3716_v30 = vmul.f32 %v8436_v11, %v3700_v12  ;;  %v6094_v1 = vpop.eup %6093  ;;  %v3889_v22 = vmul.f32 %v3873_v29, %v3489_v62 }
0x1088   : > { %v3875_v9 = vadd.f32 1.0, %v3859_v44  ;;  %v3702_v61 = vadd.f32 0.2548296, %v3686_v14  ;;  %vm3826_vm2 = vcmp.ge.f32.partialorder %v8340_v37, 0.0  ;;  %vm3828_vm3 = vcmp.ge.f32.partialorder %v8381_v17, 0.0 }
0x1089   : > { %v3861_v36 = vsel %vm3829_vm1, %v3813_v41, %v3845_v50  ;;  %v3796_v51 = vmul.f32 %v6092_v42, %v3716_v30  ;;  %v3872_v16 = vadd.f32 1.0, %v3856_v48  ;;  %v3858_v28 = vsel %vm3826_vm2, %v3810_v53, %v3842_v15 }
0x108a   : > { %v3891_v26 = vmul.f32 %v3875_v9, %v3491_v25  ;;  %v3877_v47 = vadd.f32 1.0, %v3861_v36  ;;  %v3718_v46 = vmul.f32 %v8442_v7, %v3702_v61  ;;  %v3488_v58 = vmul.f32 0.5, %v8291_v20 }
0x108b   : > { %v3812_v11 = vsub.f32 1.0, %v3796_v51  ;;  %v3492_v7 = vmul.f32 0.5, %v8372_v21  ;;  %v3874_v5 = vadd.f32 1.0, %v3858_v28  ;;  %vm3830_vm4 = vcmp.ge.f32.partialorder %v8393_v0, 0.0  ;;  %v8479_v0 = vld [vmem:[%s1009_s28] ss:$0 sm:$0xff] }
0x108c   : > { %v3899_v57 = vpack.c.bf16 %v3891_v26, %v3887_v34  ;;  %v3893_v2 = vmul.f32 %v3877_v47, %v3493_v13  ;;  %v3798_v52 = vmul.f32 %v6094_v1, %v3718_v46  ;;  %v3888_v3 = vmul.f32 %v3872_v16, %v3488_v58 }
0x108d   : > { %v3844_v55 = vsub.f32 0.0, %v3812_v11  ;;  %v3490_v17 = vmul.f32 0.5, %v8325_v8  ;;  %v3494_v31 = vmul.f32 0.5, %v8386_v19  ;;  %vm6807_vm9 = vmmov (!%p5104_p12), 0  }
0x108e   : > { %v3814_v54 = vsub.f32 1.0, %v3798_v52  ;;  %v3901_v18 = vpack.c.bf16 %v3893_v2, %v3889_v22  ;;  %vm4492_vm10 = vcmask (!%p5104_p12), 1041409  }
0x108f   : > { %v3860_v10 = vsel %vm3828_vm3, %v3812_v11, %v3844_v55  ;;  %v3890_v49 = vmul.f32 %v3874_v5, %v3490_v17 }
0x1090   : > { %v3876_v39 = vadd.f32 1.0, %v3860_v10  ;;  %v3846_v27 = vsub.f32 0.0, %v3814_v54 }
0x1092   : > { %v3892_v37 = vmul.f32 %v3876_v39, %v3492_v7  ;;  %v3862_v59 = vsel %vm3830_vm4, %v3814_v54, %v3846_v27 }
0x1093   : > { %v3878_v40 = vadd.f32 1.0, %v3862_v59 }
0x1094   : > { %v3900_v45 = vpack.c.bf16 %v3892_v37, %v3888_v3 }
0x1095   : > { %v3894_v23 = vmul.f32 %v3878_v40, %v3494_v31 }
0x1096   : > { %4206 = vmatprep.mubr.bf16.mxu0 %v3900_v45 }
0x1097   : > { %v3902_v20 = vpack.c.bf16 %v3894_v23, %v3890_v49  ;;  %4207 = vmatmul.mubr.bf16.gmra.mrb[56].mxu0 %v3899_v57 }
0x1099   : > { %4255 = vmatprep.mubr.bf16.mxu1 %v3902_v20 }
0x109a   : > { %4256 = vmatmul.mubr.bf16.gmra.mrb[48].mxu1 %v3901_v18 }
0x113b   : > { %v5221_v21 = vpop.f32.mrb[52].mxu0 }
0x113c   : > { %v5222_v43 = vpop.f32.mrb[53].mxu0 }
0x113d   : > { %v5223_v38 = vadd.f32 %v5222_v43, %v5221_v21  ;;  %v5224_v24 = vpop.f32.mrb[54].mxu0 }
0x113e   : > { %v5225_v62 = vpop.f32.mrb[55].mxu0 }
0x113f   : > { %v5249_v8 = vpop.f32.mrb[44].mxu1  ;;  %v4201_v19 = vadd.f32 %v5223_v38, %v8479_v0  ;;  %v5226_v4 = vadd.f32 %v5225_v62, %v5224_v24 }
0x1140   : > { %v5250_v33 = vpop.f32.mrb[45].mxu1 }
0x1141   : > { %v5251_v63 = vadd.f32 %v5250_v33, %v5249_v8  ;;  %v5252_v60 = vpop.f32.mrb[46].mxu1  ;;  %v4204_v56 = vadd.f32 %v5226_v4, %v8479_v0 }
0x1142   : > { %v5253_v35 = vpop.f32.mrb[47].mxu1 }
0x1143   : > { %v4250_v6 = vadd.f32 %v5251_v63, %v4201_v19  ;;  %v5254_v41 = vadd.f32 %v5253_v35, %v5252_v60 }
0x1145   : > { %v4268_v12 = vmul.f32 0.70710677, %v4250_v6  ;;  %v8483_v53 = vadd.f32 %v5254_v41, %v4204_v56  ;;  %v4264_v8 = vmul.f32 0.5, %v4250_v6 }
0x1147   : > { %v4272_v25 = vand.u32 2147483647, %v4268_v12  ;;  %v8486_v44 = vmul.f32 0.70710677, %v8483_v53  ;;  %vm4348_vm5 = vcmp.ge.f32.partialorder %v4268_v12, 0.0 }
0x1149   : > { %v4276_v14 = vmul.f32 0.3275911, %v4272_v25  ;;  %v4273_v32 = vand.u32 2147483647, %v8486_v44  ;;  %v4324_v42 = vsub.f32 0.0, %v4272_v25  ;;  %vm4349_vm6 = vcmp.ge.f32.partialorder %v8486_v44, 0.0 }
0x114b   : > { %v4280_v9 = vadd.f32 1.0, %v4276_v14  ;;  %v4277_v50 = vmul.f32 0.3275911, %v4273_v32  ;;  %v4325_v29 = vsub.f32 0.0, %v4273_v32  ;;  %v4328_v34 = vmul.f32 %v4324_v42, %v4272_v25 }
0x114d   : > { %6095 = vrcp.f32 %v4280_v9  ;;  %v4281_v30 = vadd.f32 1.0, %v4277_v50  ;;  %v4329_v15 = vmul.f32 %v4325_v29, %v4273_v32  ;;  %v4332_v13 = vmul.f32 1.442695, %v4328_v34  ;;  %v8803_v50 = vld [vmem:[#allocation51_spill] sm:$0xff] }
0x114e   : > { %v4265_v32 = vmul.f32 0.5, %v8483_v53 }
0x114f   : > { %6097 = vrcp.f32 %v4281_v30  ;;  %v4334_v11 = vmul.f32 1.442695, %v4329_v15 }
0x1150   : > { %6099 = vpow2.f32 %v4332_v13 }
0x1151   : > { %6101 = vpow2.f32 %v4334_v11 }
0x1157   : > { %v6096_v61 = vpop.eup %6095 }
0x1158   : > { %v4288_v26 = vmul.f32 1.0614054, %v6096_v61 }
0x1159   : > { %v6098_v36 = vpop.eup %6097 }
0x115a   : > { %v4292_v51 = vadd.f32 -1.4531521, %v4288_v26  ;;  %v4289_v47 = vmul.f32 1.0614054, %v6098_v36  ;;  %v6100_v58 = vpop.eup %6099 }
0x115b   : > { %v6102_v37 = vpop.eup %6101 }
0x115c   : > { %v4296_v46 = vmul.f32 %v6096_v61, %v4292_v51  ;;  %v4293_v1 = vadd.f32 -1.4531521, %v4289_v47 }
0x115e   : > { %v4300_v48 = vadd.f32 1.4214138, %v4296_v46  ;;  %v4297_v57 = vmul.f32 %v6098_v36, %v4293_v1 }
0x1160   : > { %v4304_v22 = vmul.f32 %v6096_v61, %v4300_v48  ;;  %v4301_v2 = vadd.f32 1.4214138, %v4297_v57 }
0x1162   : > { %v4308_v52 = vadd.f32 -0.28449672, %v4304_v22  ;;  %v4305_v55 = vmul.f32 %v6098_v36, %v4301_v2 }
0x1164   : > { %v4312_v16 = vmul.f32 %v6096_v61, %v4308_v52  ;;  %v4309_v28 = vadd.f32 -0.28449672, %v4305_v55 }
0x1166   : > { %v4316_v54 = vadd.f32 0.2548296, %v4312_v16  ;;  %v4313_v18 = vmul.f32 %v6098_v36, %v4309_v28 }
0x1168   : > { %v4320_v10 = vmul.f32 %v6096_v61, %v4316_v54  ;;  %v4317_v7 = vadd.f32 0.2548296, %v4313_v18  ;;  %v8804_v61 = vld [vmem:[#allocation52_spill] sm:$0xff] }
0x116a   : > { %v4340_v39 = vmul.f32 %v6100_v58, %v4320_v10  ;;  %v5227_v27 = vpop.f32.mrb[56].mxu0  ;;  %v4321_v5 = vmul.f32 %v6098_v36, %v4317_v7 }
0x116b   : > { %v5228_v3 = vpop.f32.mrb[57].mxu0 }
0x116c   : > { %v4344_v59 = vsub.f32 1.0, %v4340_v39  ;;  %v5229_v17 = vadd.f32 %v5228_v3, %v5227_v27  ;;  %v5230_v31 = vpop.f32.mrb[58].mxu0  ;;  %v4341_v40 = vmul.f32 %v6102_v37, %v4321_v5 }
0x116d   : > { %v5255_v45 = vpop.f32.mrb[48].mxu1  ;;  %v5231_v49 = vpop.f32.mrb[59].mxu0 }
0x116e   : > { %v4352_v23 = vsub.f32 0.0, %v4344_v59  ;;  %v4209_v20 = vadd.f32 %v5229_v17, %v8479_v0  ;;  %v5256_v21 = vpop.f32.mrb[49].mxu1  ;;  %v5232_v43 = vadd.f32 %v5231_v49, %v5230_v31  ;;  %v4345_v38 = vsub.f32 1.0, %v4341_v40 }
0x116f   : > { %v5257_v24 = vadd.f32 %v5256_v21, %v5255_v45  ;;  %v5258_v62 = vpop.f32.mrb[50].mxu1 }
0x1170   : > { %v4356_v19 = vsel %vm4348_vm5, %v4344_v59, %v4352_v23  ;;  %v4212_v4 = vadd.f32 %v5232_v43, %v8479_v0  ;;  %v5259_v33 = vpop.f32.mrb[51].mxu1  ;;  %v4353_v60 = vsub.f32 0.0, %v4345_v38 }
0x1171   : > { %v4360_v63 = vadd.f32 1.0, %v4356_v19  ;;  %v4258_v56 = vadd.f32 %v5257_v24, %v4209_v20  ;;  %v5260_v35 = vadd.f32 %v5259_v33, %v5258_v62  ;;  %v8805_v33 = vld [vmem:[#allocation53_spill] sm:$0xff] }
0x1172   : > { %v4357_v25 = vsel %vm4349_vm6, %v4345_v38, %v4353_v60 }
0x1173   : > { %v4364_v41 = vmul.f32 %v4360_v63, %v4264_v8  ;;  %v4270_v14 = vmul.f32 0.70710677, %v4258_v56  ;;  %v4361_v12 = vadd.f32 1.0, %v4357_v25  ;;  %v4261_v9 = vadd.f32 %v5260_v35, %v4212_v4  ;;  %v8806_v35 = vld [vmem:[#allocation54_spill] sm:$0xff] }
0x1174   : > { %v4266_v43 = vmul.f32 0.5, %v4258_v56 }
0x1175   : > { %v8494_v30 = vadd.f32 %v4364_v41, %v8803_v50  ;;  %v4274_v6 = vand.u32 2147483647, %v4270_v14  ;;  %v4365_v42 = vmul.f32 %v4361_v12, %v4265_v32  ;;  %v4271_v0 = vmul.f32 0.70710677, %v4261_v9 }
0x1176   : > { %vm4350_vm7 = vcmp.ge.f32.partialorder %v4270_v14, 0.0  ;;  %v4267_v19 = vmul.f32 0.5, %v4261_v9 }
0x1177   : > { %4372 = vst [vmem:[#allocation2] sm:$0xff] %v8494_v30  ;;  %v4278_v29 = vmul.f32 0.3275911, %v4274_v6  ;;  %v8498_v34 = vadd.f32 %v4365_v42, %v8804_v61  ;;  %v4275_v44 = vand.u32 2147483647, %v4271_v0  ;;  %v4326_v51 = vsub.f32 0.0, %v4274_v6  ;;  %4382 = vadd.xlane.f32.xlu0 (!%p5104_p12), %v8494_v30 }
0x1178   : > { %vm4351_vm8 = vcmp.ge.f32.partialorder %v4271_v0, 0.0 }
0x1179   : > { %v4282_v26 = vadd.f32 1.0, %v4278_v29  ;;  %4373 = vst [vmem:[#allocation2 + $0x8] sm:$0xff] %v8498_v34  ;;  %v4279_v36 = vmul.f32 0.3275911, %v4275_v44  ;;  %v4327_v15 = vsub.f32 0.0, %v4275_v44  ;;  %v4330_v47 = vmul.f32 %v4326_v51, %v4274_v6 }
0x117a   : > { %v6806_v51 = vmov (!%p5104_p12), 0.0  }
0x117b   : > { %6103 = vrcp.f32 %v4282_v26  ;;  %v4283_v53 = vadd.f32 1.0, %v4279_v36  ;;  %v4331_v11 = vmul.f32 %v4327_v15, %v4275_v44  ;;  %v4336_v57 = vmul.f32 1.442695, %v4330_v47  ;;  %4384 = vadd.xlane.f32.xlu0 (!%p5104_p12), %v8498_v34  ;;  %5406 = vmatprep.subr.bf16.mxu0 (!%p5104_p12), %v6806_v51  ;;  %v6117_v15 = vld [vmem:[%s8808_s17 + $0x10] sm:$0xff] (!%p5104_p12)   ;;  %v6119_v47 = vld [vmem:[%s8808_s17 + $0x20] sm:$0xff] (!%p5104_p12)  }
0x117c   : > { %5422 = vmatprep.mubr.msk.bf16.mxu0 (!%p5104_p12), %vm6807_vm9, %v6806_v51 }
0x117d   : > { %6105 = vrcp.f32 %v4283_v53  ;;  %v4338_v16 = vmul.f32 1.442695, %v4331_v11  ;;  %v6115_v53 = vld [vmem:[%s8808_s17] sm:$0xff] (!%p5104_p12)  }
0x117e   : > { %6107 = vpow2.f32 %v4336_v57  ;;  %5407 = vmatpush3.bf16.msra.mxu0 (!%p5104_p12), %v6115_v53 }
0x117f   : > { %6109 = vpow2.f32 %v4338_v16  ;;  %5408 = vmatprep.subr.bf16.mxu0 (!%p5104_p12), %v6806_v51 }
0x1185   : > { %v6104_v13 = vpop.eup %6103 }
0x1186   : > { %v4290_v46 = vmul.f32 1.0614054, %v6104_v13 }
0x1187   : > { %v6106_v1 = vpop.eup %6105 }
0x1188   : > { %v4294_v48 = vadd.f32 -1.4531521, %v4290_v46  ;;  %v4291_v22 = vmul.f32 1.0614054, %v6106_v1  ;;  %v6108_v37 = vpop.eup %6107  ;;  %v6120_v46 = vld [vmem:[%s8808_s17 + $0x28] sm:$0xff] (!%p5104_p12)  }
0x1189   : > { %v6110_v40 = vpop.eup %6109 }
0x118a   : > { %v4298_v2 = vmul.f32 %v6104_v13, %v4294_v48  ;;  %v4295_v52 = vadd.f32 -1.4531521, %v4291_v22  ;;  %v6122_v48 = vld [vmem:[%s8808_s17 + $0x38] sm:$0xff] (!%p5104_p12)  }
0x118c   : > { %v4302_v55 = vadd.f32 1.4214138, %v4298_v2  ;;  %v4299_v28 = vmul.f32 %v6106_v1, %v4295_v52 }
0x118e   : > { %v4306_v54 = vmul.f32 %v6104_v13, %v4302_v55  ;;  %v4303_v18 = vadd.f32 1.4214138, %v4299_v28 }
0x1190   : > { %v4310_v10 = vadd.f32 -0.28449672, %v4306_v54  ;;  %v4307_v58 = vmul.f32 %v6106_v1, %v4303_v18 }
0x1192   : > { %v4314_v7 = vmul.f32 %v6104_v13, %v4310_v10  ;;  %v4311_v39 = vadd.f32 -0.28449672, %v4307_v58 }
0x1194   : > { %v4318_v27 = vadd.f32 0.2548296, %v4314_v7  ;;  %v4315_v5 = vmul.f32 %v6106_v1, %v4311_v39 }
0x1196   : > { %v4322_v3 = vmul.f32 %v6104_v13, %v4318_v27  ;;  %v4319_v59 = vadd.f32 0.2548296, %v4315_v5  ;;  %v6118_v13 = vld [vmem:[%s8808_s17 + $0x18] sm:$0xff] (!%p5104_p12)   ;;  %v5105_v27 = vld [vmem:[#allocation23] ss:$0 sm:$0xff] (!%p5104_p12) }
0x1198   : > { %v4342_v17 = vmul.f32 %v6108_v37, %v4322_v3  ;;  %v4323_v31 = vmul.f32 %v6106_v1, %v4319_v59  ;;  %v6121_v1 = vld [vmem:[%s8808_s17 + $0x30] sm:$0xff] (!%p5104_p12)  }
0x119a   : > { %v4346_v45 = vsub.f32 1.0, %v4342_v17  ;;  %v4343_v49 = vmul.f32 %v6110_v40, %v4323_v31  ;;  %v5106_v17 = vld [vmem:[#allocation24] ss:$0 sm:$0xff] (!%p5104_p12) }
0x119c   : > { %v4354_v23 = vsub.f32 0.0, %v4346_v45  ;;  %v4347_v20 = vsub.f32 1.0, %v4343_v49 }
0x119e   : > { %v4358_v21 = vsel %vm4350_vm7, %v4346_v45, %v4354_v23  ;;  %v4355_v24 = vsub.f32 0.0, %v4347_v20 }
0x119f   : > { %v4362_v38 = vadd.f32 1.0, %v4358_v21 }
0x11a0   : > { %v4359_v8 = vsel %vm4351_vm8, %v4347_v20, %v4355_v24 }
0x11a1   : > { %v4366_v62 = vmul.f32 %v4362_v38, %v4266_v43  ;;  %v4363_v4 = vadd.f32 1.0, %v4359_v8  ;;  %4379 = sbr.rel (%p5104_p12) target bundleno = 5070 (0x13ce), region = 184 }
0x11a3   : > { %v4370_v63 = vadd.f32 %v4366_v62, %v8805_v33  ;;  %v4367_v60 = vmul.f32 %v4363_v4, %v4267_v19 }
0x11a5   : > { %4374 = vst [vmem:[#allocation2 + $0x10] sm:$0xff] %v4370_v63  ;;  %v4371_v41 = vadd.f32 %v4367_v60, %v8806_v35  ;;  %4386 = vadd.xlane.f32.xlu1 (!%p5104_p12), %v4370_v63 }
0x11a7   : > { %4375 = vst [vmem:[#allocation2 + $0x18] sm:$0xff] %v4371_v41 }
0x11a9   : > { %4388 = vadd.xlane.f32.xlu1 %v4371_v41 }
0x1204   : > { %v4383_v56 = vpop.xlane.xlu0 %4382 }
0x1205   : > { %v4390_v14 = vmul.f32 0.0078125, %v4383_v56 }
0x1207   : > { %v4394_v12 = vsub.f32 %v8494_v30, %v4390_v14 }
0x1208   : > { %v4385_v50 = vpop.xlane.xlu0 %4384 }
0x1209   : > { %v4391_v42 = vmul.f32 0.0078125, %v4385_v50  ;;  %v4398_v0 = vmul.f32 %v4394_v12, %v4394_v12 }
0x120b   : > { %v4395_v61 = vsub.f32 %v8498_v34, %v4391_v42  ;;  %4402 = vadd.xlane.f32.xlu0 %v4398_v0  ;;  %v6116_v34 = vld [vmem:[%s8808_s17 + $0x8] sm:$0xff]  }
0x120c   : > { %5409 = vmatpush3.bf16.msra.mxu0 %v6116_v34 }
0x120d   : > { %v4399_v36 = vmul.f32 %v4395_v61, %v4395_v61  ;;  %5410 = vmatprep.subr.bf16.mxu0 %v6806_v51 }
0x120f   : > { %4404 = vadd.xlane.f32.xlu1 %v4399_v36 }
0x1210   : > { %5411 = vmatpush3.bf16.msra.mxu0 %v6117_v15 }
0x1211   : > { %5412 = vmatprep.subr.bf16.mxu0 %v6806_v51 }
0x1214   : > { %5413 = vmatpush3.bf16.msra.mxu0 %v6118_v13 }
0x1215   : > { %5414 = vmatprep.subr.bf16.mxu0 %v6806_v51 }
0x1218   : > { %5415 = vmatpush3.bf16.msra.mxu0 %v6119_v47 }
0x1219   : > { %5416 = vmatprep.subr.bf16.mxu0 %v6806_v51 }
0x121c   : > { %5417 = vmatpush3.bf16.msra.mxu0 %v6120_v46 }
0x121d   : > { %5418 = vmatprep.subr.bf16.mxu0 %v6806_v51 }
0x1220   : > { %5419 = vmatpush3.bf16.msra.mxu0 %v6121_v1 }
0x1221   : > { %5420 = vmatprep.subr.bf16.mxu0 %v6806_v51 }
0x1224   : > { %5421 = vmatpush3.bf16.msra.mxu0 %v6122_v48 }
0x1232   : > { %v4387_v25 = vpop.xlane.xlu1 %4386 }
0x1233   : > { %v4392_v32 = vmul.f32 0.0078125, %v4387_v25 }
0x1235   : > { %v8507_v9 = vsub.f32 %v4370_v63, %v4392_v32 }
0x1236   : > { %v4389_v6 = vpop.xlane.xlu1 %4388 }
0x1237   : > { %v4393_v29 = vmul.f32 0.0078125, %v4389_v6  ;;  %v4400_v26 = vmul.f32 %v8507_v9, %v8507_v9 }
0x1239   : > { %v8510_v44 = vsub.f32 %v4371_v41, %v4393_v29  ;;  %4406 = vadd.xlane.f32.xlu0 %v4400_v26  ;;  %v5107_v26 = vld [vmem:[%s8809_s20] ss:$0 sm:$0xff] }
0x123b   : > { %v4401_v30 = vmul.f32 %v8510_v44, %v8510_v44 }
0x123d   : > { %4408 = vadd.xlane.f32.xlu1 %v4401_v30 }
0x1298   : > { %v4403_v11 = vpop.xlane.xlu0 %4402 }
0x1299   : > { %v4410_v57 = vmul.f32 0.0078125, %v4403_v11 }
0x129b   : > { %v4414_v22 = vadd.f32 1e-05, %v4410_v57 }
0x129c   : > { %v4405_v2 = vpop.xlane.xlu1 %4404 }
0x129d   : > { %6123 = vrsqrt.f32 %v4414_v22  ;;  %v4411_v55 = vmul.f32 0.0078125, %v4405_v2 }
0x129f   : > { %v4415_v28 = vadd.f32 1e-05, %v4411_v55 }
0x12a1   : > { %6125 = vrsqrt.f32 %v4415_v28 }
0x12a7   : > { %v6124_v7 = vpop.eup %6123 }
0x12a8   : > { %v4422_v39 = vmul.f32 %v6124_v7, %v4394_v12 }
0x12aa   : > { %v4432_v37 = vmul.f32 %v5105_v27, %v4422_v39 }
0x12ab   : > { %v6126_v5 = vpop.eup %6125 }
0x12ac   : > { %v4423_v59 = vmul.f32 %v6126_v5, %v4395_v61  ;;  %v4442_v49 = vadd.f32 %v5106_v17, %v4432_v37 }
0x12ae   : > { %v4433_v40 = vmul.f32 %v5105_v27, %v4423_v59 }
0x12b0   : > { %v4443_v23 = vadd.f32 %v5106_v17, %v4433_v40 }
0x12b2   : > { %v4446_v38 = vadd.f32 %v4443_v23, %v4442_v49 }
0x12b4   : > { %v4447_v8 = vrot.slane %v4446_v38, 4 }
0x12b6   : > { %v4448_v19 = vadd.f32 %v4447_v8, %v4446_v38 }
0x12b8   : > { %v4449_v33 = vrot.slane %v4448_v19, 2 }
0x12ba   : > { %v4450_v60 = vadd.f32 %v4449_v33, %v4448_v19 }
0x12bc   : > { %v4451_v41 = vrot.slane %v4450_v60, 1 }
0x12be   : > { %v4452_v25 = vadd.f32 %v4451_v41, %v4450_v60 }
0x12c0   : > { %v4461_v12 = vmul.f32 0.0625, %v4452_v25 }
0x12c2   : > { %v4463_v6 = vpack.c.bf16 %v4461_v12, %v4461_v12 }
0x12c4   : > { %v4490_v0 = vunpack.c.l.b16 %v4463_v6 }
0x12c6   : > { %v4407_v52 = vpop.xlane.xlu0 %4406 }
0x12c7   : > { %v4412_v16 = vmul.f32 0.0078125, %v4407_v52 }
0x12c9   : > { %v4416_v54 = vadd.f32 1e-05, %v4412_v16 }
0x12ca   : > { %v4409_v18 = vpop.xlane.xlu1 %4408 }
0x12cb   : > { %v4413_v10 = vmul.f32 0.0078125, %v4409_v18  ;;  %6127 = vrsqrt.f32 %v4416_v54 }
0x12cd   : > { %v4417_v58 = vadd.f32 1e-05, %v4413_v10 }
0x12cf   : > { %6129 = vrsqrt.f32 %v4417_v58 }
0x12d5   : > { %v6128_v3 = vpop.eup %6127 }
0x12d6   : > { %v4424_v31 = vmul.f32 %v6128_v3, %v8507_v9 }
0x12d8   : > { %v4434_v20 = vmul.f32 %v5105_v27, %v4424_v31 }
0x12d9   : > { %v6130_v45 = vpop.eup %6129 }
0x12da   : > { %v4425_v21 = vmul.f32 %v6130_v45, %v8510_v44  ;;  %v4444_v24 = vadd.f32 %v5106_v17, %v4434_v20 }
0x12dc   : > { %v4435_v43 = vmul.f32 %v5105_v27, %v4425_v21 }
0x12de   : > { %v4445_v62 = vadd.f32 %v5106_v17, %v4435_v43 }
0x12e0   : > { %v4453_v4 = vadd.f32 %v4445_v62, %v4444_v24 }
0x12e2   : > { %v4454_v63 = vrot.slane %v4453_v4, 4 }
0x12e4   : > { %v4455_v35 = vadd.f32 %v4454_v63, %v4453_v4 }
0x12e6   : > { %v4456_v56 = vrot.slane %v4455_v35, 2 }
0x12e8   : > { %v4457_v14 = vadd.f32 %v4456_v56, %v4455_v35 }
0x12ea   : > { %v4458_v32 = vrot.slane %v4457_v14, 1 }
0x12ec   : > { %v4459_v9 = vadd.f32 %v4458_v32, %v4457_v14 }
0x12ee   : > { %v4462_v50 = vmul.f32 0.0625, %v4459_v9 }
0x12f0   : > { %v4464_v42 = vpack.c.bf16 %v4462_v50, %v4462_v50 }
0x12f2   : > { %v4491_v29 = vunpack.c.l.b16 %v4464_v42 }
0x12f4   : > { %v4493_v61 = vsel %vm4492_vm10, %v4491_v29, %v4490_v0 }
0x12f5   : > { %v4494_v44 = vpack.c.b16 %v4493_v61, %v4493_v61 }
0x12f7   : > { %5423 = vmatmul.mubr.bf16.vlgmr.msra.gmra.mrb[0].mxu0 %v4494_v44 }
0x13ca   : > { %v4578_v36 = vpop.f32.mrb[0].mxu0 }
0x13cb   : > { %v4579_v30 = vadd.f32 %v5107_v26, %v4578_v36  ;;  %v5424_v53 = vpop.f32.mrb[1].mxu0 }
0x13cc   : > { %v4581_v51 = vpop.f32.mrb[2].mxu0 }
0x13cd   : > { %4584 = vst [vmem:[%s7623_s14] sm:$0x3] %v4579_v30  ;;  %v5425_v34 = vpop.f32.mrb[3].mxu0 }
0x13ce PF: > { %s8810_s10 = sld [smem:[#allocation40_spill]]  ;;  %s8811_s23 = sld [smem:[#allocation49_spill]] }
0x13cf   : > { %s8812_s3 = sld [smem:[#allocation76_spill]]  ;;  %s4599_s21 = sshll.u32 %s7623_s14, 4  ;;  %s4600_s21 = int_to_ptr.vmem [resolvable:$true] %s4599_s21 }
0x13d0   : > { %s4586_s25 = scalar_lea.sflag [#allocation5], %s7563_s2  ;;  %s6627_s27 = scalar_lea.vmem %s4600_s21, 32 }
0x13d1   : > { %p6628_p3 = scmp.ne.s32.totalorder %s4600_s21, %s6627_s27  ;;  %s6808_s4 = smov [#allocation25]  }
0x13d2   : > { %s6631_s30 = sshll.u32 %s6808_s4, 4  ;;  %s6632_s30 = int_to_ptr.vmem [resolvable:$false] %s6631_s30 }
0x13d3   : > { %s6633_s29 = scalar_lea.vmem %s6632_s30, 64  ;;  %p6634_p4 = scmp.lt.s32.totalorder %s4600_s21, %s6632_s30 }
0x13d4   : > { %s5117_s12 = sshll.u32 %s8810_s10, 5  ;;  %p8814_p13 = scmp.ne.s32.totalorder %s8811_s23, 0 }
0x13d5   : > { %s8813_s26 = smov %s8812_s3  ;;  %s8550_s24 = scalar_lea.hbm %s8812_s3, %s5117_s12 }
0x13d6   : > { %p6629_p5 = pnand %p6628_p3, %p8814_p13  ;;  %p6635_p0 = scmp.lt.s32.totalorder %s6633_s29, %s6627_s27 }
0x13d8   : > { %p6630_p1 = pneg %p6629_p5  ;;  %p6636_p2 = por %p6635_p0, %p6634_p4 }
0x13da   : > { %p6637_p7 = pnand %p6636_p2, %p6630_p1 }
0x13dc   : > { %6640 = shalt.err (!%p6637_p7)
}
0x13dd   : > { %s6641_s2 = scalar_lea.hbm %s8550_s24, 32  ;;  %s6645_s1 = scalar_lea.hbm %s8813_s26, 64 }
0x13de   : > { %p6642_p9 = scmp.ne.s32.totalorder %s8550_s24, %s6641_s2  ;;  %p6646_p10 = scmp.lt.u32.totalorder %s8550_s24, %s8813_s26 }
0x13df   : > { %p6647_p11 = scmp.lt.u32.totalorder %s6645_s1, %s6641_s2  ;;  %p6649_p3 = scmp.lt.u32.totalorder %s6641_s2, %s8550_s24 }
0x13e0   : > { %p6643_p6 = pnand %p6642_p9, %p8814_p13 }
0x13e1   : > { %p6648_p12 = por %p6647_p11, %p6646_p10 }
0x13e2   : > { %p6644_p8 = pneg %p6643_p6 }
0x13e3   : > { %p6650_p5 = por %p6649_p3, %p6648_p12 }
0x13e5   : > { %p6651_p1 = pnand %p6650_p5, %p6644_p8 }
0x13e7   : > { %6654 = shalt.err (!%p6651_p1)
}
0x13e8   : > { %5493 = dma.vmem_to_hbm [thread:$0]  (%p8814_p13), %s4600_s21, 32, %s8550_s24, %s4586_s25  }
0x13e9 PF: > { %s8815_s20 = sld [smem:[#allocation42_spill]]  ;;  %s8816_s10 = sld [smem:[#allocation36_spill]] }
0x13ea   : > { %s8817_s12 = sld [smem:[#allocation50_spill]] }
0x13ef   : > { %p5567_p4 = scmp.ge.s32.totalorder %s8815_s20, 2  ;;  %s4611_s13 = sand.u32 1, %s8816_s10  }
0x13f0   : > { %p8818_p0 = scmp.ne.s32.totalorder %s8817_s12, 0  ;;  %s4612_s28 = scalar_lea.sflag [#allocation5], %s4611_s13 }
0x13f2   : > { %p5549_p2 = pnand %p5567_p4, %p8818_p0 }
0x13f4   : > { %6728 = dma.done.wait (!%p5549_p2), %s4612_s28, 32  }
0x13f5   : > { %6730 = vsyncadd (!%p5549_p2), %s4612_s28, 4294967264  ;;  %s41_s6 = sadd.s32 1, %s8815_s20   ;;  %s8819_s3 = sld [smem:[#allocation34_spill]] }
0x13f6   : > { %p38_p7 = scmp.ge.s32.totalorder %s41_s6, 6   ;;  %s8820_s28 = sld [smem:[#allocation35_spill]] }
0x13f7   : > { %s8821_s29 = sld [smem:[#allocation46_spill]]  ;;  %s8822_s30 = sld [smem:[#allocation37_spill]] }
0x13f8   : > { %s8823_s4 = sld [smem:[#allocation38_spill]]  ;;  %s8824_s0 = sld [smem:[#allocation47_spill]] }
0x13f9   : > { %s8825_s1 = sld [smem:[#allocation41_spill]]  ;;  %s8826_s24 = sld [smem:[#allocation43_spill]] }
0x13fa   : > { %s8827_s21 = sld [smem:[#allocation44_spill]]  ;;  %s8828_s23 = smov %s6765_s5 }
0x13fb   :  { %40 = sbr.rel (!%p38_p7) target bundleno = 33 (0x21), region = 291 }
0x13ff   : > { %s8829_s5 = smov %s8826_s24 }
0x1400   : > { %s8830_s24 = smov %s8827_s21 }
0x1402   :  { %4617 = vsyncpa [#allocation4], 1 }
0x1403   :  { %4619 = vsyncpa [#allocation4 + $0x1], 1 }
0x1404   :  { %4620 = vsyncpa [#allocation7], 1 }
0x1405   :  { %4621 = vsyncpa [#allocation10], 1 }
0x1406   :  { %4622 = vsyncpa [#allocation13], 1 }
0x1407   :  { %4623 = vsyncpa [#allocation5], 1 }
0x1408   :  { %4625 = vsyncpa [#allocation5 + $0x1], 1 }

</bundles_post_ra>
